<compile_context>
chip_gen: v7x
topology: tpu7x:2x2x1
jax: 0.10.0
libtpu: 0.0.40
codegen_flags: <defaults>
</compile_context>

<pallas_src>
import functools
import math

import jax
import jax.numpy as jnp
from jax.experimental import pallas as pl
from jax.experimental.pallas import tpu as pltpu


# ----------------------------------------------------------------------------
# Pallas kernels
# ----------------------------------------------------------------------------
def _conv_block_kernel(p_ref, w_ref, b_ref, t_ref, o_ref):
    """silu(patches @ W + bias + temb) for one batch element."""
    acc = jnp.dot(p_ref[0], w_ref[...], preferred_element_type=jnp.float32)
    acc = acc + b_ref[...].astype(jnp.float32) + t_ref[0].astype(jnp.float32)
    acc = acc * jax.nn.sigmoid(acc)
    o_ref[...] = acc[None].astype(o_ref.dtype)


def _conv_block_extra_kernel(p_ref, w_ref, b_ref, t_ref, e_ref, o_ref):
    """silu(patches @ W + bias + temb + extra) for one batch element."""
    acc = jnp.dot(p_ref[0], w_ref[...], preferred_element_type=jnp.float32)
    acc = (acc + b_ref[...].astype(jnp.float32)
           + t_ref[0].astype(jnp.float32) + e_ref[0].astype(jnp.float32))
    acc = acc * jax.nn.sigmoid(acc)
    o_ref[...] = acc[None].astype(o_ref.dtype)


def fused_conv_block(patches, w, bias2d, temb, extra=None, out_dtype=jnp.bfloat16):
    """patches:(B,L,K) bf16, w:(K,N) bf16, bias2d:(1,N) f32, temb:(B,N) f32,
    extra:(B,L,N) or None  ->  silu(patches@w + bias + temb [+ extra]) :(B,L,N)."""
    B, L, K = patches.shape
    N = w.shape[1]
    temb3 = temb.reshape(B, 1, N)
    in_specs = [
        pl.BlockSpec((1, L, K), lambda b: (b, 0, 0)),
        pl.BlockSpec((K, N), lambda b: (0, 0)),
        pl.BlockSpec((1, N), lambda b: (0, 0)),
        pl.BlockSpec((1, 1, N), lambda b: (b, 0, 0)),
    ]
    args = [patches, w, bias2d, temb3]
    kernel = _conv_block_kernel
    if extra is not None:
        in_specs.append(pl.BlockSpec((1, L, N), lambda b: (b, 0, 0)))
        args.append(extra)
        kernel = _conv_block_extra_kernel
    return pl.pallas_call(
        kernel,
        out_shape=jax.ShapeDtypeStruct((B, L, N), out_dtype),
        grid=(B,),
        in_specs=in_specs,
        out_specs=pl.BlockSpec((1, L, N), lambda b: (b, 0, 0)),
        compiler_params=pltpu.CompilerParams(dimension_semantics=("parallel",)),
    )(*args)


def _attn_block_kernel(h_ref, ctx_ref, qw_ref, kvw_ref, ow_ref, pw_ref, pb_ref,
                       o_ref, *, d_ctx):
    """Fused cross-attention block + residual + following projection, per batch.

    out = (h + softmax((h@qw) @ (ctx@kw)^T) @ (ctx@vw) @ ow) @ pw + pb
    (1/sqrt(d) scale is pre-folded into qw; kw/vw are fused column-wise in kvw.)
    """
    h = h_ref[0]                                                   # (L, C) bf16
    ctx = ctx_ref[0]                                               # (S, d) bf16
    q = jnp.dot(h, qw_ref[...], preferred_element_type=jnp.float32)        # (L, d)
    kv = jnp.dot(ctx, kvw_ref[...], preferred_element_type=jnp.float32)    # (S, 2d)
    k = kv[:, :d_ctx]
    v = kv[:, d_ctx:]
    # scores without materializing k.T
    s = jax.lax.dot_general(q, k, (((1,), (1,)), ((), ())),
                            preferred_element_type=jnp.float32)            # (L, S)
    m = jnp.max(s, axis=-1, keepdims=True)
    p = jnp.exp(s - m)
    denom = jnp.sum(p, axis=-1, keepdims=True)
    p = p * pl.reciprocal(denom, approx=True)
    attn = jnp.dot(p.astype(jnp.bfloat16), v.astype(jnp.bfloat16),
                   preferred_element_type=jnp.float32)                     # (L, d)
    o = jnp.dot(attn.astype(jnp.bfloat16), ow_ref[...],
                preferred_element_type=jnp.float32)                        # (L, C)
    h_new = h.astype(jnp.float32) + o                                      # residual
    out = jnp.dot(h_new.astype(jnp.bfloat16), pw_ref[...],
                  preferred_element_type=jnp.float32)
    out = out + pb_ref[...].astype(jnp.float32)
    o_ref[...] = out[None].astype(o_ref.dtype)


def fused_attention_block(h, ctx, qw, kvw, ow, pw, pb2d, out_dtype):
    """h:(B,L,C) bf16, ctx:(B,S,d) bf16, weights bf16, pb2d:(1,N) f32 -> (B,L,N)."""
    B, L, C = h.shape
    _, S, d = ctx.shape
    N = pw.shape[1]
    kernel = functools.partial(_attn_block_kernel, d_ctx=d)
    return pl.pallas_call(
        kernel,
        out_shape=jax.ShapeDtypeStruct((B, L, N), out_dtype),
        grid=(B,),
        in_specs=[
            pl.BlockSpec((1, L, C), lambda b: (b, 0, 0)),
            pl.BlockSpec((1, S, d), lambda b: (b, 0, 0)),
            pl.BlockSpec((C, d), lambda b: (0, 0)),
            pl.BlockSpec((d, 2 * d), lambda b: (0, 0)),
            pl.BlockSpec((d, C), lambda b: (0, 0)),
            pl.BlockSpec((C, N), lambda b: (0, 0)),
            pl.BlockSpec((1, N), lambda b: (0, 0)),
        ],
        out_specs=pl.BlockSpec((1, L, N), lambda b: (b, 0, 0)),
        compiler_params=pltpu.CompilerParams(dimension_semantics=("parallel",)),
    )(h, ctx, qw, kvw, ow, pw, pb2d)


def _time_mlp_kernel(s_ref, w1_ref, b1_ref, w2_ref, b2_ref, o_ref):
    h = jnp.dot(s_ref[...], w1_ref[...], preferred_element_type=jnp.float32)
    h = h + b1_ref[...]
    h = h * jax.nn.sigmoid(h)
    out = jnp.dot(h, w2_ref[...], preferred_element_type=jnp.float32) + b2_ref[...]
    o_ref[...] = out.astype(o_ref.dtype)


def timestep_mlp(timesteps, w1, b1, w2, b2, t_dim):
    """Fused 2-layer timestep MLP: linear+SiLU+linear in one kernel."""
    sin = sinusoidal_embedding(timesteps, t_dim)                    # (B, t_dim)
    B = sin.shape[0]
    n1 = w1.shape[1]
    n2 = w2.shape[1]
    return pl.pallas_call(
        _time_mlp_kernel,
        out_shape=jax.ShapeDtypeStruct((B, n2), jnp.float32),
        grid=(1,),
        in_specs=[
            pl.BlockSpec((B, t_dim), lambda i: (0, 0)),
            pl.BlockSpec((t_dim, n1), lambda i: (0, 0)),
            pl.BlockSpec((1, n1), lambda i: (0, 0)),
            pl.BlockSpec((n1, n2), lambda i: (0, 0)),
            pl.BlockSpec((1, n2), lambda i: (0, 0)),
        ],
        out_specs=pl.BlockSpec((B, n2), lambda i: (0, 0)),
    )(sin, w1, b1.reshape(1, -1), w2, b2.reshape(1, -1))


def _linear_bias_kernel(a_ref, w_ref, b_ref, o_ref):
    acc = jnp.dot(a_ref[...], w_ref[...], preferred_element_type=jnp.float32)
    o_ref[...] = (acc + b_ref[...]).astype(o_ref.dtype)


def pallas_linear(a, w, bias):
    """Whole-M single-step linear: (M,K)@(K,N)+b."""
    M, K = a.shape
    N = w.shape[1]
    return pl.pallas_call(
        _linear_bias_kernel,
        out_shape=jax.ShapeDtypeStruct((M, N), jnp.float32),
        grid=(1,),
        in_specs=[
            pl.BlockSpec((M, K), lambda i: (0, 0)),
            pl.BlockSpec((K, N), lambda i: (0, 0)),
            pl.BlockSpec((1, N), lambda i: (0, 0)),
        ],
        out_specs=pl.BlockSpec((M, N), lambda i: (0, 0)),
    )(a, w, bias.reshape(1, -1))


# ----------------------------------------------------------------------------
# JAX glue: im2col conv patches, sinusoidal embedding, padding, params
# ----------------------------------------------------------------------------
# TODO(synk): im2col stays as XLA glue (9x HBM expansion). At real UNet
# resolutions this should move in-kernel via a haloed BlockSpec DMA.
def im2col_3x3(x):
    """x: (B,H,W,C) NHWC -> (B, H*W, C*9) patches (pad=1, stride=1)."""
    B, H, W, C = x.shape
    xp = jnp.pad(x, ((0, 0), (1, 1), (1, 1), (0, 0)))
    patches = [xp[:, dy:dy + H, dx:dx + W, :] for dy in range(3) for dx in range(3)]
    return jnp.concatenate(patches, axis=-1).reshape(B, H * W, C * 9)


def sinusoidal_embedding(t, dim):
    half = dim // 2
    freqs = jnp.exp(-math.log(10000.0) * jnp.arange(half, dtype=jnp.float32) / half)
    args = t.astype(jnp.float32)[:, None] * freqs[None, :]
    return jnp.concatenate([jnp.sin(args), jnp.cos(args)], axis=-1)


def _pad_last(x, mult):
    pad = (-x.shape[-1]) % mult
    if pad:
        x = jnp.pad(x, [(0, 0)] * (x.ndim - 1) + [(0, pad)])
    return x


def _pad_rows(w, mult):
    pad = (-w.shape[0]) % mult
    if pad:
        w = jnp.pad(w, [(0, pad), (0, 0)])
    return w


def _init(key, shape, scale=0.05):
    return scale * jax.random.normal(key, shape, jnp.float32)


def make_params(key, *, c_lat=4, c_cond=3, c_mid=64, d_ctx=32,
                d_char=16, vocab=64, t_dim=32):
    ks = iter(jax.random.split(key, 40))
    p = {}
    # CharEncoder
    p["char_embed"] = _init(next(ks), (vocab, d_char))
    p["char_proj_w"] = _init(next(ks), (d_char, d_ctx))
    p["char_proj_b"] = jnp.zeros((d_ctx,), jnp.float32)
    # ControlNet
    p["cn_conv_noise_w"] = _init(next(ks), (c_lat * 9, c_mid))
    p["cn_conv_noise_b"] = jnp.zeros((c_mid,), jnp.float32)
    p["cn_conv_cond_w"] = _init(next(ks), (c_cond * 9, c_mid))
    p["cn_conv_cond_b"] = jnp.zeros((c_mid,), jnp.float32)
    p["cn_t1_w"] = _init(next(ks), (t_dim, c_mid))
    p["cn_t1_b"] = jnp.zeros((c_mid,), jnp.float32)
    p["cn_t2_w"] = _init(next(ks), (c_mid, c_mid))
    p["cn_t2_b"] = jnp.zeros((c_mid,), jnp.float32)
    p["cn_q_w"] = _init(next(ks), (c_mid, d_ctx))
    p["cn_k_w"] = _init(next(ks), (d_ctx, d_ctx))
    p["cn_v_w"] = _init(next(ks), (d_ctx, d_ctx))
    p["cn_o_w"] = _init(next(ks), (d_ctx, c_mid))
    p["cn_hint_w"] = _init(next(ks), (c_mid, c_mid))
    p["cn_hint_b"] = jnp.zeros((c_mid,), jnp.float32)
    # UNet
    p["un_conv_in_w"] = _init(next(ks), (c_lat * 9, c_mid))
    p["un_conv_in_b"] = jnp.zeros((c_mid,), jnp.float32)
    p["un_t1_w"] = _init(next(ks), (t_dim, c_mid))
    p["un_t1_b"] = jnp.zeros((c_mid,), jnp.float32)
    p["un_t2_w"] = _init(next(ks), (c_mid, c_mid))
    p["un_t2_b"] = jnp.zeros((c_mid,), jnp.float32)
    p["un_q_w"] = _init(next(ks), (c_mid, d_ctx))
    p["un_k_w"] = _init(next(ks), (d_ctx, d_ctx))
    p["un_v_w"] = _init(next(ks), (d_ctx, d_ctx))
    p["un_o_w"] = _init(next(ks), (d_ctx, c_mid))
    p["un_out_w"] = _init(next(ks), (c_mid, c_lat))
    p["un_out_b"] = jnp.zeros((c_lat,), jnp.float32)
    return p


def preprocess_params(params, *, d_ctx=32, out_pad=128, k_mult=16):
    """Fuse / pad / pre-scale / bf16-cast weights for the fused kernels."""
    bf = lambda x: x.astype(jnp.bfloat16)
    scale = 1.0 / math.sqrt(d_ctx)
    prep = {}
    # ControlNet fused input conv (noise + cond stacked along K)
    cn_w = jnp.concatenate([params["cn_conv_noise_w"], params["cn_conv_cond_w"]], axis=0)
    prep["cn_conv_w"] = bf(_pad_rows(cn_w, k_mult))
    prep["cn_conv_b"] = (params["cn_conv_noise_b"] + params["cn_conv_cond_b"]).reshape(1, -1)
    # UNet input conv
    prep["un_conv_w"] = bf(_pad_rows(params["un_conv_in_w"], k_mult))
    prep["un_conv_b"] = params["un_conv_in_b"].reshape(1, -1)
    # ControlNet attention block (scale folded into Q, K/V fused along N)
    prep["cn_qw"] = bf(params["cn_q_w"] * scale)
    prep["cn_kvw"] = bf(jnp.concatenate([params["cn_k_w"], params["cn_v_w"]], axis=1))
    prep["cn_ow"] = bf(params["cn_o_w"])
    prep["cn_pw"] = bf(params["cn_hint_w"])
    prep["cn_pb"] = params["cn_hint_b"].reshape(1, -1)
    # UNet attention block; final out-proj padded to lane-dense 128 columns
    prep["un_qw"] = bf(params["un_q_w"] * scale)
    prep["un_kvw"] = bf(jnp.concatenate([params["un_k_w"], params["un_v_w"]], axis=1))
    prep["un_ow"] = bf(params["un_o_w"])
    c_mid, c_lat = params["un_out_w"].shape
    pw = jnp.zeros((c_mid, out_pad), jnp.float32).at[:, :c_lat].set(params["un_out_w"])
    pb = jnp.zeros((out_pad,), jnp.float32).at[:c_lat].set(params["un_out_b"])
    prep["un_pw"] = bf(pw)
    prep["un_pb"] = pb.reshape(1, -1)
    return prep


# ----------------------------------------------------------------------------
# Sub-module forwards
# ----------------------------------------------------------------------------
def char_encoder(params, text_token, dtype):
    B, Tc = text_token.shape
    emb = jnp.take(params["char_embed"], text_token, axis=0)        # glue gather
    d_char = emb.shape[-1]
    proj = pallas_linear(emb.reshape(B * Tc, d_char),
                         params["char_proj_w"], params["char_proj_b"])
    return proj.reshape(B, Tc, -1).astype(dtype)                    # (B,Tc,d_ctx)


def controlnet_forward(prep, noise_nhwc, cond_nhwc, temb, context_bf16, k_mult=16):
    # fused: conv(noise) + conv(cond) + temb + SiLU  (single matmul kernel)
    patches = jnp.concatenate([im2col_3x3(noise_nhwc), im2col_3x3(cond_nhwc)], axis=-1)
    patches = _pad_last(patches, k_mult).astype(jnp.bfloat16)       # (B, L, K')
    h = fused_conv_block(patches, prep["cn_conv_w"], prep["cn_conv_b"], temb,
                         extra=None, out_dtype=jnp.bfloat16)        # (B, L, c_mid)
    # fused: q/kv proj + softmax attention + out proj + residual + hint proj
    hint = fused_attention_block(h, context_bf16, prep["cn_qw"], prep["cn_kvw"],
                                 prep["cn_ow"], prep["cn_pw"], prep["cn_pb"],
                                 out_dtype=jnp.bfloat16)            # (B, L, c_mid)
    return hint


def unet_forward(prep, noise_nhwc, temb, enc_bf16, hint, k_mult=16):
    B, H, W, c_lat = noise_nhwc.shape
    # fused: conv_in + hint injection + temb + SiLU
    patches = _pad_last(im2col_3x3(noise_nhwc), k_mult).astype(jnp.bfloat16)
    h = fused_conv_block(patches, prep["un_conv_w"], prep["un_conv_b"], temb,
                         extra=hint, out_dtype=jnp.bfloat16)        # (B, L, c_mid)
    # fused attention block + residual + (lane-dense padded) output projection
    out_pad = fused_attention_block(h, enc_bf16, prep["un_qw"], prep["un_kvw"],
                                    prep["un_ow"], prep["un_pw"], prep["un_pb"],
                                    out_dtype=jnp.float32)          # (B, L, 128)
    return out_pad[:, :, :c_lat].reshape(B, H, W, c_lat)            # NHWC sample


# ----------------------------------------------------------------------------
# DualTextControledUNet.forward equivalent
# ----------------------------------------------------------------------------
def dual_text_controlled_unet_forward(params, noise_sample, timesteps,
                                      encoder_hidden_states,
                                      extra_condition, text_token, t_dim=32):
    """Inputs follow the PyTorch convention: noise_sample / extra_condition NCHW."""
    prep = preprocess_params(params)
    noise_nhwc = jnp.transpose(noise_sample, (0, 2, 3, 1)).astype(jnp.float32)
    cond_nhwc = jnp.transpose(extra_condition, (0, 2, 3, 1)).astype(jnp.float32)

    # text_embedding = self.char_encoder(text_token, encoder_hidden_states.dtype)
    text_embedding = char_encoder(params, text_token, encoder_hidden_states.dtype)
    cn_context = jnp.concatenate(
        [encoder_hidden_states, text_embedding], axis=1).astype(jnp.bfloat16)
    un_context = encoder_hidden_states.astype(jnp.bfloat16)

    cn_temb = timestep_mlp(timesteps, params["cn_t1_w"], params["cn_t1_b"],
                           params["cn_t2_w"], params["cn_t2_b"], t_dim)
    un_temb = timestep_mlp(timesteps, params["un_t1_w"], params["un_t1_b"],
                           params["un_t2_w"], params["un_t2_b"], t_dim)

    # hint = self.controlnet(noise, extra_cond, t, enc_hidden, char_embedding=text_embedding)
    hint = controlnet_forward(prep, noise_nhwc, cond_nhwc, cn_temb, cn_context)
    # out = self.unet(noise, t, enc_hidden, extra_condition=hint).sample
    sample_nhwc = unet_forward(prep, noise_nhwc, un_temb, un_context, hint)
    return jnp.transpose(sample_nhwc, (0, 3, 1, 2))                 # back to NCHW


# ----------------------------------------------------------------------------
if __name__ == "__main__":
    key = jax.random.PRNGKey(0)
    k_param, k_noise, k_enc, k_cond, k_tok, k_t = jax.random.split(key, 6)

    B, C_LAT, Hh, Ww = 2, 4, 16, 16
    C_COND, SEQ, D_CTX = 3, 8, 32
    T_CHAR, VOCAB = 8, 64

    params = make_params(k_param, c_lat=C_LAT, c_cond=C_COND, c_mid=64,
                         d_ctx=D_CTX, d_char=16, vocab=VOCAB, t_dim=32)

    noise_sample = jax.random.normal(k_noise, (B, C_LAT, Hh, Ww), jnp.float32)
    timesteps = jax.random.randint(k_t, (B,), 0, 1000).astype(jnp.float32)
    encoder_hidden_states = jax.random.normal(k_enc, (B, SEQ, D_CTX), jnp.float32)
    extra_condition = jax.random.normal(k_cond, (B, C_COND, Hh, Ww), jnp.float32)
    text_token = jax.random.randint(k_tok, (B, T_CHAR), 0, VOCAB)

    fwd = jax.jit(dual_text_controlled_unet_forward)
    out = fwd(params, noise_sample, timesteps, encoder_hidden_states,
              extra_condition, text_token)
    jax.block_until_ready(out)
    assert out.shape == (B, C_LAT, Hh, Ww) and out.dtype == jnp.float32

    # TODO(synk): the real UNet2DConditionModel / ControlNetModel stack many
    # down/mid/up blocks; a single representative fused block per sub-module is
    # used here since the checkpoint architectures are not available in-script.
    print("KERNEL_OK")
</pallas_src>

<mosaic_0001>
module attributes {stable_mosaic.version = 11 : i64} {
  func.func @_time_mlp_kernel(%arg0: i32, %arg1: memref<2x32xf32, #tpu.memory_space<vmem>>, %arg2: memref<32x64xf32, #tpu.memory_space<vmem>>, %arg3: memref<1x64xf32, #tpu.memory_space<vmem>>, %arg4: memref<64x64xf32, #tpu.memory_space<vmem>>, %arg5: memref<1x64xf32, #tpu.memory_space<vmem>>, %arg6: memref<2x64xf32, #tpu.memory_space<vmem>>) attributes {dimension_semantics = [#tpu.dimension_semantics<arbitrary>], iteration_bounds = array<i64: 1>, scalar_prefetch = 0 : i64, scratch_operands = 0 : i64, tpu.core_type = #tpu.core_type<tc>, window_params = [{pipeline_mode = #tpu.pipeline_mode<synchronous>, transform_indices = @transform_0, window_bounds = array<i64: 2, 32>}, {pipeline_mode = #tpu.pipeline_mode<synchronous>, transform_indices = @transform_1, window_bounds = array<i64: 32, 64>}, {pipeline_mode = #tpu.pipeline_mode<synchronous>, transform_indices = @transform_2, window_bounds = array<i64: 1, 64>}, {pipeline_mode = #tpu.pipeline_mode<synchronous>, transform_indices = @transform_3, window_bounds = array<i64: 64, 64>}, {pipeline_mode = #tpu.pipeline_mode<synchronous>, transform_indices = @transform_4, window_bounds = array<i64: 1, 64>}, {pipeline_mode = #tpu.pipeline_mode<synchronous>, transform_indices = @transform_5, window_bounds = array<i64: 2, 64>}]} {
    %c0 = arith.constant 0 : index
    %c0_0 = arith.constant 0 : index
    %0 = vector.load %arg1[%c0, %c0_0] : memref<2x32xf32, #tpu.memory_space<vmem>>, vector<2x32xf32>
    %c0_1 = arith.constant 0 : index
    %c0_2 = arith.constant 0 : index
    %1 = vector.load %arg2[%c0_1, %c0_2] : memref<32x64xf32, #tpu.memory_space<vmem>>, vector<32x64xf32>
    %cst = arith.constant dense<0.000000e+00> : vector<2x64xf32>
    %2 = tpu.matmul %0, %1, %cst {dimension_numbers = #tpu.dot_dimension_numbers<[1], [0], [0], [1], [0, 0, 1, 1], [], []>} : vector<2x32xf32>, vector<32x64xf32>, vector<2x64xf32> -> vector<2x64xf32>
    %c0_3 = arith.constant 0 : index
    %c0_4 = arith.constant 0 : index
    %3 = vector.load %arg3[%c0_3, %c0_4] : memref<1x64xf32, #tpu.memory_space<vmem>>, vector<1x64xf32>
    %4 = vector.broadcast %3 : vector<1x64xf32> to vector<2x64xf32>
    %5 = arith.addf %2, %4 : vector<2x64xf32>
    %6 = arith.negf %5 : vector<2x64xf32>
    %7 = math.exp %6 : vector<2x64xf32>
    %cst_5 = arith.constant 1.000000e+00 : f32
    %8 = vector.broadcast %cst_5 : f32 to vector<2x64xf32>
    %9 = arith.addf %8, %7 : vector<2x64xf32>
    %10 = arith.divf %8, %9 : vector<2x64xf32>
    %11 = arith.mulf %5, %10 : vector<2x64xf32>
    %c0_6 = arith.constant 0 : index
    %c0_7 = arith.constant 0 : index
    %12 = vector.load %arg4[%c0_6, %c0_7] : memref<64x64xf32, #tpu.memory_space<vmem>>, vector<64x64xf32>
    %cst_8 = arith.constant dense<0.000000e+00> : vector<2x64xf32>
    %13 = tpu.matmul %11, %12, %cst_8 {dimension_numbers = #tpu.dot_dimension_numbers<[1], [0], [0], [1], [0, 0, 1, 1], [], []>} : vector<2x64xf32>, vector<64x64xf32>, vector<2x64xf32> -> vector<2x64xf32>
    %c0_9 = arith.constant 0 : index
    %c0_10 = arith.constant 0 : index
    %14 = vector.load %arg5[%c0_9, %c0_10] : memref<1x64xf32, #tpu.memory_space<vmem>>, vector<1x64xf32>
    %15 = vector.broadcast %14 : vector<1x64xf32> to vector<2x64xf32>
    %16 = arith.addf %13, %15 : vector<2x64xf32>
    %c0_11 = arith.constant 0 : index
    %c0_12 = arith.constant 0 : index
    %17 = vector.load %arg6[%c0_11, %c0_12] : memref<2x64xf32, #tpu.memory_space<vmem>>, vector<2x64xf32>
    tpu.vector_store %arg6[%c0_11, %c0_12], %16 {strides = array<i32>} : memref<2x64xf32, #tpu.memory_space<vmem>>, vector<2x64xf32>,
    return
  }
  func.func @transform_0(%arg0: i32) -> (i32, i32) {
    %c0_i32 = arith.constant 0 : i32
    %c0_i32_0 = arith.constant 0 : i32
    %c0_i32_1 = arith.constant 0 : i32
    return %c0_i32, %c0_i32_0 : i32, i32
  }
  func.func @transform_1(%arg0: i32) -> (i32, i32) {
    %c0_i32 = arith.constant 0 : i32
    %c0_i32_0 = arith.constant 0 : i32
    %c0_i32_1 = arith.constant 0 : i32
    return %c0_i32, %c0_i32_0 : i32, i32
  }
  func.func @transform_2(%arg0: i32) -> (i32, i32) {
    %c0_i32 = arith.constant 0 : i32
    %c0_i32_0 = arith.constant 0 : i32
    %c0_i32_1 = arith.constant 0 : i32
    return %c0_i32, %c0_i32_0 : i32, i32
  }
  func.func @transform_3(%arg0: i32) -> (i32, i32) {
    %c0_i32 = arith.constant 0 : i32
    %c0_i32_0 = arith.constant 0 : i32
    %c0_i32_1 = arith.constant 0 : i32
    return %c0_i32, %c0_i32_0 : i32, i32
  }
  func.func @transform_4(%arg0: i32) -> (i32, i32) {
    %c0_i32 = arith.constant 0 : i32
    %c0_i32_0 = arith.constant 0 : i32
    %c0_i32_1 = arith.constant 0 : i32
    return %c0_i32, %c0_i32_0 : i32, i32
  }
  func.func @transform_5(%arg0: i32) -> (i32, i32) {
    %c0_i32 = arith.constant 0 : i32
    %c0_i32_0 = arith.constant 0 : i32
    %c0_i32_1 = arith.constant 0 : i32
    return %c0_i32, %c0_i32_0 : i32, i32
  }
}

module attributes {stable_mosaic.version = 11 : i64} {
  func.func @_conv_block_kernel(%arg0: i32, %arg1: memref<1x256x64xbf16, #tpu.memory_space<vmem>>, %arg2: memref<64x64xbf16, #tpu.memory_space<vmem>>, %arg3: memref<1x64xf32, #tpu.memory_space<vmem>>, %arg4: memref<1x1x64xf32, #tpu.memory_space<vmem>>, %arg5: memref<1x256x64xbf16, #tpu.memory_space<vmem>>) attributes {dimension_semantics = [#tpu.dimension_semantics<parallel>], iteration_bounds = array<i64: 2>, scalar_prefetch = 0 : i64, scratch_operands = 0 : i64, tpu.core_type = #tpu.core_type<tc>, window_params = [{transform_indices = @transform_0, window_bounds = array<i64: 1, 256, 64>}, {pipeline_mode = #tpu.pipeline_mode<synchronous>, transform_indices = @transform_1, window_bounds = array<i64: 64, 64>}, {pipeline_mode = #tpu.pipeline_mode<synchronous>, transform_indices = @transform_2, window_bounds = array<i64: 1, 64>}, {transform_indices = @transform_3, window_bounds = array<i64: 1, 1, 64>}, {transform_indices = @transform_4, window_bounds = array<i64: 1, 256, 64>}]} {
    %c0 = arith.constant 0 : index
    %c0_0 = arith.constant 0 : index
    %c0_1 = arith.constant 0 : index
    %0 = vector.load %arg1[%c0, %c0_0, %c0_1] : memref<1x256x64xbf16, #tpu.memory_space<vmem>>, vector<1x256x64xbf16>
    %1 = vector.shape_cast %0 : vector<1x256x64xbf16> to vector<256x64xbf16>
    %c0_2 = arith.constant 0 : index
    %c0_3 = arith.constant 0 : index
    %2 = vector.load %arg2[%c0_2, %c0_3] : memref<64x64xbf16, #tpu.memory_space<vmem>>, vector<64x64xbf16>
    %cst = arith.constant dense<0.000000e+00> : vector<256x64xf32>
    %3 = tpu.matmul %1, %2, %cst {dimension_numbers = #tpu.dot_dimension_numbers<[1], [0], [0], [1], [0, 0, 1, 1], [], []>} : vector<256x64xbf16>, vector<64x64xbf16>, vector<256x64xf32> -> vector<256x64xf32>
    %c0_4 = arith.constant 0 : index
    %c0_5 = arith.constant 0 : index
    %4 = vector.load %arg3[%c0_4, %c0_5] : memref<1x64xf32, #tpu.memory_space<vmem>>, vector<1x64xf32>
    %5 = vector.broadcast %4 : vector<1x64xf32> to vector<256x64xf32>
    %6 = arith.addf %3, %5 : vector<256x64xf32>
    %c0_6 = arith.constant 0 : index
    %c0_7 = arith.constant 0 : index
    %c0_8 = arith.constant 0 : index
    %7 = vector.load %arg4[%c0_6, %c0_7, %c0_8] : memref<1x1x64xf32, #tpu.memory_space<vmem>>, vector<1x1x64xf32>
    %8 = vector.shape_cast %7 : vector<1x1x64xf32> to vector<1x64xf32>
    %9 = vector.broadcast %8 : vector<1x64xf32> to vector<256x64xf32>
    %10 = arith.addf %6, %9 : vector<256x64xf32>
    %11 = arith.negf %10 : vector<256x64xf32>
    %12 = math.exp %11 : vector<256x64xf32>
    %cst_9 = arith.constant 1.000000e+00 : f32
    %13 = vector.broadcast %cst_9 : f32 to vector<256x64xf32>
    %14 = arith.addf %13, %12 : vector<256x64xf32>
    %15 = arith.divf %13, %14 : vector<256x64xf32>
    %16 = arith.mulf %10, %15 : vector<256x64xf32>
    %17 = vector.shape_cast %16 : vector<256x64xf32> to vector<1x256x64xf32>
    %18 = arith.truncf %17 : vector<1x256x64xf32> to vector<1x256x64xbf16>
    %c0_10 = arith.constant 0 : index
    %c0_11 = arith.constant 0 : index
    %c0_12 = arith.constant 0 : index
    %19 = vector.load %arg5[%c0_10, %c0_11, %c0_12] : memref<1x256x64xbf16, #tpu.memory_space<vmem>>, vector<1x256x64xbf16>
    tpu.vector_store %arg5[%c0_10, %c0_11, %c0_12], %18 {strides = array<i32>} : memref<1x256x64xbf16, #tpu.memory_space<vmem>>, vector<1x256x64xbf16>,
    return
  }
  func.func @transform_0(%arg0: i32) -> (i32, i32, i32) {
    %c0_i32 = arith.constant 0 : i32
    %c0_i32_0 = arith.constant 0 : i32
    %c0_i32_1 = arith.constant 0 : i32
    return %arg0, %c0_i32, %c0_i32_0 : i32, i32, i32
  }
  func.func @transform_1(%arg0: i32) -> (i32, i32) {
    %c0_i32 = arith.constant 0 : i32
    %c0_i32_0 = arith.constant 0 : i32
    %c0_i32_1 = arith.constant 0 : i32
    return %c0_i32, %c0_i32_0 : i32, i32
  }
  func.func @transform_2(%arg0: i32) -> (i32, i32) {
    %c0_i32 = arith.constant 0 : i32
    %c0_i32_0 = arith.constant 0 : i32
    %c0_i32_1 = arith.constant 0 : i32
    return %c0_i32, %c0_i32_0 : i32, i32
  }
  func.func @transform_3(%arg0: i32) -> (i32, i32, i32) {
    %c0_i32 = arith.constant 0 : i32
    %c0_i32_0 = arith.constant 0 : i32
    %c0_i32_1 = arith.constant 0 : i32
    return %arg0, %c0_i32, %c0_i32_0 : i32, i32, i32
  }
  func.func @transform_4(%arg0: i32) -> (i32, i32, i32) {
    %c0_i32 = arith.constant 0 : i32
    %c0_i32_0 = arith.constant 0 : i32
    %c0_i32_1 = arith.constant 0 : i32
    return %arg0, %c0_i32, %c0_i32_0 : i32, i32, i32
  }
}

module attributes {stable_mosaic.version = 11 : i64} {
  func.func @_linear_bias_kernel(%arg0: i32, %arg1: memref<16x16xf32, #tpu.memory_space<vmem>>, %arg2: memref<16x32xf32, #tpu.memory_space<vmem>>, %arg3: memref<1x32xf32, #tpu.memory_space<vmem>>, %arg4: memref<16x32xf32, #tpu.memory_space<vmem>>) attributes {dimension_semantics = [#tpu.dimension_semantics<arbitrary>], iteration_bounds = array<i64: 1>, scalar_prefetch = 0 : i64, scratch_operands = 0 : i64, tpu.core_type = #tpu.core_type<tc>, window_params = [{pipeline_mode = #tpu.pipeline_mode<synchronous>, transform_indices = @transform_0, window_bounds = array<i64: 16, 16>}, {pipeline_mode = #tpu.pipeline_mode<synchronous>, transform_indices = @transform_1, window_bounds = array<i64: 16, 32>}, {pipeline_mode = #tpu.pipeline_mode<synchronous>, transform_indices = @transform_2, window_bounds = array<i64: 1, 32>}, {pipeline_mode = #tpu.pipeline_mode<synchronous>, transform_indices = @transform_3, window_bounds = array<i64: 16, 32>}]} {
    %c0 = arith.constant 0 : index
    %c0_0 = arith.constant 0 : index
    %0 = vector.load %arg1[%c0, %c0_0] : memref<16x16xf32, #tpu.memory_space<vmem>>, vector<16x16xf32>
    %c0_1 = arith.constant 0 : index
    %c0_2 = arith.constant 0 : index
    %1 = vector.load %arg2[%c0_1, %c0_2] : memref<16x32xf32, #tpu.memory_space<vmem>>, vector<16x32xf32>
    %cst = arith.constant dense<0.000000e+00> : vector<16x32xf32>
    %2 = tpu.matmul %0, %1, %cst {dimension_numbers = #tpu.dot_dimension_numbers<[1], [0], [0], [1], [0, 0, 1, 1], [], []>} : vector<16x16xf32>, vector<16x32xf32>, vector<16x32xf32> -> vector<16x32xf32>
    %c0_3 = arith.constant 0 : index
    %c0_4 = arith.constant 0 : index
    %3 = vector.load %arg3[%c0_3, %c0_4] : memref<1x32xf32, #tpu.memory_space<vmem>>, vector<1x32xf32>
    %4 = vector.broadcast %3 : vector<1x32xf32> to vector<16x32xf32>
    %5 = arith.addf %2, %4 : vector<16x32xf32>
    %c0_5 = arith.constant 0 : index
    %c0_6 = arith.constant 0 : index
    %6 = vector.load %arg4[%c0_5, %c0_6] : memref<16x32xf32, #tpu.memory_space<vmem>>, vector<16x32xf32>
    tpu.vector_store %arg4[%c0_5, %c0_6], %5 {strides = array<i32>} : memref<16x32xf32, #tpu.memory_space<vmem>>, vector<16x32xf32>,
    return
  }
  func.func @transform_0(%arg0: i32) -> (i32, i32) {
    %c0_i32 = arith.constant 0 : i32
    %c0_i32_0 = arith.constant 0 : i32
    %c0_i32_1 = arith.constant 0 : i32
    return %c0_i32, %c0_i32_0 : i32, i32
  }
  func.func @transform_1(%arg0: i32) -> (i32, i32) {
    %c0_i32 = arith.constant 0 : i32
    %c0_i32_0 = arith.constant 0 : i32
    %c0_i32_1 = arith.constant 0 : i32
    return %c0_i32, %c0_i32_0 : i32, i32
  }
  func.func @transform_2(%arg0: i32) -> (i32, i32) {
    %c0_i32 = arith.constant 0 : i32
    %c0_i32_0 = arith.constant 0 : i32
    %c0_i32_1 = arith.constant 0 : i32
    return %c0_i32, %c0_i32_0 : i32, i32
  }
  func.func @transform_3(%arg0: i32) -> (i32, i32) {
    %c0_i32 = arith.constant 0 : i32
    %c0_i32_0 = arith.constant 0 : i32
    %c0_i32_1 = arith.constant 0 : i32
    return %c0_i32, %c0_i32_0 : i32, i32
  }
}

module attributes {stable_mosaic.version = 11 : i64} {
  func.func @_attn_block_kernel(%arg0: i32, %arg1: memref<1x256x64xbf16, #tpu.memory_space<vmem>>, %arg2: memref<1x16x32xbf16, #tpu.memory_space<vmem>>, %arg3: memref<64x32xbf16, #tpu.memory_space<vmem>>, %arg4: memref<32x64xbf16, #tpu.memory_space<vmem>>, %arg5: memref<32x64xbf16, #tpu.memory_space<vmem>>, %arg6: memref<64x64xbf16, #tpu.memory_space<vmem>>, %arg7: memref<1x64xf32, #tpu.memory_space<vmem>>, %arg8: memref<1x256x64xbf16, #tpu.memory_space<vmem>>) attributes {dimension_semantics = [#tpu.dimension_semantics<parallel>], iteration_bounds = array<i64: 2>, scalar_prefetch = 0 : i64, scratch_operands = 0 : i64, tpu.core_type = #tpu.core_type<tc>, window_params = [{transform_indices = @transform_0, window_bounds = array<i64: 1, 256, 64>}, {transform_indices = @transform_1, window_bounds = array<i64: 1, 16, 32>}, {pipeline_mode = #tpu.pipeline_mode<synchronous>, transform_indices = @transform_2, window_bounds = array<i64: 64, 32>}, {pipeline_mode = #tpu.pipeline_mode<synchronous>, transform_indices = @transform_3, window_bounds = array<i64: 32, 64>}, {pipeline_mode = #tpu.pipeline_mode<synchronous>, transform_indices = @transform_4, window_bounds = array<i64: 32, 64>}, {pipeline_mode = #tpu.pipeline_mode<synchronous>, transform_indices = @transform_5, window_bounds = array<i64: 64, 64>}, {pipeline_mode = #tpu.pipeline_mode<synchronous>, transform_indices = @transform_6, window_bounds = array<i64: 1, 64>}, {transform_indices = @transform_7, window_bounds = array<i64: 1, 256, 64>}]} {
    %c0 = arith.constant 0 : index
    %c0_0 = arith.constant 0 : index
    %c0_1 = arith.constant 0 : index
    %0 = vector.load %arg1[%c0, %c0_0, %c0_1] : memref<1x256x64xbf16, #tpu.memory_space<vmem>>, vector<1x256x64xbf16>
    %1 = vector.shape_cast %0 : vector<1x256x64xbf16> to vector<256x64xbf16>
    %c0_2 = arith.constant 0 : index
    %c0_3 = arith.constant 0 : index
    %c0_4 = arith.constant 0 : index
    %2 = vector.load %arg2[%c0_2, %c0_3, %c0_4] : memref<1x16x32xbf16, #tpu.memory_space<vmem>>, vector<1x16x32xbf16>
    %3 = vector.shape_cast %2 : vector<1x16x32xbf16> to vector<16x32xbf16>
    %c0_5 = arith.constant 0 : index
    %c0_6 = arith.constant 0 : index
    %4 = vector.load %arg3[%c0_5, %c0_6] : memref<64x32xbf16, #tpu.memory_space<vmem>>, vector<64x32xbf16>
    %cst = arith.constant dense<0.000000e+00> : vector<256x32xf32>
    %5 = tpu.matmul %1, %4, %cst {dimension_numbers = #tpu.dot_dimension_numbers<[1], [0], [0], [1], [0, 0, 1, 1], [], []>} : vector<256x64xbf16>, vector<64x32xbf16>, vector<256x32xf32> -> vector<256x32xf32>
    %c0_7 = arith.constant 0 : index
    %c0_8 = arith.constant 0 : index
    %6 = vector.load %arg4[%c0_7, %c0_8] : memref<32x64xbf16, #tpu.memory_space<vmem>>, vector<32x64xbf16>
    %cst_9 = arith.constant dense<0.000000e+00> : vector<16x64xf32>
    %7 = tpu.matmul %3, %6, %cst_9 {dimension_numbers = #tpu.dot_dimension_numbers<[1], [0], [0], [1], [0, 0, 1, 1], [], []>} : vector<16x32xbf16>, vector<32x64xbf16>, vector<16x64xf32> -> vector<16x64xf32>
    %8 = vector.extract_strided_slice %7 {offsets = [0, 0], sizes = [16, 32], strides = [1, 1]} : vector<16x64xf32> to vector<16x32xf32>
    %9 = vector.extract_strided_slice %7 {offsets = [0, 32], sizes = [16, 32], strides = [1, 1]} : vector<16x64xf32> to vector<16x32xf32>
    %cst_10 = arith.constant dense<0.000000e+00> : vector<256x16xf32>
    %10 = tpu.matmul %5, %8, %cst_10 {dimension_numbers = #tpu.dot_dimension_numbers<[1], [1], [0], [0], [0, 0, 1, 0], [], []>} : vector<256x32xf32>, vector<16x32xf32>, vector<256x16xf32> -> vector<256x16xf32>
    %cst_11 = arith.constant dense<0xFF800000> : vector<256xf32>
    %11 = vector.multi_reduction <maximumf>, %10, %cst_11 [1] : vector<256x16xf32> to vector<256xf32>
    %12 = vector.shape_cast %11 : vector<256xf32> to vector<256x1xf32>
    %13 = vector.broadcast %12 : vector<256x1xf32> to vector<256x16xf32>
    %14 = arith.subf %10, %13 : vector<256x16xf32>
    %15 = math.exp %14 : vector<256x16xf32>
    %cst_12 = arith.constant dense<0.000000e+00> : vector<256xf32>
    %16 = vector.multi_reduction <add>, %15, %cst_12 [1] : vector<256x16xf32> to vector<256xf32>
    %17 = vector.shape_cast %16 : vector<256xf32> to vector<256x1xf32>
    %18 = tpu.reciprocal %17 {approx = true} : vector<256x1xf32> -> vector<256x1xf32>
    %19 = vector.broadcast %18 : vector<256x1xf32> to vector<256x16xf32>
    %20 = arith.mulf %15, %19 : vector<256x16xf32>
    %21 = arith.truncf %20 : vector<256x16xf32> to vector<256x16xbf16>
    %22 = arith.truncf %9 : vector<16x32xf32> to vector<16x32xbf16>
    %cst_13 = arith.constant dense<0.000000e+00> : vector<256x32xf32>
    %23 = tpu.matmul %21, %22, %cst_13 {dimension_numbers = #tpu.dot_dimension_numbers<[1], [0], [0], [1], [0, 0, 1, 1], [], []>} : vector<256x16xbf16>, vector<16x32xbf16>, vector<256x32xf32> -> vector<256x32xf32>
    %24 = arith.truncf %23 : vector<256x32xf32> to vector<256x32xbf16>
    %c0_14 = arith.constant 0 : index
    %c0_15 = arith.constant 0 : index
    %25 = vector.load %arg5[%c0_14, %c0_15] : memref<32x64xbf16, #tpu.memory_space<vmem>>, vector<32x64xbf16>
    %cst_16 = arith.constant dense<0.000000e+00> : vector<256x64xf32>
    %26 = tpu.matmul %24, %25, %cst_16 {dimension_numbers = #tpu.dot_dimension_numbers<[1], [0], [0], [1], [0, 0, 1, 1], [], []>} : vector<256x32xbf16>, vector<32x64xbf16>, vector<256x64xf32> -> vector<256x64xf32>
    %27 = arith.extf %1 : vector<256x64xbf16> to vector<256x64xf32>
    %28 = arith.addf %27, %26 : vector<256x64xf32>
    %29 = arith.truncf %28 : vector<256x64xf32> to vector<256x64xbf16>
    %c0_17 = arith.constant 0 : index
    %c0_18 = arith.constant 0 : index
    %30 = vector.load %arg6[%c0_17, %c0_18] : memref<64x64xbf16, #tpu.memory_space<vmem>>, vector<64x64xbf16>
    %cst_19 = arith.constant dense<0.000000e+00> : vector<256x64xf32>
    %31 = tpu.matmul %29, %30, %cst_19 {dimension_numbers = #tpu.dot_dimension_numbers<[1], [0], [0], [1], [0, 0, 1, 1], [], []>} : vector<256x64xbf16>, vector<64x64xbf16>, vector<256x64xf32> -> vector<256x64xf32>
    %c0_20 = arith.constant 0 : index
    %c0_21 = arith.constant 0 : index
    %32 = vector.load %arg7[%c0_20, %c0_21] : memref<1x64xf32, #tpu.memory_space<vmem>>, vector<1x64xf32>
    %33 = vector.broadcast %32 : vector<1x64xf32> to vector<256x64xf32>
    %34 = arith.addf %31, %33 : vector<256x64xf32>
    %35 = vector.shape_cast %34 : vector<256x64xf32> to vector<1x256x64xf32>
    %36 = arith.truncf %35 : vector<1x256x64xf32> to vector<1x256x64xbf16>
    %c0_22 = arith.constant 0 : index
    %c0_23 = arith.constant 0 : index
    %c0_24 = arith.constant 0 : index
    %37 = vector.load %arg8[%c0_22, %c0_23, %c0_24] : memref<1x256x64xbf16, #tpu.memory_space<vmem>>, vector<1x256x64xbf16>
    tpu.vector_store %arg8[%c0_22, %c0_23, %c0_24], %36 {strides = array<i32>} : memref<1x256x64xbf16, #tpu.memory_space<vmem>>, vector<1x256x64xbf16>,
    return
  }
  func.func @transform_0(%arg0: i32) -> (i32, i32, i32) {
    %c0_i32 = arith.constant 0 : i32
    %c0_i32_0 = arith.constant 0 : i32
    %c0_i32_1 = arith.constant 0 : i32
    return %arg0, %c0_i32, %c0_i32_0 : i32, i32, i32
  }
  func.func @transform_1(%arg0: i32) -> (i32, i32, i32) {
    %c0_i32 = arith.constant 0 : i32
    %c0_i32_0 = arith.constant 0 : i32
    %c0_i32_1 = arith.constant 0 : i32
    return %arg0, %c0_i32, %c0_i32_0 : i32, i32, i32
  }
  func.func @transform_2(%arg0: i32) -> (i32, i32) {
    %c0_i32 = arith.constant 0 : i32
    %c0_i32_0 = arith.constant 0 : i32
    %c0_i32_1 = arith.constant 0 : i32
    return %c0_i32, %c0_i32_0 : i32, i32
  }
  func.func @transform_3(%arg0: i32) -> (i32, i32) {
    %c0_i32 = arith.constant 0 : i32
    %c0_i32_0 = arith.constant 0 : i32
    %c0_i32_1 = arith.constant 0 : i32
    return %c0_i32, %c0_i32_0 : i32, i32
  }
  func.func @transform_4(%arg0: i32) -> (i32, i32) {
    %c0_i32 = arith.constant 0 : i32
    %c0_i32_0 = arith.constant 0 : i32
    %c0_i32_1 = arith.constant 0 : i32
    return %c0_i32, %c0_i32_0 : i32, i32
  }
  func.func @transform_5(%arg0: i32) -> (i32, i32) {
    %c0_i32 = arith.constant 0 : i32
    %c0_i32_0 = arith.constant 0 : i32
    %c0_i32_1 = arith.constant 0 : i32
    return %c0_i32, %c0_i32_0 : i32, i32
  }
  func.func @transform_6(%arg0: i32) -> (i32, i32) {
    %c0_i32 = arith.constant 0 : i32
    %c0_i32_0 = arith.constant 0 : i32
    %c0_i32_1 = arith.constant 0 : i32
    return %c0_i32, %c0_i32_0 : i32, i32
  }
  func.func @transform_7(%arg0: i32) -> (i32, i32, i32) {
    %c0_i32 = arith.constant 0 : i32
    %c0_i32_0 = arith.constant 0 : i32
    %c0_i32_1 = arith.constant 0 : i32
    return %arg0, %c0_i32, %c0_i32_0 : i32, i32, i32
  }
}

module attributes {stable_mosaic.version = 11 : i64} {
  func.func @_conv_block_extra_kernel(%arg0: i32, %arg1: memref<1x256x48xbf16, #tpu.memory_space<vmem>>, %arg2: memref<48x64xbf16, #tpu.memory_space<vmem>>, %arg3: memref<1x64xf32, #tpu.memory_space<vmem>>, %arg4: memref<1x1x64xf32, #tpu.memory_space<vmem>>, %arg5: memref<1x256x64xbf16, #tpu.memory_space<vmem>>, %arg6: memref<1x256x64xbf16, #tpu.memory_space<vmem>>) attributes {dimension_semantics = [#tpu.dimension_semantics<parallel>], iteration_bounds = array<i64: 2>, scalar_prefetch = 0 : i64, scratch_operands = 0 : i64, tpu.core_type = #tpu.core_type<tc>, window_params = [{transform_indices = @transform_0, window_bounds = array<i64: 1, 256, 48>}, {pipeline_mode = #tpu.pipeline_mode<synchronous>, transform_indices = @transform_1, window_bounds = array<i64: 48, 64>}, {pipeline_mode = #tpu.pipeline_mode<synchronous>, transform_indices = @transform_2, window_bounds = array<i64: 1, 64>}, {transform_indices = @transform_3, window_bounds = array<i64: 1, 1, 64>}, {transform_indices = @transform_4, window_bounds = array<i64: 1, 256, 64>}, {transform_indices = @transform_5, window_bounds = array<i64: 1, 256, 64>}]} {
    %c0 = arith.constant 0 : index
    %c0_0 = arith.constant 0 : index
    %c0_1 = arith.constant 0 : index
    %0 = vector.load %arg1[%c0, %c0_0, %c0_1] : memref<1x256x48xbf16, #tpu.memory_space<vmem>>, vector<1x256x48xbf16>
    %1 = vector.shape_cast %0 : vector<1x256x48xbf16> to vector<256x48xbf16>
    %c0_2 = arith.constant 0 : index
    %c0_3 = arith.constant 0 : index
    %2 = vector.load %arg2[%c0_2, %c0_3] : memref<48x64xbf16, #tpu.memory_space<vmem>>, vector<48x64xbf16>
    %cst = arith.constant dense<0.000000e+00> : vector<256x64xf32>
    %3 = tpu.matmul %1, %2, %cst {dimension_numbers = #tpu.dot_dimension_numbers<[1], [0], [0], [1], [0, 0, 1, 1], [], []>} : vector<256x48xbf16>, vector<48x64xbf16>, vector<256x64xf32> -> vector<256x64xf32>
    %c0_4 = arith.constant 0 : index
    %c0_5 = arith.constant 0 : index
    %4 = vector.load %arg3[%c0_4, %c0_5] : memref<1x64xf32, #tpu.memory_space<vmem>>, vector<1x64xf32>
    %5 = vector.broadcast %4 : vector<1x64xf32> to vector<256x64xf32>
    %6 = arith.addf %3, %5 : vector<256x64xf32>
    %c0_6 = arith.constant 0 : index
    %c0_7 = arith.constant 0 : index
    %c0_8 = arith.constant 0 : index
    %7 = vector.load %arg4[%c0_6, %c0_7, %c0_8] : memref<1x1x64xf32, #tpu.memory_space<vmem>>, vector<1x1x64xf32>
    %8 = vector.shape_cast %7 : vector<1x1x64xf32> to vector<1x64xf32>
    %9 = vector.broadcast %8 : vector<1x64xf32> to vector<256x64xf32>
    %10 = arith.addf %6, %9 : vector<256x64xf32>
    %c0_9 = arith.constant 0 : index
    %c0_10 = arith.constant 0 : index
    %c0_11 = arith.constant 0 : index
    %11 = vector.load %arg5[%c0_9, %c0_10, %c0_11] : memref<1x256x64xbf16, #tpu.memory_space<vmem>>, vector<1x256x64xbf16>
    %12 = vector.shape_cast %11 : vector<1x256x64xbf16> to vector<256x64xbf16>
    %13 = arith.extf %12 : vector<256x64xbf16> to vector<256x64xf32>
    %14 = arith.addf %10, %13 : vector<256x64xf32>
    %15 = arith.negf %14 : vector<256x64xf32>
    %16 = math.exp %15 : vector<256x64xf32>
    %cst_12 = arith.constant 1.000000e+00 : f32
    %17 = vector.broadcast %cst_12 : f32 to vector<256x64xf32>
    %18 = arith.addf %17, %16 : vector<256x64xf32>
    %19 = arith.divf %17, %18 : vector<256x64xf32>
    %20 = arith.mulf %14, %19 : vector<256x64xf32>
    %21 = vector.shape_cast %20 : vector<256x64xf32> to vector<1x256x64xf32>
    %22 = arith.truncf %21 : vector<1x256x64xf32> to vector<1x256x64xbf16>
    %c0_13 = arith.constant 0 : index
    %c0_14 = arith.constant 0 : index
    %c0_15 = arith.constant 0 : index
    %23 = vector.load %arg6[%c0_13, %c0_14, %c0_15] : memref<1x256x64xbf16, #tpu.memory_space<vmem>>, vector<1x256x64xbf16>
    tpu.vector_store %arg6[%c0_13, %c0_14, %c0_15], %22 {strides = array<i32>} : memref<1x256x64xbf16, #tpu.memory_space<vmem>>, vector<1x256x64xbf16>,
    return
  }
  func.func @transform_0(%arg0: i32) -> (i32, i32, i32) {
    %c0_i32 = arith.constant 0 : i32
    %c0_i32_0 = arith.constant 0 : i32
    %c0_i32_1 = arith.constant 0 : i32
    return %arg0, %c0_i32, %c0_i32_0 : i32, i32, i32
  }
  func.func @transform_1(%arg0: i32) -> (i32, i32) {
    %c0_i32 = arith.constant 0 : i32
    %c0_i32_0 = arith.constant 0 : i32
    %c0_i32_1 = arith.constant 0 : i32
    return %c0_i32, %c0_i32_0 : i32, i32
  }
  func.func @transform_2(%arg0: i32) -> (i32, i32) {
    %c0_i32 = arith.constant 0 : i32
    %c0_i32_0 = arith.constant 0 : i32
    %c0_i32_1 = arith.constant 0 : i32
    return %c0_i32, %c0_i32_0 : i32, i32
  }
  func.func @transform_3(%arg0: i32) -> (i32, i32, i32) {
    %c0_i32 = arith.constant 0 : i32
    %c0_i32_0 = arith.constant 0 : i32
    %c0_i32_1 = arith.constant 0 : i32
    return %arg0, %c0_i32, %c0_i32_0 : i32, i32, i32
  }
  func.func @transform_4(%arg0: i32) -> (i32, i32, i32) {
    %c0_i32 = arith.constant 0 : i32
    %c0_i32_0 = arith.constant 0 : i32
    %c0_i32_1 = arith.constant 0 : i32
    return %arg0, %c0_i32, %c0_i32_0 : i32, i32, i32
  }
  func.func @transform_5(%arg0: i32) -> (i32, i32, i32) {
    %c0_i32 = arith.constant 0 : i32
    %c0_i32_0 = arith.constant 0 : i32
    %c0_i32_1 = arith.constant 0 : i32
    return %arg0, %c0_i32, %c0_i32_0 : i32, i32, i32
  }
}

module attributes {stable_mosaic.version = 11 : i64} {
  func.func @_attn_block_kernel(%arg0: i32, %arg1: memref<1x256x64xbf16, #tpu.memory_space<vmem>>, %arg2: memref<1x8x32xbf16, #tpu.memory_space<vmem>>, %arg3: memref<64x32xbf16, #tpu.memory_space<vmem>>, %arg4: memref<32x64xbf16, #tpu.memory_space<vmem>>, %arg5: memref<32x64xbf16, #tpu.memory_space<vmem>>, %arg6: memref<64x128xbf16, #tpu.memory_space<vmem>>, %arg7: memref<1x128xf32, #tpu.memory_space<vmem>>, %arg8: memref<1x256x128xf32, #tpu.memory_space<vmem>>) attributes {dimension_semantics = [#tpu.dimension_semantics<parallel>], iteration_bounds = array<i64: 2>, scalar_prefetch = 0 : i64, scratch_operands = 0 : i64, tpu.core_type = #tpu.core_type<tc>, window_params = [{transform_indices = @transform_0, window_bounds = array<i64: 1, 256, 64>}, {transform_indices = @transform_1, window_bounds = array<i64: 1, 8, 32>}, {pipeline_mode = #tpu.pipeline_mode<synchronous>, transform_indices = @transform_2, window_bounds = array<i64: 64, 32>}, {pipeline_mode = #tpu.pipeline_mode<synchronous>, transform_indices = @transform_3, window_bounds = array<i64: 32, 64>}, {pipeline_mode = #tpu.pipeline_mode<synchronous>, transform_indices = @transform_4, window_bounds = array<i64: 32, 64>}, {pipeline_mode = #tpu.pipeline_mode<synchronous>, transform_indices = @transform_5, window_bounds = array<i64: 64, 128>}, {pipeline_mode = #tpu.pipeline_mode<synchronous>, transform_indices = @transform_6, window_bounds = array<i64: 1, 128>}, {transform_indices = @transform_7, window_bounds = array<i64: 1, 256, 128>}]} {
    %c0 = arith.constant 0 : index
    %c0_0 = arith.constant 0 : index
    %c0_1 = arith.constant 0 : index
    %0 = vector.load %arg1[%c0, %c0_0, %c0_1] : memref<1x256x64xbf16, #tpu.memory_space<vmem>>, vector<1x256x64xbf16>
    %1 = vector.shape_cast %0 : vector<1x256x64xbf16> to vector<256x64xbf16>
    %c0_2 = arith.constant 0 : index
    %c0_3 = arith.constant 0 : index
    %c0_4 = arith.constant 0 : index
    %2 = vector.load %arg2[%c0_2, %c0_3, %c0_4] : memref<1x8x32xbf16, #tpu.memory_space<vmem>>, vector<1x8x32xbf16>
    %3 = vector.shape_cast %2 : vector<1x8x32xbf16> to vector<8x32xbf16>
    %c0_5 = arith.constant 0 : index
    %c0_6 = arith.constant 0 : index
    %4 = vector.load %arg3[%c0_5, %c0_6] : memref<64x32xbf16, #tpu.memory_space<vmem>>, vector<64x32xbf16>
    %cst = arith.constant dense<0.000000e+00> : vector<256x32xf32>
    %5 = tpu.matmul %1, %4, %cst {dimension_numbers = #tpu.dot_dimension_numbers<[1], [0], [0], [1], [0, 0, 1, 1], [], []>} : vector<256x64xbf16>, vector<64x32xbf16>, vector<256x32xf32> -> vector<256x32xf32>
    %c0_7 = arith.constant 0 : index
    %c0_8 = arith.constant 0 : index
    %6 = vector.load %arg4[%c0_7, %c0_8] : memref<32x64xbf16, #tpu.memory_space<vmem>>, vector<32x64xbf16>
    %cst_9 = arith.constant dense<0.000000e+00> : vector<8x64xf32>
    %7 = tpu.matmul %3, %6, %cst_9 {dimension_numbers = #tpu.dot_dimension_numbers<[1], [0], [0], [1], [0, 0, 1, 1], [], []>} : vector<8x32xbf16>, vector<32x64xbf16>, vector<8x64xf32> -> vector<8x64xf32>
    %8 = vector.extract_strided_slice %7 {offsets = [0, 0], sizes = [8, 32], strides = [1, 1]} : vector<8x64xf32> to vector<8x32xf32>
    %9 = vector.extract_strided_slice %7 {offsets = [0, 32], sizes = [8, 32], strides = [1, 1]} : vector<8x64xf32> to vector<8x32xf32>
    %cst_10 = arith.constant dense<0.000000e+00> : vector<256x8xf32>
    %10 = tpu.matmul %5, %8, %cst_10 {dimension_numbers = #tpu.dot_dimension_numbers<[1], [1], [0], [0], [0, 0, 1, 0], [], []>} : vector<256x32xf32>, vector<8x32xf32>, vector<256x8xf32> -> vector<256x8xf32>
    %cst_11 = arith.constant dense<0xFF800000> : vector<256xf32>
    %11 = vector.multi_reduction <maximumf>, %10, %cst_11 [1] : vector<256x8xf32> to vector<256xf32>
    %12 = vector.shape_cast %11 : vector<256xf32> to vector<256x1xf32>
    %13 = vector.broadcast %12 : vector<256x1xf32> to vector<256x8xf32>
    %14 = arith.subf %10, %13 : vector<256x8xf32>
    %15 = math.exp %14 : vector<256x8xf32>
    %cst_12 = arith.constant dense<0.000000e+00> : vector<256xf32>
    %16 = vector.multi_reduction <add>, %15, %cst_12 [1] : vector<256x8xf32> to vector<256xf32>
    %17 = vector.shape_cast %16 : vector<256xf32> to vector<256x1xf32>
    %18 = tpu.reciprocal %17 {approx = true} : vector<256x1xf32> -> vector<256x1xf32>
    %19 = vector.broadcast %18 : vector<256x1xf32> to vector<256x8xf32>
    %20 = arith.mulf %15, %19 : vector<256x8xf32>
    %21 = arith.truncf %20 : vector<256x8xf32> to vector<256x8xbf16>
    %22 = arith.truncf %9 : vector<8x32xf32> to vector<8x32xbf16>
    %cst_13 = arith.constant dense<0.000000e+00> : vector<256x32xf32>
    %23 = tpu.matmul %21, %22, %cst_13 {dimension_numbers = #tpu.dot_dimension_numbers<[1], [0], [0], [1], [0, 0, 1, 1], [], []>} : vector<256x8xbf16>, vector<8x32xbf16>, vector<256x32xf32> -> vector<256x32xf32>
    %24 = arith.truncf %23 : vector<256x32xf32> to vector<256x32xbf16>
    %c0_14 = arith.constant 0 : index
    %c0_15 = arith.constant 0 : index
    %25 = vector.load %arg5[%c0_14, %c0_15] : memref<32x64xbf16, #tpu.memory_space<vmem>>, vector<32x64xbf16>
    %cst_16 = arith.constant dense<0.000000e+00> : vector<256x64xf32>
    %26 = tpu.matmul %24, %25, %cst_16 {dimension_numbers = #tpu.dot_dimension_numbers<[1], [0], [0], [1], [0, 0, 1, 1], [], []>} : vector<256x32xbf16>, vector<32x64xbf16>, vector<256x64xf32> -> vector<256x64xf32>
    %27 = arith.extf %1 : vector<256x64xbf16> to vector<256x64xf32>
    %28 = arith.addf %27, %26 : vector<256x64xf32>
    %29 = arith.truncf %28 : vector<256x64xf32> to vector<256x64xbf16>
    %c0_17 = arith.constant 0 : index
    %c0_18 = arith.constant 0 : index
    %30 = vector.load %arg6[%c0_17, %c0_18] : memref<64x128xbf16, #tpu.memory_space<vmem>>, vector<64x128xbf16>
    %cst_19 = arith.constant dense<0.000000e+00> : vector<256x128xf32>
    %31 = tpu.matmul %29, %30, %cst_19 {dimension_numbers = #tpu.dot_dimension_numbers<[1], [0], [0], [1], [0, 0, 1, 1], [], []>} : vector<256x64xbf16>, vector<64x128xbf16>, vector<256x128xf32> -> vector<256x128xf32>
    %c0_20 = arith.constant 0 : index
    %c0_21 = arith.constant 0 : index
    %32 = vector.load %arg7[%c0_20, %c0_21] : memref<1x128xf32, #tpu.memory_space<vmem>>, vector<1x128xf32>
    %33 = vector.broadcast %32 : vector<1x128xf32> to vector<256x128xf32>
    %34 = arith.addf %31, %33 : vector<256x128xf32>
    %35 = vector.shape_cast %34 : vector<256x128xf32> to vector<1x256x128xf32>
    %c0_22 = arith.constant 0 : index
    %c0_23 = arith.constant 0 : index
    %c0_24 = arith.constant 0 : index
    %36 = vector.load %arg8[%c0_22, %c0_23, %c0_24] : memref<1x256x128xf32, #tpu.memory_space<vmem>>, vector<1x256x128xf32>
    tpu.vector_store %arg8[%c0_22, %c0_23, %c0_24], %35 {strides = array<i32>} : memref<1x256x128xf32, #tpu.memory_space<vmem>>, vector<1x256x128xf32>,
    return
  }
  func.func @transform_0(%arg0: i32) -> (i32, i32, i32) {
    %c0_i32 = arith.constant 0 : i32
    %c0_i32_0 = arith.constant 0 : i32
    %c0_i32_1 = arith.constant 0 : i32
    return %arg0, %c0_i32, %c0_i32_0 : i32, i32, i32
  }
  func.func @transform_1(%arg0: i32) -> (i32, i32, i32) {
    %c0_i32 = arith.constant 0 : i32
    %c0_i32_0 = arith.constant 0 : i32
    %c0_i32_1 = arith.constant 0 : i32
    return %arg0, %c0_i32, %c0_i32_0 : i32, i32, i32
  }
  func.func @transform_2(%arg0: i32) -> (i32, i32) {
    %c0_i32 = arith.constant 0 : i32
    %c0_i32_0 = arith.constant 0 : i32
    %c0_i32_1 = arith.constant 0 : i32
    return %c0_i32, %c0_i32_0 : i32, i32
  }
  func.func @transform_3(%arg0: i32) -> (i32, i32) {
    %c0_i32 = arith.constant 0 : i32
    %c0_i32_0 = arith.constant 0 : i32
    %c0_i32_1 = arith.constant 0 : i32
    return %c0_i32, %c0_i32_0 : i32, i32
  }
  func.func @transform_4(%arg0: i32) -> (i32, i32) {
    %c0_i32 = arith.constant 0 : i32
    %c0_i32_0 = arith.constant 0 : i32
    %c0_i32_1 = arith.constant 0 : i32
    return %c0_i32, %c0_i32_0 : i32, i32
  }
  func.func @transform_5(%arg0: i32) -> (i32, i32) {
    %c0_i32 = arith.constant 0 : i32
    %c0_i32_0 = arith.constant 0 : i32
    %c0_i32_1 = arith.constant 0 : i32
    return %c0_i32, %c0_i32_0 : i32, i32
  }
  func.func @transform_6(%arg0: i32) -> (i32, i32) {
    %c0_i32 = arith.constant 0 : i32
    %c0_i32_0 = arith.constant 0 : i32
    %c0_i32_1 = arith.constant 0 : i32
    return %c0_i32, %c0_i32_0 : i32, i32
  }
  func.func @transform_7(%arg0: i32) -> (i32, i32, i32) {
    %c0_i32 = arith.constant 0 : i32
    %c0_i32_0 = arith.constant 0 : i32
    %c0_i32_1 = arith.constant 0 : i32
    return %arg0, %c0_i32, %c0_i32_0 : i32, i32, i32
  }
}

</mosaic_0001>

<bundles_post_ra>
// kernel: dual_text_controlled_unet_forward.8
= control target key start
LH: loop header
LB: loop body
LE: loop exit
PB: predicated region body
PF: predicated region fallthrough
CT: control target
= control target key end

     0   :  { %v282_v0 = vmov 0.0|0.0   ;;  %vm283_vm0 = vmmov 0   ;;  %v284_v4 = vmov 0.0   ;;  %vm32_vm1 = vcmask 261120   ;;  %s363_s1 = inlined_call_operand.vmem [shape: f32[32,64], index: 1, kind: input, shape index: {}]   ;;  %s364_s0 = inlined_call_operand.vmem [shape: f32[2,32], index: 0, kind: input, shape index: {}]   ;;  %s365_s3 = inlined_call_operand.vmem [shape: f32[64,64], index: 3, kind: input, shape index: {}]   ;;  %s366_s2 = inlined_call_operand.vmem [shape: f32[1,64], index: 2, kind: input, shape index: {}]   ;;  %s367_s4 = inlined_call_operand.vmem [shape: f32[1,64], index: 4, kind: input, shape index: {}]   ;;  %s368_s5 = inlined_call_operand.vmem [shape: f32[2,64], index: 5, kind: output, shape index: {}]  }
   0x1   :  { %257 = vmatprep.subr.bf16.mxu0 %v282_v0  ;;  %v21_v1 = vld [vmem:[%s363_s1] sm:$0xff]  ;;  %v22_v2 = vld [vmem:[%s363_s1 + $0x8] sm:$0xff]  ;;  %v23_v3 = vld [vmem:[%s363_s1 + $0x10] sm:$0xff]  ;;  %235 = vmatprep.mubr.msk.f32.mxu0 %vm283_vm0, %v284_v4  ;;  %vm128_vm2 = vcmask 523264   ;;  %vm202_vm3 = vcmask 517120  }
   0x2   :  { %v258_v5 = vpack.c.bf16 %v22_v2, %v21_v1  ;;  %v24_v6 = vld [vmem:[%s363_s1 + $0x18] sm:$0xff]  ;;  %263 = vmatprep.subr.bf16.mxu1 %v282_v0  ;;  %254 = vmatprep.mubr.msk.f32.mxu1 %vm283_vm0, %v284_v4  ;;  %v20_v8 = vld [vmem:[%s364_s0] sm:$0x3]  ;;  %v114_v10 = vld [vmem:[%s365_s3 + $0x8] sm:$0xff] }
   0x3   :  { %v261_v7 = vpack.c.bf16 %v24_v6, %v23_v3  ;;  %v113_v9 = vld [vmem:[%s365_s3] sm:$0xff]  ;;  %v115_v12 = vld [vmem:[%s365_s3 + $0x10] sm:$0xff]  ;;  %v116_v13 = vld [vmem:[%s365_s3 + $0x18] sm:$0xff] }
   0x4   :  { %259 = vmatpush3.bf16.msra.mxu0 %v258_v5  ;;  %v264_v11 = vpack.c.bf16 %v114_v10, %v113_v9  ;;  %v267_v14 = vpack.c.bf16 %v116_v13, %v115_v12  ;;  %v117_v15 = vld [vmem:[%s365_s3 + $0x20] sm:$0xff]  ;;  %v118_v16 = vld [vmem:[%s365_s3 + $0x28] sm:$0xff]  ;;  %v119_v18 = vld [vmem:[%s365_s3 + $0x30] sm:$0xff] }
   0x5   :  { %260 = vmatprep.subr.bf16.mxu0 %v282_v0  ;;  %v270_v17 = vpack.c.bf16 %v118_v16, %v117_v15  ;;  %v120_v19 = vld [vmem:[%s365_s3 + $0x38] sm:$0xff]  ;;  %v208_v21 = vld [vmem:[%s366_s2] ss:$0 sm:$0xff] }
   0x6   :  { %265 = vmatpush3.bf16.msra.mxu1 %v264_v11  ;;  %v273_v20 = vpack.c.bf16 %v120_v19, %v119_v18  ;;  %v211_v30 = vld [vmem:[%s367_s4] ss:$0 sm:$0xff] }
   0x7   :  { %266 = vmatprep.subr.bf16.mxu1 %v282_v0 }
   0x8   :  { %262 = vmatpush3.bf16.msra.mxu0 %v261_v7 }
   0xa   :  { %268 = vmatpush3.bf16.msra.mxu1 %v267_v14 }
   0xb   :  { %236 = vmatmul.mubr.msk.f32.vlgmr.msra.gmra.mrb[0].mxu0 %vm32_vm1, %v20_v8  ;;  %269 = vmatprep.subr.bf16.mxu1 %v282_v0 }
   0xe   :  { %271 = vmatpush3.bf16.msra.mxu1 %v270_v17 }
   0xf   :  { %272 = vmatprep.subr.bf16.mxu1 %v282_v0 }
  0x12   :  { %274 = vmatpush3.bf16.msra.mxu1 %v273_v20 }
  0xde   :  { %v102_v22 = vpop.f32.mrb[0].mxu0 }
  0xdf   :  { %v103_v23 = vadd.f32 %v208_v21, %v102_v22  ;;  %v237_v24 = vpop.f32.mrb[1].mxu0 }
  0xe1   :  { %v210_v25 = vmul.f32 -1.442695, %v103_v23 }
  0xe3   :  { %278 = vpow2.f32 %v210_v25 }
  0xed   :  { %v279_v26 = vpop.eup %278 }
  0xee   :  { %v109_v27 = vadd.f32 1.0, %v279_v26 }
  0xf0   :  { %280 = vrcp.f32 %v109_v27 }
  0xfa   :  { %v281_v28 = vpop.eup %280 }
  0xfb   :  { %v112_v29 = vmul.f32 %v281_v28, %v103_v23 }
  0xfd   :  { %255 = vmatmul.mubr.msk.f32.vlgmr.msra.gmra.mrb[0].mxu1 %vm128_vm2, %v112_v29 }
 0x1d0   :  { %v198_v31 = vpop.f32.mrb[0].mxu1 }
 0x1d1   :  { %v199_v32 = vadd.f32 %v211_v30, %v198_v31  ;;  %v256_v33 = vpop.f32.mrb[1].mxu1 }
 0x1d3   :  { %203 = vst.msk [vmem:[%s368_s5] sm:$0x3] %vm202_vm3, %v199_v32 }

// kernel: dual_text_controlled_unet_forward.7
= control target key start
LH: loop header
LB: loop body
LE: loop exit
PB: predicated region body
PF: predicated region fallthrough
CT: control target
= control target key end

     0   :  { %vm25_vm0 = vcmask 130048   ;;  %vm107_vm1 = vcmask 261120   ;;  %s173_s1 = inlined_call_operand.vmem [shape: f32[16,32], index: 1, kind: input, shape index: {}]   ;;  %s174_s0 = inlined_call_operand.vmem [shape: f32[16,16], index: 0, kind: input, shape index: {}]   ;;  %s175_s2 = inlined_call_operand.vmem [shape: f32[1,32], index: 2, kind: input, shape index: {}]   ;;  %s176_s3 = inlined_call_operand.vmem [shape: f32[16,32], index: 3, kind: output, shape index: {}]  }
   0x1   :  { %v16_v0 = vld [vmem:[%s173_s1] sm:$0xff]  ;;  %v17_v1 = vld [vmem:[%s173_s1 + $0x8] sm:$0xff] }
   0x2   :  { %v14_v2 = vld [vmem:[%s174_s0] sm:$0xff]  ;;  %v128_v3 = vpack.c.bf16 %v17_v1, %v16_v0  ;;  %v15_v4 = vld [vmem:[%s174_s0 + $0x8] sm:$0xff] }
   0x3   :  { %125 = vmatprep.mubr.msk.f32.mxu0 %vm25_vm0, %v14_v2  ;;  %v114_v5 = vld [vmem:[%s175_s2] ss:$0 sm:$0xff] }
   0x4   :  { %129 = vmatprep.subr.bf16.mxu0 %v128_v3 }
   0x5   :  { %131 = vmatpush3.bf16.msra.mxu0 %v128_v3 }
   0x8   :  { %126 = vmatmul.mubr.msk.f32.vlgmr.msra.gmra.mrb[0].mxu0 %vm25_vm0, %v15_v4 }
  0xdb   :  { %v127_v6 = vpop.f32.mrb[0].mxu0 }
  0xdc   :  { %v104_v7 = vadd.f32 %v127_v6, %v114_v5  ;;  %v98_v8 = vpop.f32.mrb[1].mxu0 }
  0xdd   :  { %v99_v9 = vadd.f32 %v114_v5, %v98_v8 }
  0xde   :  { %109 = vst.msk [vmem:[%s176_s3 + $0x8] sm:$0xff] %vm107_vm1, %v104_v7 }
  0xdf   :  { %108 = vst.msk [vmem:[%s176_s3] sm:$0xff] %vm107_vm1, %v99_v9 }

// kernel: dual_text_controlled_unet_forward.10
= control target key start
LH: loop header
LB: loop body
LE: loop exit
PB: predicated region body
PF: predicated region fallthrough
CT: control target
= control target key end

     0   :  { %s1466_s15 = smov 0   ;;  %s1835_s0 = inlined_call_operand.vmem [shape: bf16[2,256,64], index: 0, kind: input, shape index: {}]   ;;  %s1836_s1 = inlined_call_operand.vmem [shape: bf16[64,64], index: 1, kind: input, shape index: {}]   ;;  %s1837_s2 = inlined_call_operand.vmem [shape: f32[1,64], index: 2, kind: input, shape index: {}]   ;;  %s1838_s3 = inlined_call_operand.vmem [shape: f32[2,1,64], index: 3, kind: input, shape index: {}]   ;;  %s1839_s4 = inlined_call_operand.vmem [shape: bf16[2,256,64], index: 4, kind: output, shape index: {}]  }
   0x1 LB: > { %s1062_s16 = sadd.s32 4294967295, %s1439_s15   ;;  %p1066_p0 = scmp.ge.s32.totalorder %s1439_s15, 1  ;;  %s1439_s15 = sphi %s1466_s15, %s14_s15  }
   0x2   : > { %p170_p1 = scmp.lt.s32.totalorder %s1439_s15, 3 }
   0x4   : > { %p171_p2 = pnand %p1066_p0, %p170_p1 }
   0x5   : > { %v1285_v0 = vld [vmem:[%s1836_s1] sm:$0xff] (!%p171_p2)   ;;  %p199_p3 = scmp.lt.s32.totalorder (!%p171_p2), %s1062_s16, 1  ;;  %v1286_v1 = vld [vmem:[%s1836_s1 + $0x8] sm:$0xff] (!%p171_p2)   ;;  %v1287_v2 = vld [vmem:[%s1836_s1 + $0x10] sm:$0xff] (!%p171_p2)   ;;  %vm364_vm0 = vcmask (!%p171_p2), 523264   ;;  %vm965_vm1 = vcmask (!%p171_p2), 519168  }
   0x6   : > { %174 = sbr.rel (%p171_p2) target bundleno = 328 (0x148), region = 36  ;;  %1229 = vmatprep.subr.bf16.mxu0 (!%p171_p2), %v1285_v0  ;;  %1269 = vmatprep.subr.bf16.mxu1 (!%p171_p2), %v1285_v0  ;;  %v1288_v5 = vld [vmem:[%s1836_s1 + $0x18] sm:$0xff] (!%p171_p2)   ;;  %v1535_v20 = vld [vmem:[%s1837_s2] ss:$0 sm:$0xff] (!%p171_p2) }
   0x7   : > { %1230 = vmatpush3.bf16.msra.mxu0 (!%p171_p2), %v1285_v0  ;;  %1273 = vmatpush3.bf16.msra.mxu1 (!%p171_p2), %v1285_v0 }
   0x8   : > { %1231 = vmatprep.subr.bf16.mxu0 (!%p171_p2), %v1286_v1  ;;  %1270 = vmatprep.subr.bf16.mxu1 (!%p171_p2), %v1286_v1 }
   0xb   : > { %1232 = vmatpush3.bf16.msra.mxu0 (!%p171_p2), %v1286_v1  ;;  %1274 = vmatpush3.bf16.msra.mxu1 (!%p171_p2), %v1286_v1 }
   0xc   : > { %1233 = vmatprep.subr.bf16.mxu0 (!%p171_p2), %v1287_v2  ;;  %1271 = vmatprep.subr.bf16.mxu1 (!%p171_p2), %v1287_v2 }
   0xd   : > { %s1841_s16 = smov (!%p199_p3, %s1062_s16), 1 }
   0xe   : > { %s1175_s23 = sshll.u32 %s1841_s16, 7  ;;  %s206_s5 = scalar_lea.vmem %s1838_s3, %s1841_s16 }
   0xf   : > { %s1491_s26 = scalar_lea.vmem %s1835_s0, %s1175_s23  ;;  %1234 = vmatpush3.bf16.msra.mxu0 %v1287_v2  ;;  %1275 = vmatpush3.bf16.msra.mxu1 %v1287_v2  ;;  %v1537_v22 = vld [vmem:[%s206_s5] ss:$0 sm:$0xff]  ;;  %s1686_s10 = scalar_lea.vmem %s1839_s4, %s1175_s23 }
  0x10   : > { %v1289_v3 = vld [vmem:[%s1491_s26] sm:$0xff]   ;;  %1235 = vmatprep.subr.bf16.mxu0 %v1288_v5  ;;  %1272 = vmatprep.subr.bf16.mxu1 %v1288_v5  ;;  %v1291_v6 = vld [vmem:[%s1491_s26 + $0x8] sm:$0xff]   ;;  %v1293_v8 = vld [vmem:[%s1491_s26 + $0x10] sm:$0xff]  }
  0x11   : > { %v1290_v4 = vld [vmem:[%s1491_s26 + $0x40] sm:$0xff]   ;;  %1237 = vmatprep.mubr.msk.bf16.mxu0 %vm364_vm0, %v1289_v3  ;;  %v1292_v7 = vld [vmem:[%s1491_s26 + $0x48] sm:$0xff]   ;;  %v1294_v9 = vld [vmem:[%s1491_s26 + $0x50] sm:$0xff]  }
  0x12   : > { %1253 = vmatprep.mubr.msk.bf16.mxu1 %vm364_vm0, %v1290_v4  ;;  %v1295_v10 = vld [vmem:[%s1491_s26 + $0x18] sm:$0xff]   ;;  %v1297_v12 = vld [vmem:[%s1491_s26 + $0x20] sm:$0xff]   ;;  %v1299_v14 = vld [vmem:[%s1491_s26 + $0x28] sm:$0xff]  }
  0x13   : > { %1236 = vmatpush3.bf16.msra.mxu0 %v1288_v5  ;;  %1276 = vmatpush3.bf16.msra.mxu1 %v1288_v5  ;;  %v1296_v11 = vld [vmem:[%s1491_s26 + $0x58] sm:$0xff]   ;;  %v1298_v13 = vld [vmem:[%s1491_s26 + $0x60] sm:$0xff]   ;;  %v1300_v15 = vld [vmem:[%s1491_s26 + $0x68] sm:$0xff]  }
  0x14   : > { %v1301_v16 = vld [vmem:[%s1491_s26 + $0x30] sm:$0xff]   ;;  %v1303_v18 = vld [vmem:[%s1491_s26 + $0x38] sm:$0xff]  }
  0x15   : > { %v1302_v17 = vld [vmem:[%s1491_s26 + $0x70] sm:$0xff]   ;;  %v1304_v19 = vld [vmem:[%s1491_s26 + $0x78] sm:$0xff]  }
  0x16   : > { %1238 = vmatmul.mubr.msk.bf16.vlgmr.msra.gmra.mrb[0].mxu0 %vm364_vm0, %v1291_v6  ;;  %1254 = vmatmul.mubr.msk.bf16.vlgmr.msra.gmra.mrb[0].mxu1 %vm364_vm0, %v1292_v7 }
  0x17   : > { %1241 = vmatprep.mubr.msk.bf16.mxu0 %vm364_vm0, %v1293_v8  ;;  %1257 = vmatprep.mubr.msk.bf16.mxu1 %vm364_vm0, %v1294_v9 }
  0x1e   : > { %1242 = vmatmul.mubr.msk.bf16.gmra.mrb[4].mxu0 %vm364_vm0, %v1295_v10  ;;  %1258 = vmatmul.mubr.msk.bf16.gmra.mrb[4].mxu1 %vm364_vm0, %v1296_v11 }
  0x1f   : > { %1245 = vmatprep.mubr.msk.bf16.mxu0 %vm364_vm0, %v1297_v12  ;;  %1261 = vmatprep.mubr.msk.bf16.mxu1 %vm364_vm0, %v1298_v13 }
  0x26   : > { %1246 = vmatmul.mubr.msk.bf16.gmra.mrb[8].mxu0 %vm364_vm0, %v1299_v14  ;;  %1262 = vmatmul.mubr.msk.bf16.gmra.mrb[8].mxu1 %vm364_vm0, %v1300_v15 }
  0x27   : > { %1249 = vmatprep.mubr.msk.bf16.mxu0 %vm364_vm0, %v1301_v16  ;;  %1265 = vmatprep.mubr.msk.bf16.mxu1 %vm364_vm0, %v1302_v17 }
  0x2e   : > { %1250 = vmatmul.mubr.msk.bf16.gmra.mrb[12].mxu0 %vm364_vm0, %v1303_v18  ;;  %1266 = vmatmul.mubr.msk.bf16.gmra.mrb[12].mxu1 %vm364_vm0, %v1304_v19 }
  0xe9   : > { %v1239_v21 = vpop.f32.mrb[0].mxu0  ;;  %v1255_v23 = vpop.f32.mrb[0].mxu1 }
  0xea   : > { %v456_v24 = vadd.f32 %v1239_v21, %v1535_v20  ;;  %v520_v25 = vadd.f32 %v1255_v23, %v1535_v20  ;;  %v447_v26 = vpop.f32.mrb[1].mxu0  ;;  %v511_v27 = vpop.f32.mrb[1].mxu1 }
  0xeb   : > { %v448_v28 = vadd.f32 %v1535_v20, %v447_v26  ;;  %v512_v29 = vadd.f32 %v1535_v20, %v511_v27  ;;  %v1240_v30 = vpop.f32.mrb[2].mxu0  ;;  %v1256_v31 = vpop.f32.mrb[2].mxu1 }
  0xec   : > { %v1544_v32 = vadd.f32 %v1537_v22, %v456_v24  ;;  %v1547_v33 = vadd.f32 %v1537_v22, %v520_v25  ;;  %v459_v34 = vadd.f32 %v1240_v30, %v1535_v20  ;;  %v523_v35 = vadd.f32 %v1256_v31, %v1535_v20  ;;  %v450_v36 = vpop.f32.mrb[3].mxu0  ;;  %v514_v37 = vpop.f32.mrb[3].mxu1 }
  0xed   : > { %v1552_v38 = vadd.f32 %v1537_v22, %v448_v28  ;;  %v1555_v39 = vadd.f32 %v1537_v22, %v512_v29  ;;  %v451_v40 = vadd.f32 %v1535_v20, %v450_v36  ;;  %v515_v41 = vadd.f32 %v1535_v20, %v514_v37 }
  0xee   : > { %v1111_v42 = vmul.f32 -1.442695, %v1544_v32  ;;  %v1127_v43 = vmul.f32 -1.442695, %v1547_v33  ;;  %v1562_v44 = vadd.f32 %v1537_v22, %v459_v34  ;;  %v1565_v45 = vadd.f32 %v1537_v22, %v523_v35 }
  0xef   : > { %v1109_v46 = vmul.f32 -1.442695, %v1552_v38  ;;  %v1125_v47 = vmul.f32 -1.442695, %v1555_v39  ;;  %v1570_v48 = vadd.f32 %v1537_v22, %v451_v40  ;;  %v1573_v49 = vadd.f32 %v1537_v22, %v515_v41 }
  0xf0   : > { %1305 = vpow2.f32 %v1111_v42  ;;  %v1112_v50 = vmul.f32 -1.442695, %v1562_v44  ;;  %v1128_v51 = vmul.f32 -1.442695, %v1565_v45 }
  0xf1   : > { %1307 = vpow2.f32 %v1127_v43  ;;  %v1243_v52 = vpop.f32.mrb[4].mxu0  ;;  %v1259_v53 = vpop.f32.mrb[4].mxu1  ;;  %v1110_v54 = vmul.f32 -1.442695, %v1570_v48  ;;  %v1126_v59 = vmul.f32 -1.442695, %v1573_v49 }
  0xf2   : > { %1309 = vpow2.f32 %v1109_v46  ;;  %v472_v55 = vadd.f32 %v1243_v52, %v1535_v20  ;;  %v536_v56 = vadd.f32 %v1259_v53, %v1535_v20  ;;  %v463_v57 = vpop.f32.mrb[5].mxu0  ;;  %v527_v58 = vpop.f32.mrb[5].mxu1 }
  0xf3   : > { %1311 = vpow2.f32 %v1125_v47  ;;  %v464_v60 = vadd.f32 %v1535_v20, %v463_v57  ;;  %v528_v61 = vadd.f32 %v1535_v20, %v527_v58  ;;  %v1244_v62 = vpop.f32.mrb[6].mxu0  ;;  %v1260_v63 = vpop.f32.mrb[6].mxu1 }
  0xf4   : > { %1313 = vpow2.f32 %v1112_v50  ;;  %v1584_v0 = vadd.f32 %v1537_v22, %v472_v55  ;;  %v1587_v1 = vadd.f32 %v1537_v22, %v536_v56  ;;  %v475_v2 = vadd.f32 %v1244_v62, %v1535_v20  ;;  %v466_v3 = vpop.f32.mrb[7].mxu0  ;;  %v530_v4 = vpop.f32.mrb[7].mxu1 }
  0xf5   : > { %1315 = vpow2.f32 %v1128_v51  ;;  %v1591_v5 = vadd.f32 %v1537_v22, %v464_v60  ;;  %v1594_v6 = vadd.f32 %v1537_v22, %v528_v61  ;;  %v539_v7 = vadd.f32 %v1260_v63, %v1535_v20 }
  0xf6   : > { %1317 = vpow2.f32 %v1110_v54  ;;  %v1115_v8 = vmul.f32 -1.442695, %v1584_v0  ;;  %v1131_v9 = vmul.f32 -1.442695, %v1587_v1  ;;  %v1600_v10 = vadd.f32 %v1537_v22, %v475_v2 }
  0xf7   : > { %1319 = vpow2.f32 %v1126_v59  ;;  %v1113_v11 = vmul.f32 -1.442695, %v1591_v5  ;;  %v1129_v12 = vmul.f32 -1.442695, %v1594_v6  ;;  %v1605_v13 = vadd.f32 %v1537_v22, %v539_v7 }
  0xf8   : > { %1321 = vpow2.f32 %v1115_v8  ;;  %v1116_v14 = vmul.f32 -1.442695, %v1600_v10  ;;  %v467_v15 = vadd.f32 %v1535_v20, %v466_v3  ;;  %v531_v16 = vadd.f32 %v1535_v20, %v530_v4 }
  0xf9   : > { %1323 = vpow2.f32 %v1131_v9  ;;  %v1247_v17 = vpop.f32.mrb[8].mxu0  ;;  %v1263_v18 = vpop.f32.mrb[8].mxu1  ;;  %v1620_v37 = vmul.f32 -1.442695, %v1605_v13 }
  0xfa   : > { %v1306_v19 = vpop.eup %1305  ;;  %1325 = vpow2.f32 %v1113_v11  ;;  %v1611_v21 = vadd.f32 %v1537_v22, %v467_v15  ;;  %v1614_v23 = vadd.f32 %v1537_v22, %v531_v16  ;;  %v488_v24 = vadd.f32 %v1247_v17, %v1535_v20  ;;  %v479_v25 = vpop.f32.mrb[9].mxu0 }
  0xfb   : > { %v543_v26 = vpop.f32.mrb[9].mxu1  ;;  %v1308_v27 = vpop.eup %1307  ;;  %v711_v28 = vadd.f32 1.0, %v1306_v19  ;;  %1327 = vpow2.f32 %v1129_v12  ;;  %v552_v29 = vadd.f32 %v1263_v18, %v1535_v20  ;;  %v480_v30 = vadd.f32 %v1535_v20, %v479_v25 }
  0xfc   : > { %v1248_v31 = vpop.f32.mrb[10].mxu0  ;;  %v1264_v34 = vpop.f32.mrb[10].mxu1  ;;  %v727_v36 = vadd.f32 1.0, %v1308_v27  ;;  %1329 = vpow2.f32 %v1116_v14  ;;  %v1623_v43 = vadd.f32 %v1537_v22, %v488_v24  ;;  %v544_v53 = vadd.f32 %v1535_v20, %v543_v26 }
  0xfd   : > { %v1310_v35 = vpop.eup %1309  ;;  %v482_v40 = vpop.f32.mrb[11].mxu0  ;;  %1331 = vrcp.f32 %v711_v28  ;;  %v1626_v46 = vadd.f32 %v1537_v22, %v552_v29  ;;  %v1629_v52 = vadd.f32 %v1537_v22, %v480_v30  ;;  %v1633_v56 = vmul.f32 -1.442695, %v1611_v21 }
  0xfe   : > { %v1312_v41 = vpop.eup %1311  ;;  %v709_v42 = vadd.f32 1.0, %v1310_v35  ;;  %v546_v47 = vpop.f32.mrb[11].mxu1  ;;  %1333 = vrcp.f32 %v727_v36  ;;  %v1636_v57 = vmul.f32 -1.442695, %v1614_v23  ;;  %v1639_v60 = vmul.f32 -1.442695, %v1623_v43 }
  0xff   : > { %v1314_v50 = vpop.eup %1313  ;;  %v725_v51 = vadd.f32 1.0, %v1312_v41  ;;  %v1642_v61 = vadd.f32 %v1537_v22, %v544_v53  ;;  %v491_v2 = vadd.f32 %v1248_v31, %v1535_v20  ;;  %v555_v3 = vadd.f32 %v1264_v34, %v1535_v20 }
 0x100   : > { %v1316_v54 = vpop.eup %1315  ;;  %1335 = vrcp.f32 %v709_v42  ;;  %v712_v55 = vadd.f32 1.0, %v1314_v50  ;;  %v1647_v11 = vmul.f32 -1.442695, %v1626_v46  ;;  %v483_v12 = vadd.f32 %v1535_v20, %v482_v40 }
 0x101   : > { %v1318_v58 = vpop.eup %1317  ;;  %1337 = vrcp.f32 %v725_v51  ;;  %v728_v59 = vadd.f32 1.0, %v1316_v54  ;;  %v1251_v4 = vpop.f32.mrb[12].mxu0  ;;  %v1653_v18 = vadd.f32 %v1537_v22, %v491_v2  ;;  %v1656_v19 = vadd.f32 %v1537_v22, %v555_v3 }
 0x102   : > { %v1320_v62 = vpop.eup %1319  ;;  %1339 = vrcp.f32 %v712_v55  ;;  %v710_v63 = vadd.f32 1.0, %v1318_v58  ;;  %v1267_v7 = vpop.f32.mrb[12].mxu1  ;;  %v1663_v28 = vadd.f32 %v1537_v22, %v483_v12  ;;  %v547_v29 = vadd.f32 %v1535_v20, %v546_v47 }
 0x103   : > { %v1322_v8 = vpop.eup %1321  ;;  %1341 = vrcp.f32 %v728_v59  ;;  %v726_v9 = vadd.f32 1.0, %v1320_v62  ;;  %v495_v14 = vpop.f32.mrb[13].mxu0  ;;  %v1117_v36 = vmul.f32 -1.442695, %v1629_v52  ;;  %v1133_v40 = vmul.f32 -1.442695, %v1642_v61 }
 0x104   : > { %v1650_v15 = vpop.f32.mrb[13].mxu1  ;;  %v1324_v16 = vpop.eup %1323  ;;  %1343 = vrcp.f32 %v710_v63  ;;  %v715_v17 = vadd.f32 1.0, %v1322_v8  ;;  %v1120_v50 = vmul.f32 -1.442695, %v1653_v18  ;;  %v1674_v51 = vadd.f32 %v1537_v22, %v547_v29 }
 0x105   : > { %v1658_v24 = vpop.f32.mrb[14].mxu0  ;;  %v1660_v25 = vpop.f32.mrb[14].mxu1  ;;  %1345 = vrcp.f32 %v726_v9  ;;  %v731_v27 = vadd.f32 1.0, %v1324_v16  ;;  %v504_v54 = vadd.f32 %v1251_v4, %v1535_v20  ;;  %v568_v55 = vadd.f32 %v1267_v7, %v1535_v20 }
 0x106   : > { %v1326_v26 = vpop.eup %1325  ;;  %v1666_v30 = vpop.f32.mrb[15].mxu0  ;;  %1347 = vrcp.f32 %v715_v17  ;;  %v1136_v62 = vmul.f32 -1.442695, %v1656_v19  ;;  %v496_v63 = vadd.f32 %v1535_v20, %v495_v14  ;;  %v1118_v17 = vmul.f32 -1.442695, %v1663_v28 }
 0x107   : > { %v1668_v31 = vpop.f32.mrb[15].mxu1  ;;  %v1328_v34 = vpop.eup %1327  ;;  %v713_v35 = vadd.f32 1.0, %v1326_v26  ;;  %1349 = vrcp.f32 %v731_v27  ;;  %v1690_v4 = vadd.f32 %v1537_v22, %v504_v54 }
 0x108   : > { %v1330_v41 = vpop.eup %1329  ;;  %v729_v42 = vadd.f32 1.0, %v1328_v34  ;;  %v1698_v12 = vadd.f32 %v1537_v22, %v496_v63 }
 0x109   : > { %v1332_v47 = vpop.eup %1331  ;;  %1351 = vrcp.f32 %v713_v35  ;;  %v716_v53 = vadd.f32 1.0, %v1330_v41 }
 0x10a   : > { %v1334_v58 = vpop.eup %1333  ;;  %v807_v59 = vmul.f32 %v1332_v47, %v1544_v32  ;;  %1353 = vrcp.f32 %v729_v42  ;;  %v1693_v32 = vadd.f32 %v1537_v22, %v568_v55  ;;  %v507_v47 = vadd.f32 %v1658_v24, %v1535_v20 }
 0x10b   : > { %v1336_v2 = vpop.eup %1335  ;;  %v823_v3 = vmul.f32 %v1334_v58, %v1547_v33  ;;  %1355 = vrcp.f32 %v716_v53 }
 0x10c   : > { %v1338_v7 = vpop.eup %1337  ;;  %v1179_v8 = vpack.c.bf16 %v807_v59, %v807_v59  ;;  %v805_v9 = vmul.f32 %v1336_v2, %v1552_v38  ;;  %1357 = vpow2.f32 %v1620_v37  ;;  %v1134_v37 = vmul.f32 -1.442695, %v1674_v51 }
 0x10d   : > { %v1340_v14 = vpop.eup %1339  ;;  %v1195_v16 = vpack.c.bf16 %v823_v3, %v823_v3  ;;  %v821_v33 = vmul.f32 %v1338_v7, %v1555_v39  ;;  %1359 = vpow2.f32 %v1633_v56  ;;  %v1123_v56 = vmul.f32 -1.442695, %v1690_v4 }
 0x10e   : > { %v1342_v26 = vpop.eup %1341  ;;  %968 = vst.msk [vmem:[%s1686_s10 + $0x8] sm:$0xf] %vm965_vm1, %v1179_v8  ;;  %v1177_v27 = vpack.c.bf16 %v805_v9, %v805_v9  ;;  %v808_v38 = vmul.f32 %v1340_v14, %v1562_v44  ;;  %1361 = vpow2.f32 %v1636_v57  ;;  %v560_v57 = vadd.f32 %v1535_v20, %v1650_v15 }
 0x10f   : > { %v1344_v29 = vpop.eup %1343  ;;  %984 = vst.msk [vmem:[%s1686_s10 + $0x48] sm:$0xf] %vm965_vm1, %v1195_v16  ;;  %v1193_v39 = vpack.c.bf16 %v821_v33, %v821_v33  ;;  %v824_v34 = vmul.f32 %v1342_v26, %v1565_v45  ;;  %1363 = vpow2.f32 %v1639_v60  ;;  %v1734_v24 = vadd.f32 %v1537_v22, %v507_v47 }
 0x110   : > { %v1346_v35 = vpop.eup %1345  ;;  %966 = vst.msk [vmem:[%s1686_s10] sm:$0xf] %vm965_vm1, %v1177_v27  ;;  %v1180_v44 = vpack.c.bf16 %v808_v38, %v808_v38  ;;  %v806_v41 = vmul.f32 %v1344_v29, %v1570_v48  ;;  %1365 = vpow2.f32 %v1647_v11  ;;  %v1728_v15 = vadd.f32 %v1537_v22, %v560_v57 }
 0x111   : > { %v1348_v42 = vpop.eup %1347  ;;  %982 = vst.msk [vmem:[%s1686_s10 + $0x40] sm:$0xf] %vm965_vm1, %v1193_v39  ;;  %v1196_v45 = vpack.c.bf16 %v824_v34, %v824_v34  ;;  %v822_v60 = vmul.f32 %v1346_v35, %v1573_v49  ;;  %1367 = vpow2.f32 %v1117_v36  ;;  %v1139_v58 = vmul.f32 -1.442695, %v1693_v32 }
 0x112   : > { %v1350_v53 = vpop.eup %1349  ;;  %969 = vst.msk [vmem:[%s1686_s10 + $0xc] sm:$0xf] %vm965_vm1, %v1180_v44  ;;  %v1178_v48 = vpack.c.bf16 %v806_v41, %v806_v41  ;;  %v811_v11 = vmul.f32 %v1348_v42, %v1584_v0  ;;  %1369 = vpow2.f32 %v1133_v40 }
 0x113   : > { %v1352_v54 = vpop.eup %1351  ;;  %985 = vst.msk [vmem:[%s1686_s10 + $0x4c] sm:$0xf] %vm965_vm1, %v1196_v45  ;;  %v1194_v49 = vpack.c.bf16 %v822_v60, %v822_v60  ;;  %v827_v36 = vmul.f32 %v1350_v53, %v1587_v1  ;;  %1371 = vpow2.f32 %v1120_v50  ;;  %v1121_v53 = vmul.f32 -1.442695, %v1698_v12 }
 0x114   : > { %v1354_v55 = vpop.eup %1353  ;;  %967 = vst.msk [vmem:[%s1686_s10 + $0x4] sm:$0xf] %vm965_vm1, %v1178_v48  ;;  %v1183_v0 = vpack.c.bf16 %v811_v11, %v811_v11  ;;  %v809_v40 = vmul.f32 %v1352_v54, %v1591_v5  ;;  %1373 = vpow2.f32 %v1136_v62  ;;  %v571_v5 = vadd.f32 %v1660_v25, %v1535_v20 }
 0x115   : > { %v1356_v59 = vpop.eup %1355  ;;  %983 = vst.msk [vmem:[%s1686_s10 + $0x44] sm:$0xf] %vm965_vm1, %v1194_v49  ;;  %v1199_v63 = vpack.c.bf16 %v827_v36, %v827_v36  ;;  %v825_v1 = vmul.f32 %v1354_v55, %v1594_v6  ;;  %1375 = vpow2.f32 %v1118_v17  ;;  %v499_v6 = vadd.f32 %v1535_v20, %v1666_v30 }
 0x116   : > { %v1358_v50 = vpop.eup %1357  ;;  %972 = vst.msk [vmem:[%s1686_s10 + $0x18] sm:$0xf] %vm965_vm1, %v1183_v0  ;;  %v1181_v2 = vpack.c.bf16 %v809_v40, %v809_v40  ;;  %v812_v3 = vmul.f32 %v1356_v59, %v1600_v10  ;;  %1377 = vpow2.f32 %v1134_v37  ;;  %v1755_v16 = vadd.f32 %v1537_v22, %v571_v5 }
 0x117   : > { %v1360_v62 = vpop.eup %1359  ;;  %988 = vst.msk [vmem:[%s1686_s10 + $0x58] sm:$0xf] %vm965_vm1, %v1199_v63  ;;  %v1197_v7 = vpack.c.bf16 %v825_v1, %v825_v1  ;;  %v732_v8 = vadd.f32 1.0, %v1358_v50  ;;  %1379 = vpow2.f32 %v1123_v56  ;;  %v1760_v17 = vadd.f32 %v1537_v22, %v499_v6 }
 0x118   : > { %v1362_v9 = vpop.eup %1361  ;;  %970 = vst.msk [vmem:[%s1686_s10 + $0x10] sm:$0xf] %vm965_vm1, %v1181_v2  ;;  %v1184_v14 = vpack.c.bf16 %v812_v3, %v812_v3  ;;  %v714_v10 = vadd.f32 1.0, %v1360_v62  ;;  %1381 = vpow2.f32 %v1139_v58  ;;  %v563_v30 = vadd.f32 %v1535_v20, %v1668_v31 }
 0x119   : > { %v1364_v25 = vpop.eup %1363  ;;  %986 = vst.msk [vmem:[%s1686_s10 + $0x50] sm:$0xf] %vm965_vm1, %v1197_v7  ;;  %1383 = vrcp.f32 %v732_v8  ;;  %v730_v33 = vadd.f32 1.0, %v1362_v9  ;;  %v1137_v54 = vmul.f32 -1.442695, %v1728_v15 }
 0x11a   : > { %v1366_v26 = vpop.eup %1365  ;;  %973 = vst.msk [vmem:[%s1686_s10 + $0x1c] sm:$0xf] %vm965_vm1, %v1184_v14  ;;  %1385 = vrcp.f32 %v714_v10  ;;  %v719_v27 = vadd.f32 1.0, %v1364_v25  ;;  %v1767_v29 = vadd.f32 %v1537_v22, %v563_v30  ;;  %v1124_v55 = vmul.f32 -1.442695, %v1734_v24 }
 0x11b   : > { %v1368_v38 = vpop.eup %1367  ;;  %1387 = vrcp.f32 %v730_v33  ;;  %v735_v37 = vadd.f32 1.0, %v1366_v26  ;;  %v1140_v58 = vmul.f32 -1.442695, %v1755_v16  ;;  %v1122_v50 = vmul.f32 -1.442695, %v1760_v17 }
 0x11c   : > { %v1370_v39 = vpop.eup %1369  ;;  %1389 = vrcp.f32 %v719_v27  ;;  %v717_v34 = vadd.f32 1.0, %v1368_v38  ;;  %v1138_v5 = vmul.f32 -1.442695, %v1767_v29 }
 0x11d   : > { %v1372_v56 = vpop.eup %1371  ;;  %1391 = vrcp.f32 %v735_v37  ;;  %v733_v35 = vadd.f32 1.0, %v1370_v39 }
 0x11e   : > { %v1374_v44 = vpop.eup %1373  ;;  %1393 = vrcp.f32 %v717_v34  ;;  %v720_v20 = vadd.f32 1.0, %v1372_v56 }
 0x11f   : > { %v1376_v31 = vpop.eup %1375  ;;  %1395 = vrcp.f32 %v733_v35  ;;  %v736_v41 = vadd.f32 1.0, %v1374_v44 }
 0x120   : > { %v1378_v57 = vpop.eup %1377  ;;  %1397 = vrcp.f32 %v720_v20  ;;  %v718_v42 = vadd.f32 1.0, %v1376_v31 }
 0x121   : > { %v1380_v45 = vpop.eup %1379  ;;  %1399 = vrcp.f32 %v736_v41  ;;  %v734_v60 = vadd.f32 1.0, %v1378_v57 }
 0x122   : > { %v1382_v22 = vpop.eup %1381  ;;  %1401 = vrcp.f32 %v718_v42  ;;  %v723_v47 = vadd.f32 1.0, %v1380_v45 }
 0x123   : > { %v1384_v48 = vpop.eup %1383  ;;  %1403 = vrcp.f32 %v734_v60  ;;  %v739_v11 = vadd.f32 1.0, %v1382_v22 }
 0x124   : > { %v1386_v49 = vpop.eup %1385  ;;  %v828_v36 = vmul.f32 %v1384_v48, %v1605_v13  ;;  %1405 = vrcp.f32 %v723_v47 }
 0x125   : > { %v1388_v0 = vpop.eup %1387  ;;  %v810_v40 = vmul.f32 %v1386_v49, %v1611_v21  ;;  %1407 = vrcp.f32 %v739_v11 }
 0x126   : > { %v1390_v59 = vpop.eup %1389  ;;  %v1200_v63 = vpack.c.bf16 %v828_v36, %v828_v36  ;;  %v826_v1 = vmul.f32 %v1388_v0, %v1614_v23  ;;  %1409 = vpow2.f32 %v1121_v53 }
 0x127   : > { %v1392_v2 = vpop.eup %1391  ;;  %v1182_v13 = vpack.c.bf16 %v810_v40, %v810_v40  ;;  %v815_v3 = vmul.f32 %v1390_v59, %v1623_v43  ;;  %1411 = vpow2.f32 %v1137_v54 }
 0x128   : > { %v1394_v21 = vpop.eup %1393  ;;  %989 = vst.msk [vmem:[%s1686_s10 + $0x5c] sm:$0xf] %vm965_vm1, %v1200_v63  ;;  %v1198_v62 = vpack.c.bf16 %v826_v1, %v826_v1  ;;  %v831_v7 = vmul.f32 %v1392_v2, %v1626_v46  ;;  %1413 = vpow2.f32 %v1124_v55 }
 0x129   : > { %v1396_v23 = vpop.eup %1395  ;;  %971 = vst.msk [vmem:[%s1686_s10 + $0x14] sm:$0xf] %vm965_vm1, %v1182_v13  ;;  %v1187_v8 = vpack.c.bf16 %v815_v3, %v815_v3  ;;  %v813_v6 = vmul.f32 %v1394_v21, %v1629_v52  ;;  %1415 = vpow2.f32 %v1140_v58 }
 0x12a   : > { %v1398_v43 = vpop.eup %1397  ;;  %987 = vst.msk [vmem:[%s1686_s10 + $0x54] sm:$0xf] %vm965_vm1, %v1198_v62  ;;  %v1203_v9 = vpack.c.bf16 %v831_v7, %v831_v7  ;;  %v829_v14 = vmul.f32 %v1396_v23, %v1642_v61  ;;  %1417 = vpow2.f32 %v1122_v50 }
 0x12b   : > { %v1400_v10 = vpop.eup %1399  ;;  %976 = vst.msk [vmem:[%s1686_s10 + $0x28] sm:$0xf] %vm965_vm1, %v1187_v8  ;;  %v1185_v46 = vpack.c.bf16 %v813_v6, %v813_v6  ;;  %v816_v25 = vmul.f32 %v1398_v43, %v1653_v18  ;;  %1419 = vpow2.f32 %v1138_v5 }
 0x12c   : > { %v1402_v33 = vpop.eup %1401  ;;  %992 = vst.msk [vmem:[%s1686_s10 + $0x68] sm:$0xf] %vm965_vm1, %v1203_v9  ;;  %v1201_v52 = vpack.c.bf16 %v829_v14, %v829_v14  ;;  %v832_v30 = vmul.f32 %v1400_v10, %v1656_v19 }
 0x12d   : > { %v1404_v26 = vpop.eup %1403  ;;  %974 = vst.msk [vmem:[%s1686_s10 + $0x20] sm:$0xf] %vm965_vm1, %v1185_v46  ;;  %v1188_v61 = vpack.c.bf16 %v816_v25, %v816_v25  ;;  %v814_v27 = vmul.f32 %v1402_v33, %v1663_v28 }
 0x12e   : > { %v1406_v38 = vpop.eup %1405  ;;  %990 = vst.msk [vmem:[%s1686_s10 + $0x60] sm:$0xf] %vm965_vm1, %v1201_v52  ;;  %v1204_v18 = vpack.c.bf16 %v832_v30, %v832_v30  ;;  %v830_v37 = vmul.f32 %v1404_v26, %v1674_v51 }
 0x12f   : > { %v1408_v39 = vpop.eup %1407  ;;  %977 = vst.msk [vmem:[%s1686_s10 + $0x2c] sm:$0xf] %vm965_vm1, %v1188_v61  ;;  %v1186_v34 = vpack.c.bf16 %v814_v27, %v814_v27  ;;  %v819_v19 = vmul.f32 %v1406_v38, %v1690_v4 }
 0x130   : > { %v1410_v56 = vpop.eup %1409  ;;  %993 = vst.msk [vmem:[%s1686_s10 + $0x6c] sm:$0xf] %vm965_vm1, %v1204_v18  ;;  %v1202_v35 = vpack.c.bf16 %v830_v37, %v830_v37  ;;  %v835_v28 = vmul.f32 %v1408_v39, %v1693_v32 }
 0x131   : > { %v1412_v44 = vpop.eup %1411  ;;  %975 = vst.msk [vmem:[%s1686_s10 + $0x24] sm:$0xf] %vm965_vm1, %v1186_v34  ;;  %v1191_v20 = vpack.c.bf16 %v819_v19, %v819_v19  ;;  %v721_v31 = vadd.f32 1.0, %v1410_v56 }
 0x132   : > { %v1414_v51 = vpop.eup %1413  ;;  %991 = vst.msk [vmem:[%s1686_s10 + $0x64] sm:$0xf] %vm965_vm1, %v1202_v35  ;;  %v1207_v41 = vpack.c.bf16 %v835_v28, %v835_v28  ;;  %v737_v57 = vadd.f32 1.0, %v1412_v44 }
 0x133   : > { %v1416_v42 = vpop.eup %1415  ;;  %980 = vst.msk [vmem:[%s1686_s10 + $0x38] sm:$0xf] %vm965_vm1, %v1191_v20  ;;  %1421 = vrcp.f32 %v721_v31  ;;  %v724_v4 = vadd.f32 1.0, %v1414_v51 }
 0x134   : > { %v1418_v45 = vpop.eup %1417  ;;  %996 = vst.msk [vmem:[%s1686_s10 + $0x78] sm:$0xf] %vm965_vm1, %v1207_v41  ;;  %1423 = vrcp.f32 %v737_v57  ;;  %v740_v32 = vadd.f32 1.0, %v1416_v42 }
 0x135   : > { %v1420_v60 = vpop.eup %1419  ;;  %1425 = vrcp.f32 %v724_v4  ;;  %v722_v22 = vadd.f32 1.0, %v1418_v45 }
 0x136   : > { %1427 = vrcp.f32 %v740_v32  ;;  %v738_v47 = vadd.f32 1.0, %v1420_v60 }
 0x137   : > { %1429 = vrcp.f32 %v722_v22 }
 0x138   : > { %1431 = vrcp.f32 %v738_v47 }
 0x13d   : > { %v1422_v53 = vpop.eup %1421 }
 0x13e   : > { %v1424_v48 = vpop.eup %1423  ;;  %v817_v11 = vmul.f32 %v1422_v53, %v1698_v12 }
 0x13f   : > { %v1426_v54 = vpop.eup %1425  ;;  %v833_v49 = vmul.f32 %v1424_v48, %v1728_v15 }
 0x140   : > { %v1428_v36 = vpop.eup %1427  ;;  %v1189_v55 = vpack.c.bf16 %v817_v11, %v817_v11  ;;  %v820_v0 = vmul.f32 %v1426_v54, %v1734_v24 }
 0x141   : > { %v1430_v40 = vpop.eup %1429  ;;  %v1205_v58 = vpack.c.bf16 %v833_v49, %v833_v49  ;;  %v836_v59 = vmul.f32 %v1428_v36, %v1755_v16 }
 0x142   : > { %v1432_v63 = vpop.eup %1431  ;;  %978 = vst.msk [vmem:[%s1686_s10 + $0x30] sm:$0xf] %vm965_vm1, %v1189_v55  ;;  %v1192_v1 = vpack.c.bf16 %v820_v0, %v820_v0  ;;  %v818_v12 = vmul.f32 %v1430_v40, %v1760_v17 }
 0x143   : > { %994 = vst.msk [vmem:[%s1686_s10 + $0x70] sm:$0xf] %vm965_vm1, %v1205_v58  ;;  %v1208_v15 = vpack.c.bf16 %v836_v59, %v836_v59  ;;  %v834_v50 = vmul.f32 %v1432_v63, %v1767_v29 }
 0x144   : > { %981 = vst.msk [vmem:[%s1686_s10 + $0x3c] sm:$0xf] %vm965_vm1, %v1192_v1  ;;  %v1190_v2 = vpack.c.bf16 %v818_v12, %v818_v12 }
 0x145   : > { %997 = vst.msk [vmem:[%s1686_s10 + $0x7c] sm:$0xf] %vm965_vm1, %v1208_v15  ;;  %v1206_v24 = vpack.c.bf16 %v834_v50, %v834_v50 }
 0x146   : > { %979 = vst.msk [vmem:[%s1686_s10 + $0x34] sm:$0xf] %vm965_vm1, %v1190_v2 }
 0x147   : > { %995 = vst.msk [vmem:[%s1686_s10 + $0x74] sm:$0xf] %vm965_vm1, %v1206_v24 }
 0x148 PF: > { %s14_s15 = sadd.s32 1, %s1439_s15  }
 0x149   : > { %p11_p4 = scmp.ge.s32.totalorder %s14_s15, 4  }
 0x14b   :  { %13 = sbr.rel (!%p11_p4) target bundleno = 1 (0x1), region = 69 }

// kernel: dual_text_controlled_unet_forward.12
= control target key start
LH: loop header
LB: loop body
LE: loop exit
PB: predicated region body
PF: predicated region fallthrough
CT: control target
= control target key end

     0   :  { %s1693_s18 = smov 0   ;;  %s2212_s0 = inlined_call_operand.vmem [shape: bf16[2,256,48], index: 0, kind: input, shape index: {}]   ;;  %s2213_s1 = inlined_call_operand.vmem [shape: bf16[48,64], index: 1, kind: input, shape index: {}]   ;;  %s2214_s2 = inlined_call_operand.vmem [shape: f32[1,64], index: 2, kind: input, shape index: {}]   ;;  %s2215_s3 = inlined_call_operand.vmem [shape: f32[2,1,64], index: 3, kind: input, shape index: {}]   ;;  %s2216_s4 = inlined_call_operand.vmem [shape: bf16[2,256,64], index: 4, kind: input, shape index: {}]   ;;  %s2217_s5 = inlined_call_operand.vmem [shape: bf16[2,256,64], index: 5, kind: output, shape index: {}]  }
   0x1 LB: > { %s1209_s19 = sadd.s32 4294967295, %s1661_s18   ;;  %p1213_p0 = scmp.ge.s32.totalorder %s1661_s18, 1  ;;  %s1661_s18 = sphi %s1693_s18, %s15_s18  }
   0x2   : > { %p205_p1 = scmp.lt.s32.totalorder %s1661_s18, 3 }
   0x4   : > { %p206_p2 = pnand %p1213_p0, %p205_p1 }
   0x5   : > { %v1508_v0 = vld [vmem:[%s2213_s1] sm:$0xff] (!%p206_p2)   ;;  %p241_p3 = scmp.lt.s32.totalorder (!%p206_p2), %s1209_s19, 1  ;;  %v1509_v1 = vld [vmem:[%s2213_s1 + $0x8] sm:$0xff] (!%p206_p2)   ;;  %v1510_v2 = vld [vmem:[%s2213_s1 + $0x10] sm:$0xff] (!%p206_p2)   ;;  %vm403_vm0 = vcmask (!%p206_p2), 392192   ;;  %vm1100_vm1 = vcmask (!%p206_p2), 519168  }
   0x6   : > { %209 = sbr.rel (%p206_p2) target bundleno = 327 (0x147), region = 40  ;;  %1456 = vmatprep.subr.bf16.mxu0 (!%p206_p2), %v1508_v0  ;;  %1494 = vmatprep.subr.bf16.mxu1 (!%p206_p2), %v1508_v0  ;;  %v1818_v45 = vld [vmem:[%s2214_s2] ss:$0 sm:$0xff] (!%p206_p2) }
   0x7   : > { %1457 = vmatpush3.bf16.msra.mxu0 (!%p206_p2), %v1508_v0  ;;  %1497 = vmatpush3.bf16.msra.mxu1 (!%p206_p2), %v1508_v0 }
   0x8   : > { %1458 = vmatprep.subr.bf16.mxu0 (!%p206_p2), %v1509_v1  ;;  %1495 = vmatprep.subr.bf16.mxu1 (!%p206_p2), %v1509_v1 }
   0xb   : > { %1459 = vmatpush3.bf16.msra.mxu0 (!%p206_p2), %v1509_v1  ;;  %1498 = vmatpush3.bf16.msra.mxu1 (!%p206_p2), %v1509_v1 }
   0xc   : > { %1460 = vmatprep.subr.bf16.mxu0 (!%p206_p2), %v1510_v2  ;;  %1496 = vmatprep.subr.bf16.mxu1 (!%p206_p2), %v1510_v2 }
   0xd   : > { %s2226_s19 = smov (!%p241_p3, %s1209_s19), 1 }
   0xe   : > { %s1713_s26 = sshll.u32 %s2226_s19, 7  ;;  %s248_s10 = scalar_lea.vmem %s2215_s3, %s2226_s19 }
   0xf   : > { %s1719_s29 = scalar_lea.vmem %s2212_s0, %s1713_s26  ;;  %1461 = vmatpush3.bf16.msra.mxu0 %v1510_v2  ;;  %1499 = vmatpush3.bf16.msra.mxu1 %v1510_v2  ;;  %s1757_s7 = scalar_lea.vmem %s2216_s4, %s1713_s26  ;;  %v1837_v58 = vld [vmem:[%s248_s10] ss:$0 sm:$0xff] }
  0x10   : > { %v1511_v3 = vld [vmem:[%s1719_s29] sm:$0xff]   ;;  %v1513_v5 = vld [vmem:[%s1719_s29 + $0x8] sm:$0xff]   ;;  %v1515_v7 = vld [vmem:[%s1719_s29 + $0x10] sm:$0xff]   ;;  %s2032_s15 = scalar_lea.vmem %s2217_s5, %s1713_s26 }
  0x11   : > { %v1512_v4 = vld [vmem:[%s1719_s29 + $0x40] sm:$0xff]   ;;  %1462 = vmatprep.mubr.msk.bf16.mxu0 %vm403_vm0, %v1511_v3  ;;  %v1514_v6 = vld [vmem:[%s1719_s29 + $0x48] sm:$0xff]   ;;  %v1516_v8 = vld [vmem:[%s1719_s29 + $0x50] sm:$0xff]  }
  0x12   : > { %1478 = vmatprep.mubr.msk.bf16.mxu1 %vm403_vm0, %v1512_v4  ;;  %1463 = vmatmul.mubr.msk.bf16.vlgmr.msra.gmra.mrb[0].mxu0 %vm403_vm0, %v1513_v5  ;;  %v1517_v9 = vld [vmem:[%s1719_s29 + $0x18] sm:$0xff]   ;;  %v1519_v11 = vld [vmem:[%s1719_s29 + $0x20] sm:$0xff]   ;;  %v1521_v13 = vld [vmem:[%s1719_s29 + $0x28] sm:$0xff]  }
  0x13   : > { %1479 = vmatmul.mubr.msk.bf16.vlgmr.msra.gmra.mrb[0].mxu1 %vm403_vm0, %v1514_v6  ;;  %1466 = vmatprep.mubr.msk.bf16.mxu0 %vm403_vm0, %v1515_v7  ;;  %v1518_v10 = vld [vmem:[%s1719_s29 + $0x58] sm:$0xff]   ;;  %v1520_v12 = vld [vmem:[%s1719_s29 + $0x60] sm:$0xff]   ;;  %v1522_v14 = vld [vmem:[%s1719_s29 + $0x68] sm:$0xff]  }
  0x14   : > { %1482 = vmatprep.mubr.msk.bf16.mxu1 %vm403_vm0, %v1516_v8  ;;  %v1523_v15 = vld [vmem:[%s1719_s29 + $0x30] sm:$0xff]   ;;  %v1525_v17 = vld [vmem:[%s1719_s29 + $0x38] sm:$0xff]   ;;  %v1760_v19 = vld [vmem:[%s1757_s7 + $0x8] sm:$0xff]  }
  0x15   : > { %v1524_v16 = vld [vmem:[%s1719_s29 + $0x70] sm:$0xff]   ;;  %v1526_v18 = vld [vmem:[%s1719_s29 + $0x78] sm:$0xff]   ;;  %v1763_v20 = vld [vmem:[%s1757_s7 + $0x48] sm:$0xff]   ;;  %v1364_v24 = vunpack.c.l.bf16 %v1760_v19  ;;  %v1365_v31 = vunpack.c.h.bf16 %v1760_v19 }
  0x16   : > { %v1766_v21 = vld [vmem:[%s1757_s7] sm:$0xff]   ;;  %v1772_v23 = vld [vmem:[%s1757_s7 + $0x18] sm:$0xff]   ;;  %v1779_v26 = vld [vmem:[%s1757_s7 + $0x10] sm:$0xff]   ;;  %v1396_v28 = vunpack.c.l.bf16 %v1763_v20  ;;  %v1397_v33 = vunpack.c.h.bf16 %v1763_v20 }
  0x17   : > { %v1769_v22 = vld [vmem:[%s1757_s7 + $0x40] sm:$0xff]   ;;  %v1776_v25 = vld [vmem:[%s1757_s7 + $0x58] sm:$0xff]   ;;  %v1782_v27 = vld [vmem:[%s1757_s7 + $0x50] sm:$0xff]   ;;  %v1360_v29 = vunpack.c.l.bf16 %v1766_v21  ;;  %v1361_v34 = vunpack.c.h.bf16 %v1766_v21  ;;  %v1372_v36 = vunpack.c.l.bf16 %v1772_v23  ;;  %v1368_v41 = vunpack.c.l.bf16 %v1779_v26 }
  0x18   : > { %v1392_v30 = vunpack.c.l.bf16 %v1769_v22  ;;  %v1789_v32 = vld [vmem:[%s1757_s7 + $0x28] sm:$0xff]   ;;  %v1393_v35 = vunpack.c.h.bf16 %v1769_v22  ;;  %v1799_v38 = vld [vmem:[%s1757_s7 + $0x20] sm:$0xff]   ;;  %v1404_v40 = vunpack.c.l.bf16 %v1776_v25  ;;  %v1400_v42 = vunpack.c.l.bf16 %v1782_v27  ;;  %v1813_v44 = vld [vmem:[%s1757_s7 + $0x38] sm:$0xff]  }
  0x19   : > { %v1796_v37 = vld [vmem:[%s1757_s7 + $0x68] sm:$0xff]   ;;  %v1802_v39 = vld [vmem:[%s1757_s7 + $0x60] sm:$0xff]   ;;  %v1373_v43 = vunpack.c.h.bf16 %v1772_v23  ;;  %v1405_v46 = vunpack.c.h.bf16 %v1776_v25  ;;  %v1369_v47 = vunpack.c.h.bf16 %v1779_v26  ;;  %v1401_v48 = vunpack.c.h.bf16 %v1782_v27  ;;  %v1825_v50 = vld [vmem:[%s1757_s7 + $0x78] sm:$0xff]  }
  0x1a   : > { %1467 = vmatmul.mubr.msk.bf16.gmra.mrb[4].mxu0 %vm403_vm0, %v1517_v9  ;;  %v1380_v49 = vunpack.c.l.bf16 %v1789_v32  ;;  %v1828_v51 = vld [vmem:[%s1757_s7 + $0x30] sm:$0xff]   ;;  %v1412_v52 = vunpack.c.l.bf16 %v1796_v37  ;;  %v1376_v53 = vunpack.c.l.bf16 %v1799_v38  ;;  %v1408_v54 = vunpack.c.l.bf16 %v1802_v39 }
  0x1b   : > { %1483 = vmatmul.mubr.msk.bf16.gmra.mrb[4].mxu1 %vm403_vm0, %v1518_v10  ;;  %1470 = vmatprep.mubr.msk.bf16.mxu0 %vm403_vm0, %v1519_v11  ;;  %v1381_v55 = vunpack.c.h.bf16 %v1789_v32  ;;  %v1835_v56 = vld [vmem:[%s1757_s7 + $0x70] sm:$0xff]   ;;  %v1413_v60 = vunpack.c.h.bf16 %v1796_v37 }
  0x1c   : > { %1486 = vmatprep.mubr.msk.bf16.mxu1 %vm403_vm0, %v1520_v12 }
  0x22   : > { %1471 = vmatmul.mubr.msk.bf16.gmra.mrb[8].mxu0 %vm403_vm0, %v1521_v13 }
  0x23   : > { %1487 = vmatmul.mubr.msk.bf16.gmra.mrb[8].mxu1 %vm403_vm0, %v1522_v14  ;;  %1474 = vmatprep.mubr.msk.bf16.mxu0 %vm403_vm0, %v1523_v15 }
  0x24   : > { %1490 = vmatprep.mubr.msk.bf16.mxu1 %vm403_vm0, %v1524_v16 }
  0x2a   : > { %1475 = vmatmul.mubr.msk.bf16.gmra.mrb[12].mxu0 %vm403_vm0, %v1525_v17 }
  0x2b   : > { %1491 = vmatmul.mubr.msk.bf16.gmra.mrb[12].mxu1 %vm403_vm0, %v1526_v18 }
  0xe5   : > { %v1464_v57 = vpop.f32.mrb[0].mxu0 }
  0xe6   : > { %v1480_v59 = vpop.f32.mrb[0].mxu1  ;;  %v495_v0 = vadd.f32 %v1464_v57, %v1818_v45  ;;  %v486_v2 = vpop.f32.mrb[1].mxu0 }
  0xe7   : > { %v559_v1 = vadd.f32 %v1480_v59, %v1818_v45  ;;  %v550_v3 = vpop.f32.mrb[1].mxu1  ;;  %v487_v6 = vadd.f32 %v1818_v45, %v486_v2  ;;  %v1465_v8 = vpop.f32.mrb[2].mxu0 }
  0xe8   : > { %v551_v7 = vadd.f32 %v1818_v45, %v550_v3  ;;  %v1481_v9 = vpop.f32.mrb[2].mxu1  ;;  %v622_v12 = vadd.f32 %v1837_v58, %v495_v0  ;;  %v498_v14 = vadd.f32 %v1465_v8, %v1818_v45  ;;  %v489_v16 = vpop.f32.mrb[3].mxu0 }
  0xe9   : > { %v638_v13 = vadd.f32 %v1837_v58, %v559_v1  ;;  %v562_v15 = vadd.f32 %v1481_v9, %v1818_v45  ;;  %v553_v17 = vpop.f32.mrb[3].mxu1  ;;  %v620_v18 = vadd.f32 %v1837_v58, %v487_v6  ;;  %v490_v59 = vadd.f32 %v1818_v45, %v489_v16 }
  0xea   : > { %v636_v57 = vadd.f32 %v1837_v58, %v551_v7  ;;  %v554_v2 = vadd.f32 %v1818_v45, %v553_v17  ;;  %v1861_v3 = vadd.f32 %v1364_v24, %v622_v12  ;;  %v623_v1 = vadd.f32 %v1837_v58, %v498_v14 }
  0xeb   : > { %v1863_v0 = vadd.f32 %v1396_v28, %v638_v13  ;;  %v639_v8 = vadd.f32 %v1837_v58, %v562_v15  ;;  %v1867_v9 = vadd.f32 %v1360_v29, %v620_v18  ;;  %v621_v6 = vadd.f32 %v1837_v58, %v490_v59 }
  0xec   : > { %v1869_v11 = vadd.f32 %v1392_v30, %v636_v57  ;;  %v637_v7 = vadd.f32 %v1837_v58, %v554_v2  ;;  %v1259_v16 = vmul.f32 -1.442695, %v1861_v3  ;;  %v1877_v24 = vadd.f32 %v1365_v31, %v623_v1 }
  0xed   : > { %v1275_v17 = vmul.f32 -1.442695, %v1863_v0  ;;  %v1881_v28 = vadd.f32 %v1397_v33, %v639_v8  ;;  %v1257_v29 = vmul.f32 -1.442695, %v1867_v9  ;;  %v1887_v12 = vadd.f32 %v1361_v34, %v621_v6  ;;  %v1468_v14 = vpop.f32.mrb[4].mxu0 }
  0xee   : > { %v1273_v30 = vmul.f32 -1.442695, %v1869_v11  ;;  %v1891_v13 = vadd.f32 %v1393_v35, %v637_v7  ;;  %v1484_v19 = vpop.f32.mrb[4].mxu1  ;;  %1527 = vpow2.f32 %v1259_v16  ;;  %v1260_v31 = vmul.f32 -1.442695, %v1877_v24  ;;  %v502_v15 = vpop.f32.mrb[5].mxu0 }
  0xef   : > { %v1276_v20 = vmul.f32 -1.442695, %v1881_v28  ;;  %v511_v33 = vadd.f32 %v1468_v14, %v1818_v45  ;;  %v566_v18 = vpop.f32.mrb[5].mxu1  ;;  %1529 = vpow2.f32 %v1275_v17  ;;  %v1258_v21 = vmul.f32 -1.442695, %v1887_v12  ;;  %v1469_v35 = vpop.f32.mrb[6].mxu0 }
  0xf0   : > { %v1274_v34 = vmul.f32 -1.442695, %v1891_v13  ;;  %v575_v22 = vadd.f32 %v1484_v19, %v1818_v45  ;;  %v1485_v57 = vpop.f32.mrb[6].mxu1  ;;  %1531 = vpow2.f32 %v1257_v29  ;;  %v503_v2 = vadd.f32 %v1818_v45, %v502_v15  ;;  %v505_v8 = vpop.f32.mrb[7].mxu0 }
  0xf1   : > { %v626_v59 = vadd.f32 %v1837_v58, %v511_v33  ;;  %v567_v1 = vadd.f32 %v1818_v45, %v566_v18  ;;  %v569_v6 = vpop.f32.mrb[7].mxu1  ;;  %1533 = vpow2.f32 %v1273_v30  ;;  %v514_v16 = vadd.f32 %v1469_v35, %v1818_v45 }
  0xf2   : > { %v642_v7 = vadd.f32 %v1837_v58, %v575_v22  ;;  %v578_v17 = vadd.f32 %v1485_v57, %v1818_v45  ;;  %1535 = vpow2.f32 %v1260_v31  ;;  %v624_v29 = vadd.f32 %v1837_v58, %v503_v2 }
  0xf3   : > { %v1907_v14 = vadd.f32 %v1372_v36, %v626_v59  ;;  %v640_v19 = vadd.f32 %v1837_v58, %v567_v1  ;;  %1537 = vpow2.f32 %v1276_v20  ;;  %v627_v30 = vadd.f32 %v1837_v58, %v514_v16 }
  0xf4   : > { %v1913_v33 = vadd.f32 %v1404_v40, %v642_v7  ;;  %v643_v15 = vadd.f32 %v1837_v58, %v578_v17  ;;  %1539 = vpow2.f32 %v1258_v21  ;;  %v1920_v36 = vadd.f32 %v1368_v41, %v624_v29 }
  0xf5   : > { %v1263_v31 = vmul.f32 -1.442695, %v1907_v14  ;;  %v1924_v18 = vadd.f32 %v1400_v42, %v640_v19  ;;  %1541 = vpow2.f32 %v1274_v34  ;;  %v1929_v40 = vadd.f32 %v1373_v43, %v627_v30  ;;  %v1472_v22 = vpop.f32.mrb[8].mxu0 }
  0xf6   : > { %v1279_v20 = vmul.f32 -1.442695, %v1913_v33  ;;  %v1933_v21 = vadd.f32 %v1405_v46, %v643_v15  ;;  %v1488_v35 = vpop.f32.mrb[8].mxu1  ;;  %v1261_v41 = vmul.f32 -1.442695, %v1920_v36  ;;  %v506_v42 = vadd.f32 %v1818_v45, %v505_v8  ;;  %v518_v34 = vpop.f32.mrb[9].mxu0 }
  0xf7   : > { %1543 = vpow2.f32 %v1263_v31  ;;  %v1277_v57 = vmul.f32 -1.442695, %v1924_v18  ;;  %v582_v59 = vpop.f32.mrb[9].mxu1  ;;  %v1264_v23 = vmul.f32 -1.442695, %v1929_v40  ;;  %v570_v25 = vadd.f32 %v1818_v45, %v569_v6  ;;  %v1473_v46 = vpop.f32.mrb[10].mxu0 }
  0xf8   : > { %1545 = vpow2.f32 %v1279_v20  ;;  %v1940_v43 = vmul.f32 -1.442695, %v1933_v21  ;;  %v1489_v2 = vpop.f32.mrb[10].mxu1  ;;  %v1528_v1 = vpop.eup %1527  ;;  %v625_v7 = vadd.f32 %v1837_v58, %v506_v42  ;;  %v527_v16 = vadd.f32 %v1472_v22, %v1818_v45 }
  0xf9   : > { %1547 = vpow2.f32 %v1261_v41  ;;  %v591_v8 = vadd.f32 %v1488_v35, %v1818_v45  ;;  %v1946_v17 = vpop.f32.mrb[11].mxu0  ;;  %v1948_v29 = vpop.f32.mrb[11].mxu1  ;;  %v846_v30 = vadd.f32 1.0, %v1528_v1  ;;  %v641_v15 = vadd.f32 %v1837_v58, %v570_v25 }
  0xfa   : > { %v1530_v19 = vpop.eup %1529  ;;  %1549 = vpow2.f32 %v1277_v57  ;;  %v519_v6 = vadd.f32 %v1818_v45, %v518_v34  ;;  %v1954_v41 = vadd.f32 %v1369_v47, %v625_v7  ;;  %v630_v22 = vadd.f32 %v1837_v58, %v527_v16 }
  0xfb   : > { %v1532_v31 = vpop.eup %1531  ;;  %v862_v20 = vadd.f32 1.0, %v1530_v19  ;;  %1551 = vpow2.f32 %v1264_v23  ;;  %v1959_v1 = vadd.f32 %v1401_v48, %v641_v15  ;;  %v646_v57 = vadd.f32 %v1837_v58, %v591_v8 }
  0xfc   : > { %v1534_v35 = vpop.eup %1533  ;;  %1553 = vrcp.f32 %v846_v30  ;;  %v844_v42 = vadd.f32 1.0, %v1532_v31  ;;  %v1963_v23 = vmul.f32 -1.442695, %v1954_v41  ;;  %v1967_v26 = vadd.f32 %v1380_v49, %v630_v22 }
  0xfd   : > { %v1536_v25 = vpop.eup %1535  ;;  %1555 = vrcp.f32 %v862_v20  ;;  %v860_v34 = vadd.f32 1.0, %v1534_v35  ;;  %v1970_v16 = vmul.f32 -1.442695, %v1959_v1  ;;  %v1974_v27 = vadd.f32 %v1412_v52, %v646_v57  ;;  %v1976_v48 = vpop.f32.mrb[12].mxu0 }
  0xfe   : > { %v1538_v47 = vpop.eup %1537  ;;  %1557 = vrcp.f32 %v844_v42  ;;  %v847_v7 = vadd.f32 1.0, %v1536_v25  ;;  %v1978_v8 = vpop.f32.mrb[12].mxu1  ;;  %v1981_v49 = vmul.f32 -1.442695, %v1967_v26  ;;  %v628_v15 = vadd.f32 %v1837_v58, %v519_v6 }
  0xff   : > { %v1540_v19 = vpop.eup %1539  ;;  %1559 = vrcp.f32 %v860_v34  ;;  %v863_v30 = vadd.f32 1.0, %v1538_v47  ;;  %v1984_v31 = vpop.f32.mrb[13].mxu0  ;;  %v1989_v35 = vmul.f32 -1.442695, %v1974_v27  ;;  %v583_v42 = vadd.f32 %v1818_v45, %v582_v59 }
 0x100   : > { %v1986_v20 = vpop.f32.mrb[13].mxu1  ;;  %v1542_v22 = vpop.eup %1541  ;;  %1561 = vrcp.f32 %v847_v7  ;;  %v845_v52 = vadd.f32 1.0, %v1540_v19  ;;  %v1998_v47 = vadd.f32 %v1376_v53, %v628_v15  ;;  %v530_v10 = vadd.f32 %v1473_v46, %v1818_v45 }
 0x101   : > { %v1992_v57 = vpop.f32.mrb[14].mxu0  ;;  %v1994_v25 = vpop.f32.mrb[14].mxu1  ;;  %1563 = vrcp.f32 %v863_v30  ;;  %v861_v6 = vadd.f32 1.0, %v1542_v22  ;;  %v644_v4 = vadd.f32 %v1837_v58, %v583_v42  ;;  %v594_v63 = vadd.f32 %v1489_v2, %v1818_v45 }
 0x102   : > { %v1544_v34 = vpop.eup %1543  ;;  %v2001_v7 = vpop.f32.mrb[15].mxu0  ;;  %1565 = vrcp.f32 %v845_v52  ;;  %v1265_v22 = vmul.f32 -1.442695, %v1998_v47  ;;  %v631_v53 = vadd.f32 %v1837_v58, %v530_v10  ;;  %v522_v10 = vadd.f32 %v1818_v45, %v1946_v17 }
 0x103   : > { %v2003_v19 = vpop.f32.mrb[15].mxu1  ;;  %v1546_v5 = vpop.eup %1545  ;;  %v850_v59 = vadd.f32 1.0, %v1544_v34  ;;  %1567 = vrcp.f32 %v861_v6  ;;  %v2011_v61 = vadd.f32 %v1408_v54, %v644_v4  ;;  %v647_v52 = vadd.f32 %v1837_v58, %v594_v63 }
 0x104   : > { %v1548_v62 = vpop.eup %1547  ;;  %v866_v30 = vadd.f32 1.0, %v1546_v5  ;;  %v2016_v5 = vadd.f32 %v1381_v55, %v631_v53  ;;  %v629_v55 = vadd.f32 %v1837_v58, %v522_v10 }
 0x105   : > { %v1550_v15 = vpop.eup %1549  ;;  %1569 = vrcp.f32 %v850_v59  ;;  %v848_v46 = vadd.f32 1.0, %v1548_v62  ;;  %v1281_v6 = vmul.f32 -1.442695, %v2011_v61  ;;  %v2023_v54 = vadd.f32 %v1413_v60, %v647_v52 }
 0x106   : > { %v1552_v34 = vpop.eup %1551  ;;  %1571 = vrcp.f32 %v866_v30  ;;  %v864_v2 = vadd.f32 1.0, %v1550_v15  ;;  %v1268_v32 = vmul.f32 -1.442695, %v2016_v5  ;;  %v586_v60 = vadd.f32 %v1818_v45, %v1948_v29 }
 0x107   : > { %v1554_v42 = vpop.eup %1553  ;;  %1573 = vrcp.f32 %v848_v46  ;;  %v851_v62 = vadd.f32 1.0, %v1552_v34  ;;  %v1284_v37 = vmul.f32 -1.442695, %v2023_v54  ;;  %v2218_v15 = vunpack.c.h.bf16 %v1799_v38 }
 0x108   : > { %v1556_v63 = vpop.eup %1555  ;;  %v942_v4 = vmul.f32 %v1554_v42, %v1861_v3  ;;  %1575 = vrcp.f32 %v864_v2  ;;  %v645_v29 = vadd.f32 %v1837_v58, %v586_v60 }
 0x109   : > { %v1558_v59 = vpop.eup %1557  ;;  %v958_v17 = vmul.f32 %v1556_v63, %v1863_v0  ;;  %1577 = vrcp.f32 %v851_v62  ;;  %v2042_v46 = vadd.f32 %v2218_v15, %v629_v55 }
 0x10a   : > { %v1560_v3 = vpop.eup %1559  ;;  %v1328_v30 = vpack.c.bf16 %v942_v4, %v942_v4  ;;  %v940_v53 = vmul.f32 %v1558_v59, %v1867_v9  ;;  %1579 = vpow2.f32 %v1940_v43  ;;  %v543_v4 = vadd.f32 %v1976_v48, %v1818_v45 }
 0x10b   : > { %v1562_v52 = vpop.eup %1561  ;;  %v1344_v34 = vpack.c.bf16 %v958_v17, %v958_v17  ;;  %v956_v0 = vmul.f32 %v1560_v3, %v1869_v11  ;;  %1581 = vpow2.f32 %v1963_v23  ;;  %v1266_v38 = vmul.f32 -1.442695, %v2042_v46 }
 0x10c   : > { %v1564_v2 = vpop.eup %1563  ;;  %1103 = vst.msk [vmem:[%s2032_s15 + $0x8] sm:$0xf] %vm1100_vm1, %v1328_v30  ;;  %v1326_v10 = vpack.c.bf16 %v940_v53, %v940_v53  ;;  %v943_v9 = vmul.f32 %v1562_v52, %v1877_v24  ;;  %1583 = vpow2.f32 %v1970_v16  ;;  %v2219_v23 = vunpack.c.h.bf16 %v1802_v39 }
 0x10d   : > { %v1566_v43 = vpop.eup %1565  ;;  %1119 = vst.msk [vmem:[%s2032_s15 + $0x48] sm:$0xf] %vm1100_vm1, %v1344_v34  ;;  %v1342_v11 = vpack.c.bf16 %v956_v0, %v956_v0  ;;  %v959_v42 = vmul.f32 %v1564_v2, %v1881_v28  ;;  %1585 = vpow2.f32 %v1981_v49  ;;  %v634_v48 = vadd.f32 %v1837_v58, %v543_v4 }
 0x10e   : > { %v2058_v62 = vadd.f32 %v2219_v23, %v645_v29  ;;  %v1568_v63 = vpop.eup %1567  ;;  %1101 = vst.msk [vmem:[%s2032_s15] sm:$0xf] %vm1100_vm1, %v1326_v10  ;;  %v1329_v24 = vpack.c.bf16 %v943_v9, %v943_v9  ;;  %v941_v16 = vmul.f32 %v1566_v43, %v1887_v12  ;;  %1587 = vpow2.f32 %v1989_v35 }
 0x10f   : > { %v1570_v28 = vpop.eup %1569  ;;  %1117 = vst.msk [vmem:[%s2032_s15 + $0x40] sm:$0xf] %vm1100_vm1, %v1342_v11  ;;  %v1345_v49 = vpack.c.bf16 %v959_v42, %v959_v42  ;;  %v957_v39 = vmul.f32 %v1568_v63, %v1891_v13  ;;  %1589 = vpow2.f32 %v1265_v22  ;;  %v607_v22 = vadd.f32 %v1978_v8, %v1818_v45 }
 0x110   : > { %v1282_v55 = vmul.f32 -1.442695, %v2058_v62  ;;  %v1572_v59 = vpop.eup %1571  ;;  %1104 = vst.msk [vmem:[%s2032_s15 + $0xc] sm:$0xf] %vm1100_vm1, %v1329_v24  ;;  %v1327_v12 = vpack.c.bf16 %v941_v16, %v941_v16  ;;  %v946_v17 = vmul.f32 %v1570_v28, %v1907_v14  ;;  %1591 = vpow2.f32 %v1281_v6 }
 0x111   : > { %v1574_v35 = vpop.eup %1573  ;;  %1120 = vst.msk [vmem:[%s2032_s15 + $0x4c] sm:$0xf] %vm1100_vm1, %v1345_v49  ;;  %v1343_v60 = vpack.c.bf16 %v957_v39, %v957_v39  ;;  %v962_v13 = vmul.f32 %v1572_v59, %v1913_v33  ;;  %1593 = vpow2.f32 %v1268_v32  ;;  %v2220_v6 = vunpack.c.l.bf16 %v1813_v44 }
 0x112   : > { %v1576_v3 = vpop.eup %1575  ;;  %1102 = vst.msk [vmem:[%s2032_s15 + $0x4] sm:$0xf] %vm1100_vm1, %v1327_v12  ;;  %v1332_v30 = vpack.c.bf16 %v946_v17, %v946_v17  ;;  %v944_v14 = vmul.f32 %v1574_v35, %v1920_v36  ;;  %1595 = vpow2.f32 %v1284_v37  ;;  %v650_v8 = vadd.f32 %v1837_v58, %v607_v22 }
 0x113   : > { %v2084_v53 = vadd.f32 %v2220_v6, %v634_v48  ;;  %v1578_v15 = vpop.eup %1577  ;;  %1118 = vst.msk [vmem:[%s2032_s15 + $0x44] sm:$0xf] %vm1100_vm1, %v1343_v60  ;;  %v1348_v33 = vpack.c.bf16 %v962_v13, %v962_v13  ;;  %v960_v32 = vmul.f32 %v1576_v3, %v1924_v18  ;;  %1597 = vpow2.f32 %v1266_v38 }
 0x114   : > { %v1580_v52 = vpop.eup %1579  ;;  %1107 = vst.msk [vmem:[%s2032_s15 + $0x18] sm:$0xf] %vm1100_vm1, %v1332_v30  ;;  %v1330_v36 = vpack.c.bf16 %v944_v14, %v944_v14  ;;  %v947_v37 = vmul.f32 %v1578_v15, %v1929_v40  ;;  %1599 = vpow2.f32 %v1282_v55  ;;  %v2221_v18 = vunpack.c.l.bf16 %v1825_v50 }
 0x115   : > { %v1271_v34 = vmul.f32 -1.442695, %v2084_v53  ;;  %v1582_v0 = vpop.eup %1581  ;;  %1123 = vst.msk [vmem:[%s2032_s15 + $0x58] sm:$0xf] %vm1100_vm1, %v1348_v33  ;;  %v1346_v29 = vpack.c.bf16 %v960_v32, %v960_v32  ;;  %v867_v2 = vadd.f32 1.0, %v1580_v52  ;;  %v535_v9 = vadd.f32 %v1818_v45, %v1984_v31 }
 0x116   : > { %v2098_v10 = vadd.f32 %v2221_v18, %v650_v8  ;;  %v1584_v38 = vpop.eup %1583  ;;  %1105 = vst.msk [vmem:[%s2032_s15 + $0x10] sm:$0xf] %vm1100_vm1, %v1330_v36  ;;  %v1333_v40 = vpack.c.bf16 %v947_v37, %v947_v37  ;;  %v849_v43 = vadd.f32 1.0, %v1582_v0  ;;  %v599_v11 = vadd.f32 %v1818_v45, %v1986_v20 }
 0x117   : > { %1601 = vpow2.f32 %v1271_v34  ;;  %v1586_v42 = vpop.eup %1585  ;;  %1121 = vst.msk [vmem:[%s2032_s15 + $0x50] sm:$0xf] %vm1100_vm1, %v1346_v29  ;;  %v865_v23 = vadd.f32 1.0, %v1584_v38  ;;  %v632_v63 = vadd.f32 %v1837_v58, %v535_v9  ;;  %v1421_v24 = vunpack.c.h.bf16 %v1825_v50 }
 0x118   : > { %1603 = vrcp.f32 %v867_v2  ;;  %v1588_v16 = vpop.eup %1587  ;;  %1108 = vst.msk [vmem:[%s2032_s15 + $0x1c] sm:$0xf] %vm1100_vm1, %v1333_v40  ;;  %v854_v31 = vadd.f32 1.0, %v1586_v42  ;;  %v648_v4 = vadd.f32 %v1837_v58, %v599_v11  ;;  %v546_v28 = vadd.f32 %v1992_v57, %v1818_v45 }
 0x119   : > { %1605 = vrcp.f32 %v849_v43  ;;  %v1590_v20 = vpop.eup %1589  ;;  %v870_v49 = vadd.f32 1.0, %v1588_v16  ;;  %v2222_v39 = vunpack.c.l.bf16 %v1828_v51  ;;  %v610_v50 = vadd.f32 %v1994_v25, %v1818_v45 }
 0x11a   : > { %1607 = vrcp.f32 %v865_v23  ;;  %v1592_v59 = vpop.eup %1591  ;;  %v852_v12 = vadd.f32 1.0, %v1590_v20  ;;  %v2223_v17 = vunpack.c.l.bf16 %v1835_v56  ;;  %v635_v35 = vadd.f32 %v1837_v58, %v546_v28 }
 0x11b   : > { %v2117_v55 = vadd.f32 %v2222_v39, %v632_v63  ;;  %1609 = vrcp.f32 %v854_v31  ;;  %v1594_v57 = vpop.eup %1593  ;;  %v868_v60 = vadd.f32 1.0, %v1592_v59  ;;  %v651_v13 = vadd.f32 %v1837_v58, %v610_v50 }
 0x11c   : > { %v2123_v48 = vadd.f32 %v2223_v17, %v648_v4  ;;  %1611 = vrcp.f32 %v870_v49  ;;  %v1385_v22 = vunpack.c.h.bf16 %v1828_v51  ;;  %v1596_v3 = vpop.eup %1595  ;;  %v855_v30 = vadd.f32 1.0, %v1594_v57 }
 0x11d   : > { %1613 = vrcp.f32 %v852_v12  ;;  %v2224_v25 = vunpack.c.h.bf16 %v1813_v44  ;;  %v1417_v6 = vunpack.c.h.bf16 %v1835_v56  ;;  %v1598_v15 = vpop.eup %1597  ;;  %v871_v33 = vadd.f32 1.0, %v1596_v3 }
 0x11e   : > { %1615 = vrcp.f32 %v868_v60  ;;  %v2133_v32 = vadd.f32 %v1421_v24, %v651_v13  ;;  %v538_v8 = vadd.f32 %v1818_v45, %v2001_v7  ;;  %v1600_v52 = vpop.eup %1599  ;;  %v853_v51 = vadd.f32 1.0, %v1598_v15 }
 0x11f   : > { %v2130_v14 = vadd.f32 %v2224_v25, %v635_v35  ;;  %1617 = vrcp.f32 %v855_v30  ;;  %v1287_v36 = vmul.f32 -1.442695, %v2098_v10  ;;  %v602_v44 = vadd.f32 %v1818_v45, %v2003_v19 }
 0x120   : > { %1619 = vrcp.f32 %v871_v33  ;;  %v869_v37 = vadd.f32 1.0, %v1600_v52  ;;  %v633_v56 = vadd.f32 %v1837_v58, %v538_v8  ;;  %v1269_v0 = vmul.f32 -1.442695, %v2117_v55 }
 0x121   : > { %v1602_v34 = vpop.eup %1601  ;;  %1621 = vrcp.f32 %v853_v51  ;;  %v649_v29 = vadd.f32 %v1837_v58, %v602_v44  ;;  %v1285_v18 = vmul.f32 -1.442695, %v2123_v48  ;;  %v1272_v19 = vmul.f32 -1.442695, %v2130_v14 }
 0x122   : > { %v1604_v2 = vpop.eup %1603  ;;  %1623 = vrcp.f32 %v869_v37  ;;  %v858_v7 = vadd.f32 1.0, %v1602_v34  ;;  %v2144_v9 = vadd.f32 %v1385_v22, %v633_v56  ;;  %v1288_v58 = vmul.f32 -1.442695, %v2133_v32 }
 0x123   : > { %v1606_v38 = vpop.eup %1605  ;;  %v963_v45 = vmul.f32 %v1604_v2, %v1933_v21  ;;  %1625 = vpow2.f32 %v1287_v36  ;;  %v2148_v40 = vadd.f32 %v1417_v6, %v649_v29 }
 0x124   : > { %v1608_v43 = vpop.eup %1607  ;;  %v945_v11 = vmul.f32 %v1606_v38, %v1954_v41  ;;  %1627 = vrcp.f32 %v858_v7  ;;  %v1270_v21 = vmul.f32 -1.442695, %v2144_v9 }
 0x125   : > { %v1610_v42 = vpop.eup %1609  ;;  %v1349_v23 = vpack.c.bf16 %v963_v45, %v963_v45  ;;  %v961_v63 = vmul.f32 %v1608_v43, %v1959_v1  ;;  %1629 = vpow2.f32 %v1269_v0  ;;  %v1286_v4 = vmul.f32 -1.442695, %v2148_v40 }
 0x126   : > { %v1612_v24 = vpop.eup %1611  ;;  %v1331_v16 = vpack.c.bf16 %v945_v11, %v945_v11  ;;  %v950_v31 = vmul.f32 %v1610_v42, %v1967_v26  ;;  %1631 = vpow2.f32 %v1285_v18 }
 0x127   : > { %v1614_v41 = vpop.eup %1613  ;;  %1124 = vst.msk [vmem:[%s2032_s15 + $0x5c] sm:$0xf] %vm1100_vm1, %v1349_v23  ;;  %v1347_v28 = vpack.c.bf16 %v961_v63, %v961_v63  ;;  %v966_v20 = vmul.f32 %v1612_v24, %v1974_v27  ;;  %1633 = vpow2.f32 %v1272_v19 }
 0x128   : > { %v1616_v1 = vpop.eup %1615  ;;  %1106 = vst.msk [vmem:[%s2032_s15 + $0x14] sm:$0xf] %vm1100_vm1, %v1331_v16  ;;  %v1336_v49 = vpack.c.bf16 %v950_v31, %v950_v31  ;;  %v948_v39 = vmul.f32 %v1614_v41, %v1998_v47  ;;  %1635 = vpow2.f32 %v1288_v58 }
 0x129   : > { %v1618_v26 = vpop.eup %1617  ;;  %1122 = vst.msk [vmem:[%s2032_s15 + $0x54] sm:$0xf] %vm1100_vm1, %v1347_v28  ;;  %v1352_v50 = vpack.c.bf16 %v966_v20, %v966_v20  ;;  %v964_v59 = vmul.f32 %v1616_v1, %v2011_v61  ;;  %1637 = vpow2.f32 %v1270_v21 }
 0x12a   : > { %v1620_v12 = vpop.eup %1619  ;;  %1111 = vst.msk [vmem:[%s2032_s15 + $0x28] sm:$0xf] %vm1100_vm1, %v1336_v49  ;;  %v1334_v27 = vpack.c.bf16 %v948_v39, %v948_v39  ;;  %v951_v17 = vmul.f32 %v1618_v26, %v2016_v5  ;;  %1639 = vpow2.f32 %v1286_v4 }
 0x12b   : > { %v1622_v35 = vpop.eup %1621  ;;  %1127 = vst.msk [vmem:[%s2032_s15 + $0x68] sm:$0xf] %vm1100_vm1, %v1352_v50  ;;  %v1350_v47 = vpack.c.bf16 %v964_v59, %v964_v59  ;;  %v967_v57 = vmul.f32 %v1620_v12, %v2023_v54 }
 0x12c   : > { %v1624_v60 = vpop.eup %1623  ;;  %1109 = vst.msk [vmem:[%s2032_s15 + $0x20] sm:$0xf] %vm1100_vm1, %v1334_v27  ;;  %v1337_v61 = vpack.c.bf16 %v951_v17, %v951_v17  ;;  %v949_v13 = vmul.f32 %v1622_v35, %v2042_v46 }
 0x12d   : > { %v1626_v22 = vpop.eup %1625  ;;  %1125 = vst.msk [vmem:[%s2032_s15 + $0x60] sm:$0xf] %vm1100_vm1, %v1350_v47  ;;  %v1353_v5 = vpack.c.bf16 %v967_v57, %v967_v57  ;;  %v965_v3 = vmul.f32 %v1624_v60, %v2058_v62 }
 0x12e   : > { %v1628_v30 = vpop.eup %1627  ;;  %1112 = vst.msk [vmem:[%s2032_s15 + $0x2c] sm:$0xf] %vm1100_vm1, %v1337_v61  ;;  %v1335_v25 = vpack.c.bf16 %v949_v13, %v949_v13  ;;  %v874_v6 = vadd.f32 1.0, %v1626_v22 }
 0x12f   : > { %v1630_v54 = vpop.eup %1629  ;;  %1128 = vst.msk [vmem:[%s2032_s15 + $0x6c] sm:$0xf] %vm1100_vm1, %v1353_v5  ;;  %v1351_v15 = vpack.c.bf16 %v965_v3, %v965_v3  ;;  %v954_v33 = vmul.f32 %v1628_v30, %v2084_v53 }
 0x130   : > { %v1632_v46 = vpop.eup %1631  ;;  %1110 = vst.msk [vmem:[%s2032_s15 + $0x24] sm:$0xf] %vm1100_vm1, %v1335_v25  ;;  %1641 = vrcp.f32 %v874_v6  ;;  %v856_v8 = vadd.f32 1.0, %v1630_v54 }
 0x131   : > { %v1634_v52 = vpop.eup %1633  ;;  %1126 = vst.msk [vmem:[%s2032_s15 + $0x64] sm:$0xf] %vm1100_vm1, %v1351_v15  ;;  %v1340_v62 = vpack.c.bf16 %v954_v33, %v954_v33  ;;  %v872_v51 = vadd.f32 1.0, %v1632_v46 }
 0x132   : > { %v1636_v36 = vpop.eup %1635  ;;  %1643 = vrcp.f32 %v856_v8  ;;  %v859_v44 = vadd.f32 1.0, %v1634_v52 }
 0x133   : > { %v1638_v37 = vpop.eup %1637  ;;  %1115 = vst.msk [vmem:[%s2032_s15 + $0x38] sm:$0xf] %vm1100_vm1, %v1340_v62  ;;  %1645 = vrcp.f32 %v872_v51  ;;  %v875_v56 = vadd.f32 1.0, %v1636_v36 }
 0x134   : > { %v1640_v34 = vpop.eup %1639  ;;  %1647 = vrcp.f32 %v859_v44  ;;  %v857_v53 = vadd.f32 1.0, %v1638_v37 }
 0x135   : > { %1649 = vrcp.f32 %v875_v56  ;;  %v873_v0 = vadd.f32 1.0, %v1640_v34 }
 0x136   : > { %1651 = vrcp.f32 %v857_v53 }
 0x137   : > { %1653 = vrcp.f32 %v873_v0 }
 0x13a   : > { %v1642_v29 = vpop.eup %1641 }
 0x13b   : > { %v970_v2 = vmul.f32 %v1642_v29, %v2098_v10 }
 0x13c   : > { %v1644_v7 = vpop.eup %1643 }
 0x13d   : > { %v1646_v18 = vpop.eup %1645  ;;  %v1356_v38 = vpack.c.bf16 %v970_v2, %v970_v2  ;;  %v952_v45 = vmul.f32 %v1644_v7, %v2117_v55 }
 0x13e   : > { %v1648_v19 = vpop.eup %1647  ;;  %v968_v43 = vmul.f32 %v1646_v18, %v2123_v48 }
 0x13f   : > { %v1650_v11 = vpop.eup %1649  ;;  %1131 = vst.msk [vmem:[%s2032_s15 + $0x78] sm:$0xf] %vm1100_vm1, %v1356_v38  ;;  %v1338_v58 = vpack.c.bf16 %v952_v45, %v952_v45  ;;  %v955_v42 = vmul.f32 %v1648_v19, %v2130_v14 }
 0x140   : > { %v1652_v10 = vpop.eup %1651  ;;  %v1354_v23 = vpack.c.bf16 %v968_v43, %v968_v43  ;;  %v971_v63 = vmul.f32 %v1650_v11, %v2133_v32 }
 0x141   : > { %v1654_v21 = vpop.eup %1653  ;;  %1113 = vst.msk [vmem:[%s2032_s15 + $0x30] sm:$0xf] %vm1100_vm1, %v1338_v58  ;;  %v1341_v55 = vpack.c.bf16 %v955_v42, %v955_v42  ;;  %v953_v24 = vmul.f32 %v1652_v10, %v2144_v9 }
 0x142   : > { %1129 = vst.msk [vmem:[%s2032_s15 + $0x70] sm:$0xf] %vm1100_vm1, %v1354_v23  ;;  %v1357_v48 = vpack.c.bf16 %v971_v63, %v971_v63  ;;  %v969_v16 = vmul.f32 %v1654_v21, %v2148_v40 }
 0x143   : > { %1116 = vst.msk [vmem:[%s2032_s15 + $0x3c] sm:$0xf] %vm1100_vm1, %v1341_v55  ;;  %v1339_v31 = vpack.c.bf16 %v953_v24, %v953_v24 }
 0x144   : > { %1132 = vst.msk [vmem:[%s2032_s15 + $0x7c] sm:$0xf] %vm1100_vm1, %v1357_v48  ;;  %v1355_v14 = vpack.c.bf16 %v969_v16, %v969_v16 }
 0x145   : > { %1114 = vst.msk [vmem:[%s2032_s15 + $0x34] sm:$0xf] %vm1100_vm1, %v1339_v31 }
 0x146   : > { %1130 = vst.msk [vmem:[%s2032_s15 + $0x74] sm:$0xf] %vm1100_vm1, %v1355_v14 }
 0x147 PF: > { %s15_s18 = sadd.s32 1, %s1661_s18  }
 0x148   : > { %p12_p4 = scmp.ge.s32.totalorder %s15_s18, 4  }
 0x14a   :  { %14 = sbr.rel (!%p12_p4) target bundleno = 1 (0x1), region = 76 }

// kernel: dual_text_controlled_unet_forward.11
= control target key start
LH: loop header
LB: loop body
LE: loop exit
PB: predicated region body
PF: predicated region fallthrough
CT: control target
= control target key end

     0   :  { %s3219_s24 = smov 0   ;;  %s3848_s0 = inlined_call_operand.vmem [shape: bf16[2,256,64], index: 0, kind: input, shape index: {}]   ;;  %s3849_s1 = inlined_call_operand.vmem [shape: bf16[2,16,32], index: 1, kind: input, shape index: {}]   ;;  %s3850_s2 = inlined_call_operand.vmem [shape: bf16[64,32], index: 2, kind: input, shape index: {}]   ;;  %s3851_s3 = inlined_call_operand.vmem [shape: bf16[32,64], index: 3, kind: input, shape index: {}]   ;;  %s3852_s4 = inlined_call_operand.vmem [shape: bf16[32,64], index: 4, kind: input, shape index: {}]   ;;  %s3853_s5 = inlined_call_operand.vmem [shape: bf16[64,64], index: 5, kind: input, shape index: {}]   ;;  %s3854_s6 = inlined_call_operand.vmem [shape: f32[1,64], index: 6, kind: input, shape index: {}]   ;;  %s3855_s7 = inlined_call_operand.vmem [shape: bf16[2,256,64], index: 7, kind: output, shape index: {}]  }
   0x1 LB: > { %s2429_s25 = sadd.s32 4294967295, %s3174_s24   ;;  %p2433_p0 = scmp.ge.s32.totalorder %s3174_s24, 1  ;;  %s3174_s24 = sphi %s3219_s24, %s17_s24  }
   0x2   : > { %p247_p1 = scmp.lt.s32.totalorder %s3174_s24, 3 }
   0x4   : > { %p248_p2 = pnand %p2433_p0, %p247_p1 }
   0x5   : > { %v2979_v0 = vld [vmem:[%s3850_s2] sm:$0xff] (!%p248_p2)   ;;  %v3176_v1 = vmov (!%p248_p2), 0.0   ;;  %v2981_v3 = vld [vmem:[%s3850_s2 + $0x8] sm:$0xff] (!%p248_p2)   ;;  %vm3177_vm0 = vmmov (!%p248_p2), 0   ;;  %p284_p3 = scmp.lt.s32.totalorder (!%p248_p2), %s2429_s25, 1  ;;  %v2984_v5 = vld [vmem:[%s3850_s2 + $0x10] sm:$0xff] (!%p248_p2)  }
   0x6   : > { %251 = sbr.rel (%p248_p2) target bundleno = 1528 (0x5f8), region = 48  ;;  %2790 = vmatprep.subr.bf16.mxu1 (!%p248_p2), %v3176_v1  ;;  %v2980_v2 = vld [vmem:[%s3851_s3] sm:$0xff] (!%p248_p2)   ;;  %2750 = vmatprep.subr.bf16.mxu0 (!%p248_p2), %v2979_v0  ;;  %v2982_v4 = vld [vmem:[%s3851_s3 + $0x8] sm:$0xff] (!%p248_p2)   ;;  %vm677_vm1 = vcmask (!%p248_p2), 261120   ;;  %v2985_v6 = vld [vmem:[%s3850_s2 + $0x18] sm:$0xff] (!%p248_p2)   ;;  %vm446_vm2 = vcmask (!%p248_p2), 523264  }
   0x7   : > { %2794 = vmatprep.mubr.msk.bf16.mxu1 (!%p248_p2), %vm3177_vm0, %v3176_v1  ;;  %2791 = vmatpush3.bf16.msra.mxu1 (!%p248_p2), %v2980_v2  ;;  %vm2961_vm3 = vmpackc.low (!%p248_p2), %vm677_vm1, %vm677_vm1  ;;  %vm1049_vm4 = vcmask (!%p248_p2), 130048   ;;  %s3178_s23 = smov (!%p248_p2), 96   ;;  %vm2329_vm5 = vcmask (!%p248_p2), 519168  }
   0x8   : > { %2751 = vmatpush3.bf16.msra.mxu0 (!%p248_p2), %v2979_v0  ;;  %2792 = vmatprep.subr.bf16.mxu1 (!%p248_p2), %v3176_v1 }
   0x9   : > { %2752 = vmatprep.subr.bf16.mxu0 (!%p248_p2), %v2981_v3 }
   0xb   : > { %2793 = vmatpush3.bf16.msra.mxu1 (!%p248_p2), %v2982_v4 }
   0xc   : > { %2753 = vmatpush3.bf16.msra.mxu0 (!%p248_p2), %v2981_v3 }
   0xd   : > { %s3857_s25 = smov (!%p284_p3, %s2429_s25), 1  ;;  %2754 = vmatprep.subr.bf16.mxu0 %v2984_v5 }
   0xe   : > { %s2603_s13 = sshll.u32 %s3857_s25, 7  ;;  %s2604_s14 = sshll.u32 %s3857_s25, 3 }
   0xf   : > { %s3254_s19 = scalar_lea.vmem %s3848_s0, %s2603_s13  ;;  %s293_s22 = scalar_lea.vmem %s3849_s1, %s2604_s14 }
  0x10   : > { %v2983_v7 = vld [vmem:[%s293_s22] sm:$0xff]   ;;  %2755 = vmatpush3.bf16.msra.mxu0 %v2984_v5  ;;  %v302_v9 = vld [vmem:[%s3254_s19 + $0x8] sm:$0xff]   ;;  %v304_v10 = vld [vmem:[%s3254_s19 + $0x10] sm:$0xff]   ;;  %s3748_s20 = scalar_lea.vmem %s3855_s7, %s2603_s13 }
  0x11   : > { %v300_v8 = vld [vmem:[%s3254_s19] sm:$0xff]   ;;  %2795 = vmatmul.mubr.msk.bf16.vlgmr.msra.gmra.mrb[0].mxu1 %vm677_vm1, %v2983_v7  ;;  %2756 = vmatprep.subr.bf16.mxu0 %v2985_v6  ;;  %v306_v11 = vld [vmem:[%s3254_s19 + $0x18] sm:$0xff]   ;;  %v310_v13 = vld [vmem:[%s3254_s19 + $0x28] sm:$0xff]  }
  0x12   : > { %2758 = vmatprep.mubr.msk.bf16.mxu0 %vm446_vm2, %v300_v8  ;;  %v308_v12 = vld [vmem:[%s3254_s19 + $0x20] sm:$0xff]   ;;  %v312_v14 = vld [vmem:[%s3254_s19 + $0x30] sm:$0xff]   ;;  %v314_v15 = vld [vmem:[%s3254_s19 + $0x38] sm:$0xff]  }
  0x13   : > { %v316_v16 = vld [vmem:[%s3254_s19 + $0x40] sm:$0xff]   ;;  %v318_v17 = vld [vmem:[%s3254_s19 + $0x48] sm:$0xff]   ;;  %v320_v18 = vld [vmem:[%s3254_s19 + $0x50] sm:$0xff]  }
  0x14   : > { %2757 = vmatpush3.bf16.msra.mxu0 %v2985_v6  ;;  %v322_v19 = vld [vmem:[%s3254_s19 + $0x58] sm:$0xff]   ;;  %v324_v20 = vld [vmem:[%s3254_s19 + $0x60] sm:$0xff]   ;;  %v326_v21 = vld [vmem:[%s3254_s19 + $0x68] sm:$0xff]  }
  0x15   : > { %v328_v22 = vld [vmem:[%s3254_s19 + $0x70] sm:$0xff]   ;;  %v330_v23 = vld [vmem:[%s3254_s19 + $0x78] sm:$0xff]  }
  0x17   : > { %2759 = vmatmul.mubr.msk.bf16.vlgmr.msra.gmra.mrb[0].mxu0 %vm446_vm2, %v302_v9 }
  0x18   : > { %2762 = vmatprep.mubr.msk.bf16.mxu0 %vm446_vm2, %v304_v10 }
  0x1f   : > { %2763 = vmatmul.mubr.msk.bf16.gmra.mrb[4].mxu0 %vm446_vm2, %v306_v11 }
  0x20   : > { %2766 = vmatprep.mubr.msk.bf16.mxu0 %vm446_vm2, %v308_v12 }
  0x27   : > { %2767 = vmatmul.mubr.msk.bf16.gmra.mrb[8].mxu0 %vm446_vm2, %v310_v13 }
  0x28   : > { %2770 = vmatprep.mubr.msk.bf16.mxu0 %vm446_vm2, %v312_v14 }
  0x2f   : > { %2771 = vmatmul.mubr.msk.bf16.gmra.mrb[12].mxu0 %vm446_vm2, %v314_v15 }
  0x30   : > { %2774 = vmatprep.mubr.msk.bf16.mxu0 %vm446_vm2, %v316_v16 }
  0x37   : > { %2775 = vmatmul.mubr.msk.bf16.gmra.mrb[16].mxu0 %vm446_vm2, %v318_v17 }
  0x38   : > { %2778 = vmatprep.mubr.msk.bf16.mxu0 %vm446_vm2, %v320_v18 }
  0x3f   : > { %2779 = vmatmul.mubr.msk.bf16.gmra.mrb[20].mxu0 %vm446_vm2, %v322_v19 }
  0x40   : > { %2782 = vmatprep.mubr.msk.bf16.mxu0 %vm446_vm2, %v324_v20 }
  0x47   : > { %2783 = vmatmul.mubr.msk.bf16.gmra.mrb[24].mxu0 %vm446_vm2, %v326_v21 }
  0x48   : > { %2786 = vmatprep.mubr.msk.bf16.mxu0 %vm446_vm2, %v328_v22 }
  0x4f   : > { %2787 = vmatmul.mubr.msk.bf16.gmra.mrb[28].mxu0 %vm446_vm2, %v330_v23 }
  0xe4   : > { %v715_v24 = vpop.f32.mrb[0].mxu1 }
  0xe5   : > { %v2796_v25 = vpop.f32.mrb[1].mxu1 }
  0xe6   : > { %v718_v26 = vpop.f32.mrb[2].mxu1 }
  0xe7   : > { %v3294_v27 = vpack.c.bf16 %v718_v26, %v715_v24  ;;  %v2797_v28 = vpop.f32.mrb[3].mxu1 }
  0xe9   : > { %2962 = vmatprep.subr.msk.bf16.mxu1 %vm2961_vm3, %v3294_v27 }
  0xea   : > { %2965 = vmatpush3.bf16.xpose.msk.msra.mxu1 %vm2961_vm3, %v3294_v27  ;;  %v2760_v29 = vpop.f32.mrb[0].mxu0 }
  0xeb   : > { %v529_v30 = vpop.f32.mrb[1].mxu0 }
  0xec   : > { %v2761_v31 = vpop.f32.mrb[2].mxu0  ;;  %2802 = vmatprep.mubr.msk.f32.mxu1 %vm677_vm1, %v529_v30 }
  0xed   : > { %v532_v32 = vpop.f32.mrb[3].mxu0 }
  0xf1   : > { %2803 = vmatmul.mubr.msk.f32.vlgmr.msra.gmra.mrb[4].mxu1 %vm677_vm1, %v532_v32 }
  0xf2   : > { %2805 = vmatprep.mubr.msk.f32.mxu1 %vm677_vm1, %v2760_v29  ;;  %v2764_v33 = vpop.f32.mrb[4].mxu0 }
  0xf3   : > { %v545_v34 = vpop.f32.mrb[5].mxu0 }
  0xf4   : > { %v2765_v35 = vpop.f32.mrb[6].mxu0 }
  0xf5   : > { %2806 = vmatmul.mubr.msk.f32.gmra.mrb[6].mxu1 %vm677_vm1, %v2761_v31  ;;  %v548_v36 = vpop.f32.mrb[7].mxu0 }
  0xf6   : > { %2808 = vmatprep.mubr.msk.f32.mxu1 %vm677_vm1, %v545_v34 }
  0xf9   : > { %2809 = vmatmul.mubr.msk.f32.gmra.mrb[8].mxu1 %vm677_vm1, %v548_v36 }
  0xfa   : > { %2811 = vmatprep.mubr.msk.f32.mxu1 %vm677_vm1, %v2764_v33  ;;  %v2768_v37 = vpop.f32.mrb[8].mxu0 }
  0xfb   : > { %v561_v38 = vpop.f32.mrb[9].mxu0 }
  0xfc   : > { %v2769_v39 = vpop.f32.mrb[10].mxu0 }
  0xfd   : > { %2812 = vmatmul.mubr.msk.f32.gmra.mrb[10].mxu1 %vm677_vm1, %v2765_v35  ;;  %v564_v40 = vpop.f32.mrb[11].mxu0 }
  0xfe   : > { %2814 = vmatprep.mubr.msk.f32.mxu1 %vm677_vm1, %v561_v38 }
 0x101   : > { %2815 = vmatmul.mubr.msk.f32.gmra.mrb[12].mxu1 %vm677_vm1, %v564_v40 }
 0x102   : > { %2817 = vmatprep.mubr.msk.f32.mxu1 %vm677_vm1, %v2768_v37  ;;  %v2772_v41 = vpop.f32.mrb[12].mxu0 }
 0x103   : > { %v577_v42 = vpop.f32.mrb[13].mxu0 }
 0x104   : > { %v2773_v43 = vpop.f32.mrb[14].mxu0 }
 0x105   : > { %2818 = vmatmul.mubr.msk.f32.gmra.mrb[14].mxu1 %vm677_vm1, %v2769_v39  ;;  %v580_v44 = vpop.f32.mrb[15].mxu0 }
 0x106   : > { %2820 = vmatprep.mubr.msk.f32.mxu1 %vm677_vm1, %v577_v42 }
 0x109   : > { %2821 = vmatmul.mubr.msk.f32.gmra.mrb[16].mxu1 %vm677_vm1, %v580_v44 }
 0x10a   : > { %2823 = vmatprep.mubr.msk.f32.mxu1 %vm677_vm1, %v2772_v41  ;;  %v2776_v45 = vpop.f32.mrb[16].mxu0 }
 0x10b   : > { %v593_v46 = vpop.f32.mrb[17].mxu0 }
 0x10c   : > { %v2777_v47 = vpop.f32.mrb[18].mxu0 }
 0x10d   : > { %2824 = vmatmul.mubr.msk.f32.gmra.mrb[18].mxu1 %vm677_vm1, %v2773_v43  ;;  %v596_v48 = vpop.f32.mrb[19].mxu0 }
 0x10e   : > { %2826 = vmatprep.mubr.msk.f32.mxu1 %vm677_vm1, %v593_v46 }
 0x111   : > { %2827 = vmatmul.mubr.msk.f32.gmra.mrb[20].mxu1 %vm677_vm1, %v596_v48 }
 0x112   : > { %2829 = vmatprep.mubr.msk.f32.mxu1 %vm677_vm1, %v2776_v45  ;;  %v2780_v49 = vpop.f32.mrb[20].mxu0 }
 0x113   : > { %v609_v50 = vpop.f32.mrb[21].mxu0 }
 0x114   : > { %v2781_v51 = vpop.f32.mrb[22].mxu0 }
 0x115   : > { %2830 = vmatmul.mubr.msk.f32.gmra.mrb[22].mxu1 %vm677_vm1, %v2777_v47  ;;  %v612_v52 = vpop.f32.mrb[23].mxu0 }
 0x116   : > { %2832 = vmatprep.mubr.msk.f32.mxu1 %vm677_vm1, %v609_v50 }
 0x119   : > { %2833 = vmatmul.mubr.msk.f32.gmra.mrb[24].mxu1 %vm677_vm1, %v612_v52 }
 0x11a   : > { %2835 = vmatprep.mubr.msk.f32.mxu1 %vm677_vm1, %v2780_v49  ;;  %v2784_v53 = vpop.f32.mrb[24].mxu0 }
 0x11b   : > { %v625_v54 = vpop.f32.mrb[25].mxu0 }
 0x11c   : > { %v2785_v55 = vpop.f32.mrb[26].mxu0 }
 0x11d   : > { %2836 = vmatmul.mubr.msk.f32.gmra.mrb[26].mxu1 %vm677_vm1, %v2781_v51  ;;  %v628_v56 = vpop.f32.mrb[27].mxu0 }
 0x11e   : > { %2838 = vmatprep.mubr.msk.f32.mxu1 %vm677_vm1, %v625_v54 }
 0x121   : > { %2839 = vmatmul.mubr.msk.f32.gmra.mrb[28].mxu1 %vm677_vm1, %v628_v56 }
 0x122   : > { %2841 = vmatprep.mubr.msk.f32.mxu1 %vm677_vm1, %v2784_v53  ;;  %v2788_v57 = vpop.f32.mrb[28].mxu0 }
 0x123   : > { %v641_v58 = vpop.f32.mrb[29].mxu0 }
 0x124   : > { %v2789_v59 = vpop.f32.mrb[30].mxu0 }
 0x125   : > { %2842 = vmatmul.mubr.msk.f32.gmra.mrb[30].mxu1 %vm677_vm1, %v2785_v55  ;;  %v644_v60 = vpop.f32.mrb[31].mxu0 }
 0x126   : > { %2844 = vmatprep.mubr.msk.f32.mxu1 %vm677_vm1, %v641_v58 }
 0x129   : > { %2845 = vmatmul.mubr.msk.f32.gmra.mrb[32].mxu1 %vm677_vm1, %v644_v60 }
 0x12a   : > { %2847 = vmatprep.mubr.msk.f32.mxu1 %vm677_vm1, %v2788_v57 }
 0x12d   : > { %2848 = vmatmul.mubr.msk.f32.gmra.mrb[34].mxu1 %vm677_vm1, %v2789_v59 }
 0x1c4   : > { %v3330_v61 = vpop.f32.mrb[4].mxu1 }
 0x1c5   : > { %v3332_v62 = vpop.f32.mrb[5].mxu1  ;;  %v1053_v63 = vsel %vm1049_vm4, %v3330_v61, -inf }
 0x1c6   : > { %1054 = vmax.xlane.f32.xlu0 %v1053_v63  ;;  %v1050_v2 = vsel %vm1049_vm4, %v3332_v62, -inf }
 0x1c8   : > { %v3336_v0 = vpop.f32.mrb[6].mxu1 }
 0x1c9   : > { %v3338_v1 = vpop.f32.mrb[7].mxu1  ;;  %v1059_v3 = vsel %vm1049_vm4, %v3336_v0, -inf }
 0x1ca   : > { %1051 = vmax.xlane.f32.xlu0 %v1050_v2  ;;  %1060 = vmax.xlane.f32.xlu1 %v1059_v3  ;;  %v1056_v6 = vsel %vm1049_vm4, %v3338_v1, -inf }
 0x1cc   : > { %v3344_v4 = vpop.f32.mrb[8].mxu1 }
 0x1cd   : > { %v3346_v5 = vpop.f32.mrb[9].mxu1  ;;  %v1065_v10 = vsel %vm1049_vm4, %v3344_v4, -inf }
 0x1ce   : > { %1057 = vmax.xlane.f32.xlu1 %v1056_v6  ;;  %v1062_v7 = vsel %vm1049_vm4, %v3346_v5, -inf }
 0x1cf   : > { %1063 = vmax.xlane.f32.xlu0 %v1062_v7 }
 0x1d0   : > { %v3352_v8 = vpop.f32.mrb[10].mxu1 }
 0x1d1   : > { %v3354_v9 = vpop.f32.mrb[11].mxu1  ;;  %v1071_v14 = vsel %vm1049_vm4, %v3352_v8, -inf }
 0x1d2   : > { %1066 = vmax.xlane.f32.xlu1 %v1065_v10  ;;  %v1068_v11 = vsel %vm1049_vm4, %v3354_v9, -inf }
 0x1d3   : > { %1069 = vmax.xlane.f32.xlu0 %v1068_v11 }
 0x1d4   : > { %v3360_v12 = vpop.f32.mrb[12].mxu1 }
 0x1d5   : > { %v3362_v13 = vpop.f32.mrb[13].mxu1  ;;  %v1077_v18 = vsel %vm1049_vm4, %v3360_v12, -inf }
 0x1d6   : > { %1072 = vmax.xlane.f32.xlu1 %v1071_v14  ;;  %v1074_v15 = vsel %vm1049_vm4, %v3362_v13, -inf }
 0x1d7   : > { %1075 = vmax.xlane.f32.xlu0 %v1074_v15 }
 0x1d8   : > { %v3368_v16 = vpop.f32.mrb[14].mxu1 }
 0x1d9   : > { %v3370_v17 = vpop.f32.mrb[15].mxu1  ;;  %v1083_v22 = vsel %vm1049_vm4, %v3368_v16, -inf }
 0x1da   : > { %1078 = vmax.xlane.f32.xlu1 %v1077_v18  ;;  %v1080_v19 = vsel %vm1049_vm4, %v3370_v17, -inf }
 0x1db   : > { %1081 = vmax.xlane.f32.xlu0 %v1080_v19 }
 0x1dc   : > { %v3376_v20 = vpop.f32.mrb[16].mxu1 }
 0x1dd   : > { %v3378_v21 = vpop.f32.mrb[17].mxu1  ;;  %v1089_v26 = vsel %vm1049_vm4, %v3376_v20, -inf }
 0x1de   : > { %1084 = vmax.xlane.f32.xlu1 %v1083_v22  ;;  %v1086_v23 = vsel %vm1049_vm4, %v3378_v21, -inf }
 0x1df   : > { %1087 = vmax.xlane.f32.xlu0 %v1086_v23 }
 0x1e0   : > { %v3384_v24 = vpop.f32.mrb[18].mxu1 }
 0x1e1   : > { %v3386_v25 = vpop.f32.mrb[19].mxu1  ;;  %v1095_v31 = vsel %vm1049_vm4, %v3384_v24, -inf }
 0x1e2   : > { %1090 = vmax.xlane.f32.xlu1 %v1089_v26  ;;  %v1092_v28 = vsel %vm1049_vm4, %v3386_v25, -inf }
 0x1e3   : > { %1093 = vmax.xlane.f32.xlu0 %v1092_v28 }
 0x1e4   : > { %v3392_v29 = vpop.f32.mrb[20].mxu1 }
 0x1e5   : > { %v3394_v30 = vpop.f32.mrb[21].mxu1  ;;  %v1101_v33 = vsel %vm1049_vm4, %v3392_v29, -inf }
 0x1e6   : > { %1096 = vmax.xlane.f32.xlu1 %v1095_v31  ;;  %v1098_v32 = vsel %vm1049_vm4, %v3394_v30, -inf }
 0x1e7   : > { %1099 = vmax.xlane.f32.xlu0 %v1098_v32 }
 0x1e8   : > { %v3402_v34 = vpop.f32.mrb[22].mxu1 }
 0x1e9   : > { %v3404_v35 = vpop.f32.mrb[23].mxu1  ;;  %v1107_v37 = vsel %vm1049_vm4, %v3402_v34, -inf }
 0x1ea   : > { %1102 = vmax.xlane.f32.xlu1 %v1101_v33  ;;  %v1104_v36 = vsel %vm1049_vm4, %v3404_v35, -inf }
 0x1eb   : > { %1105 = vmax.xlane.f32.xlu0 %v1104_v36 }
 0x1ec   : > { %v3410_v38 = vpop.f32.mrb[24].mxu1 }
 0x1ed   : > { %v3412_v39 = vpop.f32.mrb[25].mxu1  ;;  %v1113_v41 = vsel %vm1049_vm4, %v3410_v38, -inf }
 0x1ee   : > { %1108 = vmax.xlane.f32.xlu1 %v1107_v37  ;;  %v1110_v40 = vsel %vm1049_vm4, %v3412_v39, -inf }
 0x1ef   : > { %1111 = vmax.xlane.f32.xlu0 %v1110_v40 }
 0x1f0   : > { %v3418_v42 = vpop.f32.mrb[26].mxu1 }
 0x1f1   : > { %v3420_v43 = vpop.f32.mrb[27].mxu1  ;;  %v1119_v45 = vsel %vm1049_vm4, %v3418_v42, -inf }
 0x1f2   : > { %1114 = vmax.xlane.f32.xlu1 %v1113_v41  ;;  %v1116_v44 = vsel %vm1049_vm4, %v3420_v43, -inf }
 0x1f3   : > { %1117 = vmax.xlane.f32.xlu0 %v1116_v44 }
 0x1f4   : > { %v3426_v46 = vpop.f32.mrb[28].mxu1 }
 0x1f5   : > { %v3428_v47 = vpop.f32.mrb[29].mxu1  ;;  %v1125_v49 = vsel %vm1049_vm4, %v3426_v46, -inf }
 0x1f6   : > { %1120 = vmax.xlane.f32.xlu1 %v1119_v45  ;;  %v1122_v48 = vsel %vm1049_vm4, %v3428_v47, -inf }
 0x1f7   : > { %1123 = vmax.xlane.f32.xlu0 %v1122_v48 }
 0x1f8   : > { %v3434_v50 = vpop.f32.mrb[30].mxu1 }
 0x1f9   : > { %v3436_v51 = vpop.f32.mrb[31].mxu1  ;;  %v1131_v53 = vsel %vm1049_vm4, %v3434_v50, -inf }
 0x1fa   : > { %1126 = vmax.xlane.f32.xlu1 %v1125_v49  ;;  %v1128_v52 = vsel %vm1049_vm4, %v3436_v51, -inf }
 0x1fb   : > { %1129 = vmax.xlane.f32.xlu0 %v1128_v52 }
 0x1fc   : > { %v3442_v54 = vpop.f32.mrb[32].mxu1 }
 0x1fd   : > { %v3444_v55 = vpop.f32.mrb[33].mxu1  ;;  %v1137_v57 = vsel %vm1049_vm4, %v3442_v54, -inf }
 0x1fe   : > { %1132 = vmax.xlane.f32.xlu1 %v1131_v53  ;;  %v1134_v56 = vsel %vm1049_vm4, %v3444_v55, -inf }
 0x1ff   : > { %1135 = vmax.xlane.f32.xlu0 %v1134_v56 }
 0x200   : > { %v3450_v58 = vpop.f32.mrb[34].mxu1 }
 0x201   : > { %v3452_v59 = vpop.f32.mrb[35].mxu1  ;;  %v1143_v63 = vsel %vm1049_vm4, %v3450_v58, -inf }
 0x202   : > { %1138 = vmax.xlane.f32.xlu1 %v1137_v57  ;;  %v1140_v60 = vsel %vm1049_vm4, %v3452_v59, -inf }
 0x203   : > { %1141 = vmax.xlane.f32.xlu0 %v1140_v60 }
 0x206   : > { %1144 = vmax.xlane.f32.xlu1 %v1143_v63 }
 0x253   : > { %v1055_v2 = vpop.xlane.xlu0 %1054 }
 0x254   : > { %v1147_v3 = vsub.f32 %v3330_v61, %v1055_v2 }
 0x256   : > { %v1180_v6 = vmul.f32 1.442695, %v1147_v3 }
 0x257   : > { %v1052_v7 = vpop.xlane.xlu0 %1051  ;;  %v1061_v10 = vpop.xlane.xlu1 %1060 }
 0x258   : > { %3024 = vpow2.f32 %v1180_v6  ;;  %v1146_v11 = vsub.f32 %v3332_v62, %v1052_v7  ;;  %v1149_v14 = vsub.f32 %v3336_v0, %v1061_v10 }
 0x25a   : > { %v1178_v15 = vmul.f32 1.442695, %v1146_v11  ;;  %v1184_v18 = vmul.f32 1.442695, %v1149_v14 }
 0x25b   : > { %v1058_v19 = vpop.xlane.xlu1 %1057 }
 0x25c   : > { %3026 = vpow2.f32 %v1178_v15  ;;  %v1148_v22 = vsub.f32 %v3338_v1, %v1058_v19  ;;  %v1064_v23 = vpop.xlane.xlu0 %1063 }
 0x25d   : > { %3028 = vpow2.f32 %v1184_v18  ;;  %v1150_v26 = vsub.f32 %v3346_v5, %v1064_v23 }
 0x25e   : > { %v1182_v28 = vmul.f32 1.442695, %v1148_v22 }
 0x25f   : > { %v1186_v61 = vmul.f32 1.442695, %v1150_v26  ;;  %v1067_v31 = vpop.xlane.xlu1 %1066 }
 0x260   : > { %3030 = vpow2.f32 %v1182_v28  ;;  %v1151_v32 = vsub.f32 %v3344_v4, %v1067_v31  ;;  %v1070_v33 = vpop.xlane.xlu0 %1069 }
 0x261   : > { %v1152_v62 = vsub.f32 %v3354_v9, %v1070_v33  ;;  %3032 = vpow2.f32 %v1186_v61 }
 0x262   : > { %v3465_v0 = vpop.eup %3024  ;;  %v1188_v36 = vmul.f32 1.442695, %v1151_v32 }
 0x263   : > { %v1190_v37 = vmul.f32 1.442695, %v1152_v62  ;;  %v1073_v40 = vpop.xlane.xlu1 %1072  ;;  %v1245_v1 = vsel %vm1049_vm4, %v3465_v0, 0.0 }
 0x264   : > { %3034 = vpow2.f32 %v1188_v36  ;;  %v1153_v5 = vsub.f32 %v3352_v8, %v1073_v40  ;;  %v1076_v41 = vpop.xlane.xlu0 %1075  ;;  %1246 = vadd.xlane.f32.xlu1 %v1245_v1 }
 0x265   : > { %v1154_v44 = vsub.f32 %v3362_v13, %v1076_v41  ;;  %3036 = vpow2.f32 %v1190_v37 }
 0x266   : > { %v3471_v4 = vpop.eup %3026  ;;  %v1192_v9 = vmul.f32 1.442695, %v1153_v5 }
 0x267   : > { %v3473_v45 = vpop.eup %3028  ;;  %v1194_v48 = vmul.f32 1.442695, %v1154_v44  ;;  %v1079_v49 = vpop.xlane.xlu1 %1078  ;;  %v1242_v52 = vsel %vm1049_vm4, %v3471_v4, 0.0 }
 0x268   : > { %3038 = vpow2.f32 %v1192_v9  ;;  %v1155_v53 = vsub.f32 %v3360_v12, %v1079_v49  ;;  %v1082_v56 = vpop.xlane.xlu0 %1081  ;;  %v1251_v8 = vsel %vm1049_vm4, %v3473_v45, 0.0  ;;  %1243 = vadd.xlane.f32.xlu0 %v1242_v52 }
 0x269   : > { %v1156_v13 = vsub.f32 %v3370_v17, %v1082_v56  ;;  %1252 = vadd.xlane.f32.xlu1 %v1251_v8  ;;  %3040 = vpow2.f32 %v1194_v48 }
 0x26a   : > { %v3481_v57 = vpop.eup %3030  ;;  %v1196_v60 = vmul.f32 1.442695, %v1155_v53 }
 0x26b   : > { %v1198_v63 = vmul.f32 1.442695, %v1156_v13  ;;  %v1085_v2 = vpop.xlane.xlu1 %1084  ;;  %v1248_v3 = vsel %vm1049_vm4, %v3481_v57, 0.0  ;;  %v3485_v6 = vpop.eup %3032 }
 0x26c   : > { %3042 = vpow2.f32 %v1196_v60  ;;  %v1157_v12 = vsub.f32 %v3368_v16, %v1085_v2  ;;  %v1088_v7 = vpop.xlane.xlu0 %1087  ;;  %1249 = vadd.xlane.f32.xlu0 %v1248_v3  ;;  %v1254_v19 = vsel %vm1049_vm4, %v3485_v6, 0.0 }
 0x26d   : > { %v1158_v10 = vsub.f32 %v3378_v21, %v1088_v7  ;;  %3044 = vpow2.f32 %v1198_v63 }
 0x26e   : > { %v3489_v17 = vpop.eup %3034  ;;  %v1200_v11 = vmul.f32 1.442695, %v1157_v12 }
 0x26f   : > { %v1202_v14 = vmul.f32 1.442695, %v1158_v10  ;;  %v1091_v15 = vpop.xlane.xlu1 %1090  ;;  %v1257_v18 = vsel %vm1049_vm4, %v3489_v17, 0.0  ;;  %v3495_v22 = vpop.eup %3036 }
 0x270   : > { %3046 = vpow2.f32 %v1200_v11  ;;  %v1159_v16 = vsub.f32 %v3376_v20, %v1091_v15  ;;  %v1094_v23 = vpop.xlane.xlu0 %1093  ;;  %1258 = vadd.xlane.f32.xlu1 %v1257_v18  ;;  %1255 = vadd.xlane.f32.xlu0 %v1254_v19  ;;  %v1260_v33 = vsel %vm1049_vm4, %v3495_v22, 0.0 }
 0x271   : > { %v1160_v21 = vsub.f32 %v3386_v25, %v1094_v23  ;;  %3048 = vpow2.f32 %v1202_v14 }
 0x272   : > { %v3499_v26 = vpop.eup %3038  ;;  %v1204_v28 = vmul.f32 1.442695, %v1159_v16 }
 0x273   : > { %v1206_v61 = vmul.f32 1.442695, %v1160_v21  ;;  %v1097_v31 = vpop.xlane.xlu1 %1096  ;;  %v1263_v32 = vsel %vm1049_vm4, %v3499_v26, 0.0  ;;  %v3505_v62 = vpop.eup %3040 }
 0x274   : > { %3050 = vpow2.f32 %v1204_v28  ;;  %v1161_v20 = vsub.f32 %v3384_v24, %v1097_v31  ;;  %v1100_v36 = vpop.xlane.xlu0 %1099  ;;  %1264 = vadd.xlane.f32.xlu1 %v1263_v32  ;;  %1261 = vadd.xlane.f32.xlu0 %v1260_v33  ;;  %v1266_v41 = vsel %vm1049_vm4, %v3505_v62, 0.0 }
 0x275   : > { %3052 = vpow2.f32 %v1206_v61  ;;  %v1162_v40 = vsub.f32 %v3394_v30, %v1100_v36 }
 0x276   : > { %v3508_v25 = vpop.eup %3042  ;;  %v1208_v37 = vmul.f32 1.442695, %v1161_v20 }
 0x277   : > { %v1103_v1 = vpop.xlane.xlu1 %1102  ;;  %v1269_v5 = vsel %vm1049_vm4, %v3508_v25, 0.0  ;;  %v3515_v44 = vpop.eup %3044  ;;  %v1210_v48 = vmul.f32 1.442695, %v1162_v40 }
 0x278   : > { %3054 = vpow2.f32 %v1208_v37  ;;  %v1163_v24 = vsub.f32 %v3392_v29, %v1103_v1  ;;  %1270 = vadd.xlane.f32.xlu1 %v1269_v5  ;;  %1267 = vadd.xlane.f32.xlu0 %v1266_v41  ;;  %v1106_v52 = vpop.xlane.xlu0 %1105  ;;  %v1272_v56 = vsel %vm1049_vm4, %v3515_v44, 0.0 }
 0x279   : > { %v1164_v60 = vsub.f32 %v3404_v35, %v1106_v52 }
 0x27a   : > { %v3518_v9 = vpop.eup %3046  ;;  %v1212_v49 = vmul.f32 1.442695, %v1163_v24 }
 0x27b   : > { %v1109_v30 = vpop.xlane.xlu1 %1108  ;;  %v1275_v53 = vsel %vm1049_vm4, %v3518_v9, 0.0  ;;  %v3524_v8 = vpop.eup %3048  ;;  %v1214_v10 = vmul.f32 1.442695, %v1164_v60 }
 0x27c   : > { %3056 = vpow2.f32 %v1212_v49  ;;  %v1165_v13 = vsub.f32 %v3402_v34, %v1109_v30  ;;  %1276 = vadd.xlane.f32.xlu1 %v1275_v53  ;;  %1273 = vadd.xlane.f32.xlu0 %v1272_v56  ;;  %v1278_v12 = vsel %vm1049_vm4, %v3524_v8, 0.0  ;;  %v1112_v14 = vpop.xlane.xlu0 %1111 }
 0x27d   : > { %3058 = vpow2.f32 %v1210_v48  ;;  %v1166_v16 = vsub.f32 %v3412_v39, %v1112_v14 }
 0x27e   : > { %v3527_v29 = vpop.eup %3050  ;;  %v1216_v63 = vmul.f32 1.442695, %v1165_v13 }
 0x27f   : > { %v1115_v2 = vpop.xlane.xlu1 %1114  ;;  %v1281_v3 = vsel %vm1049_vm4, %v3527_v29, 0.0  ;;  %v3534_v7 = vpop.eup %3052  ;;  %v1218_v61 = vmul.f32 1.442695, %v1166_v16 }
 0x280   : > { %1282 = vadd.xlane.f32.xlu1 %v1281_v3  ;;  %1279 = vadd.xlane.f32.xlu0 %v1278_v12  ;;  %3060 = vpow2.f32 %v1216_v63  ;;  %v1167_v11 = vsub.f32 %v3410_v38, %v1115_v2  ;;  %v1284_v15 = vsel %vm1049_vm4, %v3534_v7, 0.0  ;;  %v1118_v28 = vpop.xlane.xlu0 %1117 }
 0x281   : > { %3062 = vpow2.f32 %v1214_v10 }
 0x282   : > { %v3536_v34 = vpop.eup %3054  ;;  %v1220_v23 = vmul.f32 1.442695, %v1167_v11  ;;  %v1168_v11 = vsub.f32 %v3420_v43, %v1118_v28 }
 0x283   : > { %v1287_v35 = vsel %vm1049_vm4, %v3536_v34, 0.0  ;;  %v1121_v18 = vpop.xlane.xlu1 %1120 }
 0x284   : > { %1288 = vadd.xlane.f32.xlu1 %v1287_v35  ;;  %1285 = vadd.xlane.f32.xlu0 %v1284_v15  ;;  %3064 = vpow2.f32 %v1220_v23  ;;  %v1169_v31 = vsub.f32 %v3418_v42, %v1121_v18  ;;  %v1124_v37 = vpop.xlane.xlu0 %1123  ;;  %v1222_v23 = vmul.f32 1.442695, %v1168_v11 }
 0x285   : > { %3066 = vpow2.f32 %v1218_v61  ;;  %v1170_v42 = vsub.f32 %v3428_v47, %v1124_v37 }
 0x286   : > { %v3543_v19 = vpop.eup %3056  ;;  %v1224_v39 = vmul.f32 1.442695, %v1169_v31 }
 0x287   : > { %v1293_v21 = vsel %vm1049_vm4, %v3543_v19, 0.0  ;;  %v3548_v38 = vpop.eup %3058  ;;  %v1127_v32 = vpop.xlane.xlu1 %1126  ;;  %v1226_v49 = vmul.f32 1.442695, %v1170_v42 }
 0x288   : > { %1294 = vadd.xlane.f32.xlu1 %v1293_v21  ;;  %v1290_v33 = vsel %vm1049_vm4, %v3548_v38, 0.0  ;;  %v1171_v36 = vsub.f32 %v3426_v46, %v1127_v32  ;;  %3068 = vpow2.f32 %v1224_v39  ;;  %v1130_v52 = vpop.xlane.xlu0 %1129 }
 0x289   : > { %v1172_v47 = vsub.f32 %v3436_v51, %v1130_v52 }
 0x28a   : > { %v3553_v20 = vpop.eup %3060  ;;  %v1228_v5 = vmul.f32 1.442695, %v1171_v36 }
 0x28b   : > { %v1299_v40 = vsel %vm1049_vm4, %v3553_v20, 0.0  ;;  %v3558_v1 = vpop.eup %3062  ;;  %v1133_v41 = vpop.xlane.xlu1 %1132  ;;  %v1230_v2 = vmul.f32 1.442695, %v1172_v47 }
 0x28c   : > { %1291 = vadd.xlane.f32.xlu1 %v1290_v33  ;;  %v1296_v24 = vsel %vm1049_vm4, %v3558_v1, 0.0  ;;  %3070 = vpow2.f32 %v1228_v5  ;;  %v1173_v46 = vsub.f32 %v3434_v50, %v1133_v41  ;;  %v1136_v50 = vpop.xlane.xlu0 %1135 }
 0x28d   : > { %3072 = vpow2.f32 %v1226_v49 }
 0x28e   : > { %v3563_v48 = vpop.eup %3064  ;;  %v1232_v56 = vmul.f32 1.442695, %v1173_v46 }
 0x28f   : > { %v1305_v30 = vsel %vm1049_vm4, %v3563_v48, 0.0  ;;  %v3568_v53 = vpop.eup %3066  ;;  %v1139_v13 = vpop.xlane.xlu1 %1138 }
 0x290   : > { %1300 = vadd.xlane.f32.xlu1 %v1299_v40  ;;  %v1302_v60 = vsel %vm1049_vm4, %v3568_v53, 0.0  ;;  %3074 = vpow2.f32 %v1232_v56  ;;  %v1175_v3 = vsub.f32 %v3442_v54, %v1139_v13  ;;  %v1142_v14 = vpop.xlane.xlu0 %1141 }
 0x291   : > { %3076 = vpow2.f32 %v1230_v2  ;;  %v1176_v16 = vsub.f32 %v3452_v59, %v1142_v14 }
 0x292   : > { %v3574_v63 = vpop.eup %3068  ;;  %v1236_v10 = vmul.f32 1.442695, %v1175_v3 }
 0x293   : > { %v1311_v12 = vsel %vm1049_vm4, %v3574_v63, 0.0  ;;  %v1145_v18 = vpop.xlane.xlu1 %1144  ;;  %v1238_v43 = vmul.f32 1.442695, %v1176_v16 }
 0x294   : > { %1297 = vadd.xlane.f32.xlu1 %v1296_v24  ;;  %3078 = vpow2.f32 %v1236_v10  ;;  %v1177_v21 = vsub.f32 %v3450_v58, %v1145_v18 }
 0x296   : > { %v3579_v51 = vpop.eup %3070  ;;  %v1240_v28 = vmul.f32 1.442695, %v1177_v21 }
 0x297   : > { %v1317_v35 = vsel %vm1049_vm4, %v3579_v51, 0.0  ;;  %v3585_v15 = vpop.eup %3072 }
 0x298   : > { %1306 = vadd.xlane.f32.xlu1 %v1305_v30 }
 0x29a   : > { %1420 = vrot.lane.b32.xlu0 %v3294_v27, %s3178_s23  ;;  %v1174_v27 = vsub.f32 %v3444_v55, %v1136_v50  ;;  %v1314_v55 = vsel %vm1049_vm4, %v3585_v15, 0.0  ;;  %v3591_v61 = vpop.eup %3074 }
 0x29b   : > { %v1323_v31 = vsel %vm1049_vm4, %v3591_v61, 0.0  ;;  %v3595_v32 = vpop.eup %3076 }
 0x29c   : > { %1303 = vadd.xlane.f32.xlu1 %v1302_v60  ;;  %v1234_v54 = vmul.f32 1.442695, %v1174_v27  ;;  %v1320_v58 = vsel %vm1049_vm4, %v3595_v32, 0.0 }
 0x29e   : > { %3080 = vpow2.f32 %v1234_v54  ;;  %v3599_v59 = vpop.eup %3078 }
 0x29f   : > { %3082 = vpow2.f32 %v1222_v23  ;;  %v1329_v33 = vsel %vm1049_vm4, %v3599_v59, 0.0 }
 0x2a0   : > { %1312 = vadd.xlane.f32.xlu1 %v1311_v12  ;;  %3084 = vpow2.f32 %v1238_v43 }
 0x2a1   : > { %3086 = vpow2.f32 %v1240_v28  ;;  %v3626_v28 = vld [vmem:[%s3852_s4] sm:$0xff]  }
 0x2a4   : > { %1318 = vadd.xlane.f32.xlu1 %v1317_v35 }
 0x2a8   : > { %1315 = vadd.xlane.f32.xlu1 %v1314_v55  ;;  %v3603_v39 = vpop.eup %3080 }
 0x2a9   : > { %v3605_v36 = vpop.eup %3082  ;;  %v1326_v37 = vsel %vm1049_vm4, %v3603_v39, 0.0 }
 0x2aa   : > { %v3609_v40 = vpop.eup %3084  ;;  %v1308_v42 = vsel %vm1049_vm4, %v3605_v36, 0.0 }
 0x2ab   : > { %v3613_v5 = vpop.eup %3086  ;;  %v1332_v41 = vsel %vm1049_vm4, %v3609_v40, 0.0 }
 0x2ac   : > { %1324 = vadd.xlane.f32.xlu1 %v1323_v31  ;;  %v1335_v24 = vsel %vm1049_vm4, %v3613_v5, 0.0 }
 0x2b0   : > { %1321 = vadd.xlane.f32.xlu1 %v1320_v58 }
 0x2b4   : > { %1330 = vadd.xlane.f32.xlu1 %v1329_v33 }
 0x2b8   : > { %1327 = vadd.xlane.f32.xlu1 %v1326_v37 }
 0x2b9   : > { %1309 = vadd.xlane.f32.xlu0 %v1308_v42 }
 0x2bc   : > { %1333 = vadd.xlane.f32.xlu1 %v1332_v41 }
 0x2bd   : > { %1336 = vadd.xlane.f32.xlu0 %v1335_v24 }
 0x2f1   : > { %v1247_v49 = vpop.xlane.xlu1 %1246 }
 0x2f2   : > { %3088 = vrcp.f32 %v1247_v49 }
 0x2f5   : > { %v1244_v46 = vpop.xlane.xlu0 %1243 }
 0x2f6   : > { %3090 = vrcp.f32 %v1244_v46  ;;  %v1253_v52 = vpop.xlane.xlu1 %1252 }
 0x2f9   : > { %v1250_v30 = vpop.xlane.xlu0 %1249 }
 0x2fa   : > { %3092 = vrcp.f32 %v1250_v30 }
 0x2fc   : > { %v3089_v13 = vpop.eup %3088 }
 0x2fd   : > { %v1259_v47 = vpop.xlane.xlu1 %1258  ;;  %v1256_v56 = vpop.xlane.xlu0 %1255  ;;  %v1371_v12 = vmul.f32 %v3089_v13, %v3465_v0 }
 0x2fe   : > { %3094 = vrcp.f32 %v1259_v47 }
 0x2ff   : > { %3096 = vrcp.f32 %v1256_v56 }
 0x300   : > { %v3091_v60 = vpop.eup %3090  ;;  %3098 = vrcp.f32 %v1253_v52 }
 0x301   : > { %v1265_v50 = vpop.xlane.xlu1 %1264  ;;  %v1262_v2 = vpop.xlane.xlu0 %1261  ;;  %v1370_v3 = vmul.f32 %v3091_v60, %v3471_v4 }
 0x302   : > { %3100 = vrcp.f32 %v1265_v50 }
 0x303   : > { %v1402_v27 = vpack.c.bf16 %v1371_v12, %v1370_v3  ;;  %3102 = vrcp.f32 %v1262_v2 }
 0x304   : > { %v3093_v16 = vpop.eup %3092 }
 0x305   : > { %v1271_v10 = vpop.xlane.xlu1 %1270  ;;  %2852 = vmatprep.mubr.msk.bf16.mxu0 %vm1049_vm4, %v1402_v27  ;;  %v1268_v11 = vpop.xlane.xlu0 %1267  ;;  %v1372_v43 = vmul.f32 %v3093_v16, %v3481_v57 }
 0x306   : > { %3104 = vrcp.f32 %v1271_v10 }
 0x307   : > { %3106 = vrcp.f32 %v1268_v11 }
 0x308   : > { %v3095_v4 = vpop.eup %3094 }
 0x309   : > { %v1277_v14 = vpop.xlane.xlu1 %1276  ;;  %v1274_v35 = vpop.xlane.xlu0 %1273  ;;  %v1375_v37 = vmul.f32 %v3095_v4, %v3489_v17 }
 0x30a   : > { %v3097_v21 = vpop.eup %3096  ;;  %3108 = vrcp.f32 %v1277_v14 }
 0x30b   : > { %v3099_v55 = vpop.eup %3098  ;;  %3110 = vrcp.f32 %v1274_v35  ;;  %v1374_v33 = vmul.f32 %v3097_v21, %v3485_v6 }
 0x30c   : > { %v1373_v42 = vmul.f32 %v3099_v55, %v3473_v45  ;;  %v3101_v41 = vpop.eup %3100 }
 0x30d   : > { %v1283_v18 = vpop.xlane.xlu1 %1282  ;;  %v1280_v54 = vpop.xlane.xlu0 %1279  ;;  %v1404_v52 = vpack.c.bf16 %v1375_v37, %v1374_v33  ;;  %v1377_v17 = vmul.f32 %v3101_v41, %v3499_v26 }
 0x30e   : > { %3112 = vrcp.f32 %v1283_v18  ;;  %v3103_v57 = vpop.eup %3102  ;;  %v1403_v24 = vpack.c.bf16 %v1373_v42, %v1372_v43 }
 0x30f   : > { %3114 = vrcp.f32 %v1280_v54  ;;  %v1376_v45 = vmul.f32 %v3103_v57, %v3495_v22 }
 0x310   : > { %v3105_v49 = vpop.eup %3104 }
 0x311   : > { %v1289_v0 = vpop.xlane.xlu1 %1288  ;;  %v1286_v23 = vpop.xlane.xlu0 %1285  ;;  %v1379_v56 = vmul.f32 %v3105_v49, %v3508_v25  ;;  %v1405_v2 = vpack.c.bf16 %v1377_v17, %v1376_v45 }
 0x312   : > { %v3107_v6 = vpop.eup %3106 }
 0x313   : > { %v1378_v47 = vmul.f32 %v3107_v6, %v3505_v62 }
 0x314   : > { %v3109_v13 = vpop.eup %3108 }
 0x315   : > { %v1295_v31 = vpop.xlane.xlu1 %1294  ;;  %v1421_v58 = vpop.permute.xlu0 %1420  ;;  %v1406_v27 = vpack.c.bf16 %v1379_v56, %v1378_v47  ;;  %v1381_v62 = vmul.f32 %v3109_v13, %v3518_v9 }
 0x316   : > { %2850 = vmatprep.subr.bf16.mxu0 %v1421_v58  ;;  %2966 = vmatprep.subr.bf16.mxu1 %v1421_v58  ;;  %3116 = vrcp.f32 %v1295_v31  ;;  %v3111_v60 = vpop.eup %3110 }
 0x317   : > { %2851 = vmatpush3.bf16.msra.mxu0 %v1421_v58  ;;  %2967 = vmatpush3.bf16.msra.mxu1 %v1421_v58  ;;  %v1380_v26 = vmul.f32 %v3111_v60, %v3515_v44 }
 0x318   : > { %2884 = vmatprep.subr.bf16.mxu1 %v3626_v28  ;;  %v3113_v50 = vpop.eup %3112 }
 0x319   : > { %v1292_v46 = vpop.xlane.xlu1 %1291  ;;  %v3115_v3 = vpop.eup %3114  ;;  %v1383_v18 = vmul.f32 %v3113_v50, %v3527_v29  ;;  %v1407_v4 = vpack.c.bf16 %v1381_v62, %v1380_v26 }
 0x31a   : > { %3118 = vrcp.f32 %v1292_v46  ;;  %2853 = vmatmul.mubr.msk.bf16.vlgmr.msra.gmra.mrb[32].mxu0 %vm1049_vm4, %v1403_v24  ;;  %v1382_v35 = vmul.f32 %v3115_v3, %v3524_v8 }
 0x31b   : > { %2856 = vmatprep.mubr.msk.bf16.mxu0 %vm1049_vm4, %v1404_v52  ;;  %3120 = vrcp.f32 %v1289_v0 }
 0x31c   : > { %3122 = vrcp.f32 %v1286_v23  ;;  %v1408_v44 = vpack.c.bf16 %v1383_v18, %v1382_v35 }
 0x31d   : > { %v1301_v30 = vpop.xlane.xlu1 %1300 }
 0x31e   : > { %3124 = vrcp.f32 %v1301_v30 }
 0x320   : > { %v3117_v10 = vpop.eup %3116 }
 0x321   : > { %v1298_v12 = vpop.xlane.xlu1 %1297  ;;  %v1387_v14 = vmul.f32 %v3117_v10, %v3543_v19 }
 0x322   : > { %3126 = vrcp.f32 %v1298_v12  ;;  %2857 = vmatmul.mubr.msk.bf16.gmra.mrb[36].mxu0 %vm1049_vm4, %v1405_v2 }
 0x323   : > { %2860 = vmatprep.mubr.msk.bf16.mxu0 %vm1049_vm4, %v1406_v27 }
 0x324   : > { %v3119_v22 = vpop.eup %3118 }
 0x325   : > { %v1307_v25 = vpop.xlane.xlu1 %1306  ;;  %v1386_v11 = vmul.f32 %v3119_v22, %v3548_v38  ;;  %v3121_v16 = vpop.eup %3120 }
 0x326   : > { %3128 = vrcp.f32 %v1307_v25  ;;  %v3123_v0 = vpop.eup %3122  ;;  %v1385_v29 = vmul.f32 %v3121_v16, %v3536_v34 }
 0x327   : > { %v1410_v54 = vpack.c.bf16 %v1387_v14, %v1386_v11  ;;  %v1384_v8 = vmul.f32 %v3123_v0, %v3534_v7 }
 0x328   : > { %v3125_v21 = vpop.eup %3124 }
 0x329   : > { %2868 = vmatprep.mubr.msk.bf16.mxu1 %vm1049_vm4, %v1410_v54  ;;  %v1304_v23 = vpop.xlane.xlu1 %1303  ;;  %v1389_v19 = vmul.f32 %v3125_v21, %v3553_v20  ;;  %v1409_v31 = vpack.c.bf16 %v1385_v29, %v1384_v8 }
 0x32a   : > { %3130 = vrcp.f32 %v1304_v23  ;;  %2861 = vmatmul.mubr.msk.bf16.gmra.mrb[40].mxu0 %vm1049_vm4, %v1407_v4 }
 0x32b   : > { %2864 = vmatprep.mubr.msk.bf16.mxu0 %vm1049_vm4, %v1408_v44 }
 0x32c   : > { %v3127_v9 = vpop.eup %3126 }
 0x32d   : > { %v1388_v38 = vmul.f32 %v3127_v9, %v3558_v1  ;;  %v1313_v55 = vpop.xlane.xlu1 %1312 }
 0x32f   : > { %v1411_v43 = vpack.c.bf16 %v1389_v19, %v1388_v38 }
 0x330   : > { %v3129_v33 = vpop.eup %3128 }
 0x331   : > { %v1319_v58 = vpop.xlane.xlu1 %1318  ;;  %2869 = vmatmul.mubr.msk.bf16.vlgmr.msra.gmra.mrb[36].mxu1 %vm1049_vm4, %v1411_v43  ;;  %v1391_v34 = vmul.f32 %v3129_v33, %v3563_v48 }
 0x332   : > { %2865 = vmatmul.mubr.msk.bf16.gmra.mrb[44].mxu0 %vm1049_vm4, %v1409_v31  ;;  %2885 = vmatpush3.bf16.msra.mxu1 %v3626_v28 }
 0x334   : > { %v3131_v37 = vpop.eup %3130 }
 0x335   : > { %v1316_v42 = vpop.xlane.xlu1 %1315  ;;  %v1390_v7 = vmul.f32 %v3131_v37, %v3568_v53 }
 0x336   : > { %3132 = vrcp.f32 %v1316_v42 }
 0x337   : > { %v1412_v20 = vpack.c.bf16 %v1391_v34, %v1390_v7  ;;  %3134 = vrcp.f32 %v1313_v55 }
 0x338   : > { %3136 = vrcp.f32 %v1319_v58 }
 0x339   : > { %v1325_v41 = vpop.xlane.xlu1 %1324  ;;  %2872 = vmatprep.mubr.msk.bf16.mxu1 %vm1049_vm4, %v1412_v20 }
 0x33d   : > { %v1322_v1 = vpop.xlane.xlu1 %1321 }
 0x340   : > { %v3133_v28 = vpop.eup %3132 }
 0x341   : > { %v1331_v57 = vpop.xlane.xlu1 %1330  ;;  %v3135_v53 = vpop.eup %3134  ;;  %v1394_v45 = vmul.f32 %v3133_v28, %v3585_v15 }
 0x342   : > { %v3137_v48 = vpop.eup %3136  ;;  %v1393_v30 = vmul.f32 %v3135_v53, %v3574_v63 }
 0x343   : > { %v1395_v47 = vmul.f32 %v3137_v48, %v3579_v51 }
 0x345   : > { %v1328_v49 = vpop.xlane.xlu1 %1327  ;;  %v1414_v60 = vpack.c.bf16 %v1395_v47, %v1394_v45 }
 0x346   : > { %v1310_v24 = vpop.xlane.xlu0 %1309 }
 0x347   : > { %3138 = vrcp.f32 %v1310_v24 }
 0x348   : > { %3140 = vrcp.f32 %v1322_v1 }
 0x349   : > { %3142 = vrcp.f32 %v1328_v49  ;;  %v1334_v46 = vpop.xlane.xlu1 %1333 }
 0x34a   : > { %3144 = vrcp.f32 %v1325_v41  ;;  %v1337_v52 = vpop.xlane.xlu0 %1336 }
 0x34b   : > { %3146 = vrcp.f32 %v1331_v57 }
 0x34c   : > { %3148 = vrcp.f32 %v1334_v46 }
 0x34d   : > { %3150 = vrcp.f32 %v1337_v52 }
 0x351   : > { %v3139_v6 = vpop.eup %3138 }
 0x352   : > { %v1392_v17 = vmul.f32 %v3139_v6, %v3605_v36  ;;  %v3141_v13 = vpop.eup %3140 }
 0x353   : > { %v3143_v50 = vpop.eup %3142  ;;  %v1396_v15 = vmul.f32 %v3141_v13, %v3595_v32  ;;  %v3004_v32 = vld [vmem:[%s3853_s5] sm:$0xff]  }
 0x354   : > { %v1413_v56 = vpack.c.bf16 %v1393_v30, %v1392_v17  ;;  %v3145_v2 = vpop.eup %3144  ;;  %v1398_v12 = vmul.f32 %v3143_v50, %v3603_v39  ;;  %2920 = vmatprep.subr.bf16.mxu0 %v3004_v32 }
 0x355   : > { %v3147_v3 = vpop.eup %3146  ;;  %v1397_v36 = vmul.f32 %v3145_v2, %v3591_v61  ;;  %v3003_v61 = vld [vmem:[%s3852_s4 + $0x8] sm:$0xff]   ;;  %2921 = vmatpush3.bf16.msra.mxu0 %v3004_v32  ;;  %v3006_v2 = vld [vmem:[%s3853_s5 + $0x10] sm:$0xff]  }
 0x356   : > { %2873 = vmatmul.mubr.msk.bf16.gmra.mrb[40].mxu1 %vm1049_vm4, %v1413_v56  ;;  %v1399_v63 = vmul.f32 %v3147_v3, %v3599_v59  ;;  %v3149_v27 = vpop.eup %3148  ;;  %2886 = vmatprep.subr.bf16.mxu1 %v3003_v61  ;;  %v3005_v59 = vld [vmem:[%s3853_s5 + $0x8] sm:$0xff]   ;;  %v3007_v3 = vld [vmem:[%s3853_s5 + $0x18] sm:$0xff]  }
 0x357   : > { %2876 = vmatprep.mubr.msk.bf16.mxu1 %vm1049_vm4, %v1414_v60  ;;  %v1415_v51 = vpack.c.bf16 %v1397_v36, %v1396_v15  ;;  %v3151_v10 = vpop.eup %3150  ;;  %v1400_v26 = vmul.f32 %v3149_v27, %v3609_v40  ;;  %2887 = vmatpush3.bf16.msra.mxu1 %v3003_v61  ;;  %v3152_v15 = vld [vmem:[%s3254_s19 + $0x8] sm:$0xff]   ;;  %v3153_v27 = vld [vmem:[%s3254_s19] sm:$0xff]  }
 0x358   : > { %v1416_v22 = vpack.c.bf16 %v1399_v63, %v1398_v12  ;;  %v1401_v62 = vmul.f32 %v3151_v10, %v3613_v5  ;;  %2922 = vmatprep.subr.bf16.mxu0 %v3005_v59  ;;  %v1875_v12 = vunpack.c.l.bf16 %v3152_v15  ;;  %v1876_v36 = vunpack.c.h.bf16 %v3152_v15  ;;  %v3160_v15 = vld [vmem:[%s3254_s19 + $0x48] sm:$0xff]  }
 0x359   : > { %2923 = vmatpush3.bf16.msra.mxu0 %v3005_v59  ;;  %v1874_v10 = vunpack.c.h.bf16 %v3153_v27 }
 0x35a   : > { %v1417_v25 = vpack.c.bf16 %v1401_v62, %v1400_v26  ;;  %2924 = vmatprep.subr.bf16.mxu0 %v3006_v2 }
 0x35d   : > { %2925 = vmatpush3.bf16.msra.mxu0 %v3006_v2 }
 0x35e   : > { %2877 = vmatmul.mubr.msk.bf16.gmra.mrb[44].mxu1 %vm1049_vm4, %v1415_v51  ;;  %2926 = vmatprep.subr.bf16.mxu0 %v3007_v3  ;;  %v1873_v51 = vunpack.c.l.bf16 %v3153_v27  ;;  %v3161_v27 = vld [vmem:[%s3254_s19 + $0x40] sm:$0xff]  }
 0x35f   : > { %2880 = vmatprep.mubr.msk.bf16.mxu1 %vm1049_vm4, %v1416_v22 }
 0x361   : > { %2927 = vmatpush3.bf16.msra.mxu0 %v3007_v3 }
 0x366   : > { %2881 = vmatmul.mubr.msk.bf16.gmra.mrb[48].mxu1 %vm1049_vm4, %v1417_v25 }
 0x3ed   : > { %v2854_v39 = vpop.f32.mrb[32].mxu0 }
 0x3ee   : > { %v1505_v40 = vpop.f32.mrb[33].mxu0 }
 0x3ef   : > { %v2855_v5 = vpop.f32.mrb[34].mxu0 }
 0x3f0   : > { %v1633_v11 = vpack.c.bf16 %v2855_v5, %v2854_v39  ;;  %v1508_v14 = vpop.f32.mrb[35].mxu0  ;;  %v3154_v5 = vld [vmem:[%s3254_s19 + $0x18] sm:$0xff]  }
 0x3f1   : > { %v1632_v35 = vpack.c.bf16 %v1508_v14, %v1505_v40  ;;  %v1880_v14 = vunpack.c.h.bf16 %v3154_v5 }
 0x3f3   : > { %2888 = vmatprep.mubr.msk.bf16.mxu1 %vm677_vm1, %v1632_v35 }
 0x3f4   : > { %2889 = vmatmul.mubr.msk.bf16.vlgmr.msra.gmra.mrb[52].mxu1 %vm677_vm1, %v1633_v11  ;;  %v1879_v11 = vunpack.c.l.bf16 %v3154_v5  ;;  %v3162_v5 = vld [vmem:[%s3254_s19 + $0x58] sm:$0xff]  }
 0x3f5   : > { %v2858_v18 = vpop.f32.mrb[36].mxu0 }
 0x3f6   : > { %v1521_v54 = vpop.f32.mrb[37].mxu0 }
 0x3f7   : > { %v2859_v16 = vpop.f32.mrb[38].mxu0 }
 0x3f8   : > { %v1635_v4 = vpack.c.bf16 %v2859_v16, %v2858_v18  ;;  %v1524_v0 = vpop.f32.mrb[39].mxu0  ;;  %v3155_v18 = vld [vmem:[%s3254_s19 + $0x10] sm:$0xff]  }
 0x3f9   : > { %v1634_v23 = vpack.c.bf16 %v1524_v0, %v1521_v54  ;;  %v1877_v54 = vunpack.c.l.bf16 %v3155_v18  ;;  %v1878_v16 = vunpack.c.h.bf16 %v3155_v18  ;;  %v3163_v18 = vld [vmem:[%s3254_s19 + $0x50] sm:$0xff]  }
 0x3fb   : > { %2892 = vmatprep.mubr.msk.bf16.mxu1 %vm677_vm1, %v1634_v23 }
 0x3fc   : > { %2893 = vmatmul.mubr.msk.bf16.gmra.mrb[56].mxu1 %vm677_vm1, %v1635_v4 }
 0x3fd   : > { %v2862_v44 = vpop.f32.mrb[40].mxu0 }
 0x3fe   : > { %v1537_v21 = vpop.f32.mrb[41].mxu0 }
 0x3ff   : > { %v2863_v9 = vpop.f32.mrb[42].mxu0 }
 0x400   : > { %v1637_v8 = vpack.c.bf16 %v2863_v9, %v2862_v44  ;;  %v1540_v29 = vpop.f32.mrb[43].mxu0 }
 0x401   : > { %v1636_v19 = vpack.c.bf16 %v1540_v29, %v1537_v21 }
 0x403   : > { %2896 = vmatprep.mubr.msk.bf16.mxu1 %vm677_vm1, %v1636_v19 }
 0x404   : > { %v2870_v38 = vpop.f32.mrb[36].mxu1  ;;  %2897 = vmatmul.mubr.msk.bf16.gmra.mrb[60].mxu1 %vm677_vm1, %v1637_v8 }
 0x405   : > { %v2866_v55 = vpop.f32.mrb[44].mxu0  ;;  %v1569_v43 = vpop.f32.mrb[37].mxu1 }
 0x406   : > { %v1553_v31 = vpop.f32.mrb[45].mxu0  ;;  %v2871_v58 = vpop.f32.mrb[38].mxu1 }
 0x407   : > { %v1641_v33 = vpack.c.bf16 %v2871_v58, %v2870_v38  ;;  %v2867_v37 = vpop.f32.mrb[46].mxu0  ;;  %v1572_v42 = vpop.f32.mrb[39].mxu1  ;;  %v3156_v38 = vld [vmem:[%s3254_s19 + $0x28] sm:$0xff]   ;;  %v3157_v58 = vld [vmem:[%s3254_s19 + $0x20] sm:$0xff]  }
 0x408   : > { %v1639_v7 = vpack.c.bf16 %v2867_v37, %v2866_v55  ;;  %v1640_v34 = vpack.c.bf16 %v1572_v42, %v1569_v43  ;;  %v1556_v20 = vpop.f32.mrb[47].mxu0  ;;  %v1883_v55 = vunpack.c.l.bf16 %v3156_v38  ;;  %v1884_v43 = vunpack.c.h.bf16 %v3156_v38  ;;  %v3164_v38 = vld [vmem:[%s3254_s19 + $0x68] sm:$0xff]  }
 0x409   : > { %v1638_v41 = vpack.c.bf16 %v1556_v20, %v1553_v31  ;;  %v1882_v37 = vunpack.c.h.bf16 %v3157_v58 }
 0x40b   : > { %2900 = vmatprep.mubr.msk.bf16.mxu1 %vm677_vm1, %v1638_v41 }
 0x40c   : > { %2901 = vmatmul.mubr.msk.bf16.gmra.mrb[64].mxu1 %vm677_vm1, %v1639_v7 }
 0x40d   : > { %2904 = vmatprep.mubr.msk.bf16.mxu1 %vm677_vm1, %v1640_v34 }
 0x414   : > { %2905 = vmatmul.mubr.msk.bf16.gmra.mrb[68].mxu1 %vm677_vm1, %v1641_v33  ;;  %v1881_v33 = vunpack.c.l.bf16 %v3157_v58  ;;  %v3165_v58 = vld [vmem:[%s3254_s19 + $0x60] sm:$0xff]  }
 0x429   : > { %v2874_v1 = vpop.f32.mrb[40].mxu1 }
 0x42a   : > { %v1585_v57 = vpop.f32.mrb[41].mxu1 }
 0x42b   : > { %v2875_v24 = vpop.f32.mrb[42].mxu1 }
 0x42c   : > { %v1643_v49 = vpack.c.bf16 %v2875_v24, %v2874_v1  ;;  %v1588_v28 = vpop.f32.mrb[43].mxu1 }
 0x42d   : > { %v1642_v53 = vpack.c.bf16 %v1588_v28, %v1585_v57  ;;  %v3158_v28 = vld [vmem:[%s3254_s19 + $0x38] sm:$0xff]  }
 0x42f   : > { %2908 = vmatprep.mubr.msk.bf16.mxu1 %vm677_vm1, %v1642_v53  ;;  %v1887_v53 = vunpack.c.l.bf16 %v3158_v28 }
 0x430   : > { %2909 = vmatmul.mubr.msk.bf16.gmra.mrb[72].mxu1 %vm677_vm1, %v1643_v49 }
 0x431   : > { %v2878_v46 = vpop.f32.mrb[44].mxu1 }
 0x432   : > { %v1601_v48 = vpop.f32.mrb[45].mxu1 }
 0x433   : > { %v2879_v52 = vpop.f32.mrb[46].mxu1 }
 0x434   : > { %v1645_v6 = vpack.c.bf16 %v2879_v52, %v2878_v46  ;;  %v1604_v45 = vpop.f32.mrb[47].mxu1  ;;  %v1888_v46 = vunpack.c.h.bf16 %v3158_v28  ;;  %v3159_v52 = vld [vmem:[%s3254_s19 + $0x30] sm:$0xff]   ;;  %v3166_v28 = vld [vmem:[%s3254_s19 + $0x78] sm:$0xff]  }
 0x435   : > { %v1644_v17 = vpack.c.bf16 %v1604_v45, %v1601_v48  ;;  %v1886_v45 = vunpack.c.h.bf16 %v3159_v52 }
 0x437   : > { %2912 = vmatprep.mubr.msk.bf16.mxu1 %vm677_vm1, %v1644_v17 }
 0x438   : > { %2913 = vmatmul.mubr.msk.bf16.gmra.mrb[76].mxu1 %vm677_vm1, %v1645_v6  ;;  %v1885_v6 = vunpack.c.l.bf16 %v3159_v52  ;;  %v3167_v52 = vld [vmem:[%s3254_s19 + $0x70] sm:$0xff]  }
 0x439   : > { %v2882_v30 = vpop.f32.mrb[48].mxu1 }
 0x43a   : > { %v1617_v47 = vpop.f32.mrb[49].mxu1 }
 0x43b   : > { %v2883_v56 = vpop.f32.mrb[50].mxu1 }
 0x43c   : > { %v1647_v13 = vpack.c.bf16 %v2883_v56, %v2882_v30  ;;  %v1620_v60 = vpop.f32.mrb[51].mxu1 }
 0x43d   : > { %v1646_v50 = vpack.c.bf16 %v1620_v60, %v1617_v47 }
 0x43f   : > { %2916 = vmatprep.mubr.msk.bf16.mxu1 %vm677_vm1, %v1646_v50 }
 0x440   : > { %2917 = vmatmul.mubr.msk.bf16.gmra.mrb[80].mxu1 %vm677_vm1, %v1647_v13 }
 0x4c7   : > { %v2890_v63 = vpop.f32.mrb[52].mxu1 }
 0x4c8   : > { %v1746_v22 = vpop.f32.mrb[53].mxu1  ;;  %v1907_v62 = vadd.f32 %v2890_v63, %v1875_v12  ;;  %v1891_v12 = vunpack.c.l.bf16 %v3160_v15 }
 0x4c9   : > { %v2891_v26 = vpop.f32.mrb[54].mxu1  ;;  %v1905_v32 = vadd.f32 %v1873_v51, %v1746_v22  ;;  %v1889_v51 = vunpack.c.l.bf16 %v3161_v27 }
 0x4ca   : > { %v1908_v25 = vadd.f32 %v2891_v26, %v1876_v36  ;;  %v1749_v61 = vpop.f32.mrb[55].mxu1  ;;  %v1892_v36 = vunpack.c.h.bf16 %v3160_v15  ;;  %v3740_v15 = vld [vmem:[%s3854_s6] ss:$0 sm:$0xff] }
 0x4cb   : > { %v1906_v59 = vadd.f32 %v1874_v10, %v1749_v61  ;;  %v1890_v10 = vunpack.c.h.bf16 %v3161_v27 }
 0x4cc   : > { %v1938_v39 = vpack.c.bf16 %v1908_v25, %v1907_v62 }
 0x4cd   : > { %v1937_v40 = vpack.c.bf16 %v1906_v59, %v1905_v32 }
 0x4cf   : > { %v2894_v35 = vpop.f32.mrb[56].mxu1  ;;  %2928 = vmatprep.mubr.msk.bf16.mxu0 %vm446_vm2, %v1937_v40 }
 0x4d0   : > { %v1762_v4 = vpop.f32.mrb[57].mxu1  ;;  %2929 = vmatmul.mubr.msk.bf16.vlgmr.msra.gmra.mrb[48].mxu0 %vm446_vm2, %v1938_v39  ;;  %v1911_v23 = vadd.f32 %v2894_v35, %v1879_v11  ;;  %v1895_v11 = vunpack.c.l.bf16 %v3162_v5 }
 0x4d1   : > { %v2895_v0 = vpop.f32.mrb[58].mxu1  ;;  %v1909_v9 = vadd.f32 %v1877_v54, %v1762_v4  ;;  %v1893_v54 = vunpack.c.l.bf16 %v3163_v18 }
 0x4d2   : > { %v1912_v44 = vadd.f32 %v2895_v0, %v1880_v14  ;;  %v1765_v21 = vpop.f32.mrb[59].mxu1  ;;  %v1896_v14 = vunpack.c.h.bf16 %v3162_v5 }
 0x4d3   : > { %v1910_v8 = vadd.f32 %v1878_v16, %v1765_v21  ;;  %v1894_v16 = vunpack.c.h.bf16 %v3163_v18 }
 0x4d4   : > { %v1940_v29 = vpack.c.bf16 %v1912_v44, %v1911_v23 }
 0x4d5   : > { %v1939_v19 = vpack.c.bf16 %v1910_v8, %v1909_v9 }
 0x4d7   : > { %v2898_v31 = vpop.f32.mrb[60].mxu1  ;;  %2932 = vmatprep.mubr.msk.bf16.mxu0 %vm446_vm2, %v1939_v19 }
 0x4d8   : > { %v1778_v42 = vpop.f32.mrb[61].mxu1  ;;  %2933 = vmatmul.mubr.msk.bf16.gmra.mrb[52].mxu0 %vm446_vm2, %v1940_v29  ;;  %v1915_v34 = vadd.f32 %v2898_v31, %v1883_v55  ;;  %v1899_v55 = vunpack.c.l.bf16 %v3164_v38 }
 0x4d9   : > { %v2899_v7 = vpop.f32.mrb[62].mxu1  ;;  %v1913_v1 = vadd.f32 %v1881_v33, %v1778_v42  ;;  %v1897_v33 = vunpack.c.l.bf16 %v3165_v58 }
 0x4da   : > { %v1916_v20 = vadd.f32 %v2899_v7, %v1884_v43  ;;  %v1781_v41 = vpop.f32.mrb[63].mxu1  ;;  %v1900_v43 = vunpack.c.h.bf16 %v3164_v38 }
 0x4db   : > { %v1914_v57 = vadd.f32 %v1882_v37, %v1781_v41  ;;  %v1898_v37 = vunpack.c.h.bf16 %v3165_v58 }
 0x4dc   : > { %v1942_v24 = vpack.c.bf16 %v1916_v20, %v1915_v34 }
 0x4dd   : > { %v1941_v49 = vpack.c.bf16 %v1914_v57, %v1913_v1 }
 0x4df   : > { %v2902_v48 = vpop.f32.mrb[64].mxu1  ;;  %2936 = vmatprep.mubr.msk.bf16.mxu0 %vm446_vm2, %v1941_v49 }
 0x4e0   : > { %v1794_v17 = vpop.f32.mrb[65].mxu1  ;;  %2937 = vmatmul.mubr.msk.bf16.gmra.mrb[56].mxu0 %vm446_vm2, %v1942_v24  ;;  %v1919_v47 = vadd.f32 %v2902_v48, %v1887_v53  ;;  %v1903_v53 = vunpack.c.l.bf16 %v3166_v28 }
 0x4e1   : > { %v2903_v30 = vpop.f32.mrb[66].mxu1  ;;  %v1917_v60 = vadd.f32 %v1885_v6, %v1794_v17  ;;  %v1901_v6 = vunpack.c.l.bf16 %v3167_v52 }
 0x4e2   : > { %v1920_v56 = vadd.f32 %v2903_v30, %v1888_v46  ;;  %v1797_v13 = vpop.f32.mrb[67].mxu1  ;;  %v1904_v46 = vunpack.c.h.bf16 %v3166_v28 }
 0x4e3   : > { %v1918_v50 = vadd.f32 %v1886_v45, %v1797_v13  ;;  %v1902_v45 = vunpack.c.h.bf16 %v3167_v52 }
 0x4e4   : > { %v1944_v2 = vpack.c.bf16 %v1920_v56, %v1919_v47 }
 0x4e5   : > { %v1943_v3 = vpack.c.bf16 %v1918_v50, %v1917_v60 }
 0x4e7   : > { %v2906_v63 = vpop.f32.mrb[68].mxu1  ;;  %2940 = vmatprep.mubr.msk.bf16.mxu0 %vm446_vm2, %v1943_v3 }
 0x4e8   : > { %v1810_v22 = vpop.f32.mrb[69].mxu1  ;;  %2941 = vmatmul.mubr.msk.bf16.gmra.mrb[60].mxu0 %vm446_vm2, %v1944_v2  ;;  %v1923_v62 = vadd.f32 %v2906_v63, %v1891_v12 }
 0x4e9   : > { %v2907_v26 = vpop.f32.mrb[70].mxu1  ;;  %v1921_v32 = vadd.f32 %v1889_v51, %v1810_v22 }
 0x4ea   : > { %v1924_v25 = vadd.f32 %v2907_v26, %v1892_v36  ;;  %v1813_v61 = vpop.f32.mrb[71].mxu1 }
 0x4eb   : > { %v1922_v59 = vadd.f32 %v1890_v10, %v1813_v61 }
 0x4ec   : > { %v1946_v39 = vpack.c.bf16 %v1924_v25, %v1923_v62 }
 0x4ed   : > { %v1945_v40 = vpack.c.bf16 %v1922_v59, %v1921_v32 }
 0x4ef   : > { %2944 = vmatprep.mubr.msk.bf16.mxu0 %vm446_vm2, %v1945_v40 }
 0x4f0   : > { %2945 = vmatmul.mubr.msk.bf16.gmra.mrb[64].mxu0 %vm446_vm2, %v1946_v39 }
 0x503   : > { %v2910_v35 = vpop.f32.mrb[72].mxu1 }
 0x504   : > { %v1826_v4 = vpop.f32.mrb[73].mxu1  ;;  %v1927_v23 = vadd.f32 %v2910_v35, %v1895_v11 }
 0x505   : > { %v2911_v0 = vpop.f32.mrb[74].mxu1  ;;  %v1925_v9 = vadd.f32 %v1893_v54, %v1826_v4 }
 0x506   : > { %v1928_v44 = vadd.f32 %v2911_v0, %v1896_v14  ;;  %v1829_v21 = vpop.f32.mrb[75].mxu1 }
 0x507   : > { %v1926_v8 = vadd.f32 %v1894_v16, %v1829_v21 }
 0x508   : > { %v1948_v29 = vpack.c.bf16 %v1928_v44, %v1927_v23 }
 0x509   : > { %v1947_v19 = vpack.c.bf16 %v1926_v8, %v1925_v9 }
 0x50b   : > { %v2914_v31 = vpop.f32.mrb[76].mxu1  ;;  %2948 = vmatprep.mubr.msk.bf16.mxu0 %vm446_vm2, %v1947_v19 }
 0x50c   : > { %v1842_v42 = vpop.f32.mrb[77].mxu1  ;;  %2949 = vmatmul.mubr.msk.bf16.gmra.mrb[68].mxu0 %vm446_vm2, %v1948_v29  ;;  %v1931_v34 = vadd.f32 %v2914_v31, %v1899_v55 }
 0x50d   : > { %v2915_v7 = vpop.f32.mrb[78].mxu1  ;;  %v1929_v1 = vadd.f32 %v1897_v33, %v1842_v42 }
 0x50e   : > { %v1932_v20 = vadd.f32 %v2915_v7, %v1900_v43  ;;  %v1845_v41 = vpop.f32.mrb[79].mxu1 }
 0x50f   : > { %v1930_v57 = vadd.f32 %v1898_v37, %v1845_v41 }
 0x510   : > { %v1950_v24 = vpack.c.bf16 %v1932_v20, %v1931_v34 }
 0x511   : > { %v1949_v49 = vpack.c.bf16 %v1930_v57, %v1929_v1 }
 0x513   : > { %v2918_v48 = vpop.f32.mrb[80].mxu1  ;;  %2952 = vmatprep.mubr.msk.bf16.mxu0 %vm446_vm2, %v1949_v49 }
 0x514   : > { %v1858_v17 = vpop.f32.mrb[81].mxu1  ;;  %2953 = vmatmul.mubr.msk.bf16.gmra.mrb[72].mxu0 %vm446_vm2, %v1950_v24  ;;  %v1935_v47 = vadd.f32 %v2918_v48, %v1903_v53 }
 0x515   : > { %v2919_v30 = vpop.f32.mrb[82].mxu1  ;;  %v1933_v60 = vadd.f32 %v1901_v6, %v1858_v17 }
 0x516   : > { %v1936_v56 = vadd.f32 %v2919_v30, %v1904_v46  ;;  %v1861_v13 = vpop.f32.mrb[83].mxu1 }
 0x517   : > { %v1934_v50 = vadd.f32 %v1902_v45, %v1861_v13 }
 0x518   : > { %v1952_v2 = vpack.c.bf16 %v1936_v56, %v1935_v47 }
 0x519   : > { %v1951_v3 = vpack.c.bf16 %v1934_v50, %v1933_v60 }
 0x51b   : > { %2956 = vmatprep.mubr.msk.bf16.mxu0 %vm446_vm2, %v1951_v3 }
 0x51c   : > { %2957 = vmatmul.mubr.msk.bf16.gmra.mrb[76].mxu0 %vm446_vm2, %v1952_v2 }
 0x5a3   : > { %v2930_v12 = vpop.f32.mrb[48].mxu0 }
 0x5a4   : > { %v2083_v36 = vadd.f32 %v2930_v12, %v3740_v15  ;;  %v2074_v63 = vpop.f32.mrb[49].mxu0 }
 0x5a5   : > { %v2075_v27 = vadd.f32 %v3740_v15, %v2074_v63  ;;  %v2931_v51 = vpop.f32.mrb[50].mxu0 }
 0x5a6   : > { %v2608_v10 = vpack.c.bf16 %v2083_v36, %v2083_v36  ;;  %v2086_v22 = vadd.f32 %v2931_v51, %v3740_v15  ;;  %v2077_v26 = vpop.f32.mrb[51].mxu0 }
 0x5a7   : > { %v2606_v62 = vpack.c.bf16 %v2075_v27, %v2075_v27  ;;  %v2078_v25 = vadd.f32 %v3740_v15, %v2077_v26 }
 0x5a8   : > { %2332 = vst.msk [vmem:[%s3748_s20 + $0x8] sm:$0xf] %vm2329_vm5, %v2608_v10  ;;  %v2609_v61 = vpack.c.bf16 %v2086_v22, %v2086_v22 }
 0x5a9   : > { %2330 = vst.msk [vmem:[%s3748_s20] sm:$0xf] %vm2329_vm5, %v2606_v62  ;;  %v2607_v32 = vpack.c.bf16 %v2078_v25, %v2078_v25 }
 0x5aa   : > { %2333 = vst.msk [vmem:[%s3748_s20 + $0xc] sm:$0xf] %vm2329_vm5, %v2609_v61 }
 0x5ab   : > { %2331 = vst.msk [vmem:[%s3748_s20 + $0x4] sm:$0xf] %vm2329_vm5, %v2607_v32  ;;  %v2934_v59 = vpop.f32.mrb[52].mxu0 }
 0x5ac   : > { %v2099_v39 = vadd.f32 %v2934_v59, %v3740_v15  ;;  %v2090_v40 = vpop.f32.mrb[53].mxu0 }
 0x5ad   : > { %v2091_v5 = vadd.f32 %v3740_v15, %v2090_v40  ;;  %v2935_v11 = vpop.f32.mrb[54].mxu0 }
 0x5ae   : > { %v2612_v14 = vpack.c.bf16 %v2099_v39, %v2099_v39  ;;  %v2102_v35 = vadd.f32 %v2935_v11, %v3740_v15  ;;  %v2093_v18 = vpop.f32.mrb[55].mxu0 }
 0x5af   : > { %v2610_v54 = vpack.c.bf16 %v2091_v5, %v2091_v5  ;;  %v2094_v16 = vadd.f32 %v3740_v15, %v2093_v18 }
 0x5b0   : > { %2336 = vst.msk [vmem:[%s3748_s20 + $0x18] sm:$0xf] %vm2329_vm5, %v2612_v14  ;;  %v2613_v4 = vpack.c.bf16 %v2102_v35, %v2102_v35 }
 0x5b1   : > { %2334 = vst.msk [vmem:[%s3748_s20 + $0x10] sm:$0xf] %vm2329_vm5, %v2610_v54  ;;  %v2611_v0 = vpack.c.bf16 %v2094_v16, %v2094_v16 }
 0x5b2   : > { %2337 = vst.msk [vmem:[%s3748_s20 + $0x1c] sm:$0xf] %vm2329_vm5, %v2613_v4 }
 0x5b3   : > { %2335 = vst.msk [vmem:[%s3748_s20 + $0x14] sm:$0xf] %vm2329_vm5, %v2611_v0  ;;  %v2938_v23 = vpop.f32.mrb[56].mxu0 }
 0x5b4   : > { %v2115_v44 = vadd.f32 %v2938_v23, %v3740_v15  ;;  %v2106_v21 = vpop.f32.mrb[57].mxu0 }
 0x5b5   : > { %v2107_v9 = vadd.f32 %v3740_v15, %v2106_v21  ;;  %v2939_v8 = vpop.f32.mrb[58].mxu0 }
 0x5b6   : > { %v2616_v29 = vpack.c.bf16 %v2115_v44, %v2115_v44  ;;  %v2118_v19 = vadd.f32 %v2939_v8, %v3740_v15  ;;  %v2109_v38 = vpop.f32.mrb[59].mxu0 }
 0x5b7   : > { %v2614_v55 = vpack.c.bf16 %v2107_v9, %v2107_v9  ;;  %v2110_v43 = vadd.f32 %v3740_v15, %v2109_v38 }
 0x5b8   : > { %2340 = vst.msk [vmem:[%s3748_s20 + $0x28] sm:$0xf] %vm2329_vm5, %v2616_v29  ;;  %v2617_v31 = vpack.c.bf16 %v2118_v19, %v2118_v19 }
 0x5b9   : > { %2338 = vst.msk [vmem:[%s3748_s20 + $0x20] sm:$0xf] %vm2329_vm5, %v2614_v55  ;;  %v2615_v58 = vpack.c.bf16 %v2110_v43, %v2110_v43 }
 0x5ba   : > { %2341 = vst.msk [vmem:[%s3748_s20 + $0x2c] sm:$0xf] %vm2329_vm5, %v2617_v31 }
 0x5bb   : > { %2339 = vst.msk [vmem:[%s3748_s20 + $0x24] sm:$0xf] %vm2329_vm5, %v2615_v58  ;;  %v2942_v33 = vpop.f32.mrb[60].mxu0 }
 0x5bc   : > { %v2131_v37 = vadd.f32 %v2942_v33, %v3740_v15  ;;  %v2122_v42 = vpop.f32.mrb[61].mxu0 }
 0x5bd   : > { %v2123_v7 = vadd.f32 %v3740_v15, %v2122_v42  ;;  %v2943_v34 = vpop.f32.mrb[62].mxu0 }
 0x5be   : > { %v2620_v20 = vpack.c.bf16 %v2131_v37, %v2131_v37  ;;  %v2134_v41 = vadd.f32 %v2943_v34, %v3740_v15  ;;  %v2125_v1 = vpop.f32.mrb[63].mxu0 }
 0x5bf   : > { %v2618_v57 = vpack.c.bf16 %v2123_v7, %v2123_v7  ;;  %v2126_v24 = vadd.f32 %v3740_v15, %v2125_v1 }
 0x5c0   : > { %2344 = vst.msk [vmem:[%s3748_s20 + $0x38] sm:$0xf] %vm2329_vm5, %v2620_v20  ;;  %v2621_v49 = vpack.c.bf16 %v2134_v41, %v2134_v41 }
 0x5c1   : > { %2342 = vst.msk [vmem:[%s3748_s20 + $0x30] sm:$0xf] %vm2329_vm5, %v2618_v57  ;;  %v2619_v28 = vpack.c.bf16 %v2126_v24, %v2126_v24 }
 0x5c2   : > { %2345 = vst.msk [vmem:[%s3748_s20 + $0x3c] sm:$0xf] %vm2329_vm5, %v2621_v49 }
 0x5c3   : > { %2343 = vst.msk [vmem:[%s3748_s20 + $0x34] sm:$0xf] %vm2329_vm5, %v2619_v28  ;;  %v2946_v53 = vpop.f32.mrb[64].mxu0 }
 0x5c4   : > { %v2147_v46 = vadd.f32 %v2946_v53, %v3740_v15  ;;  %v2138_v48 = vpop.f32.mrb[65].mxu0 }
 0x5c5   : > { %v2139_v52 = vadd.f32 %v3740_v15, %v2138_v48  ;;  %v2947_v6 = vpop.f32.mrb[66].mxu0 }
 0x5c6   : > { %v2624_v45 = vpack.c.bf16 %v2147_v46, %v2147_v46  ;;  %v2150_v17 = vadd.f32 %v2947_v6, %v3740_v15  ;;  %v2141_v30 = vpop.f32.mrb[67].mxu0 }
 0x5c7   : > { %v2622_v47 = vpack.c.bf16 %v2139_v52, %v2139_v52  ;;  %v2142_v56 = vadd.f32 %v3740_v15, %v2141_v30 }
 0x5c8   : > { %2348 = vst.msk [vmem:[%s3748_s20 + $0x48] sm:$0xf] %vm2329_vm5, %v2624_v45  ;;  %v2625_v13 = vpack.c.bf16 %v2150_v17, %v2150_v17 }
 0x5c9   : > { %2346 = vst.msk [vmem:[%s3748_s20 + $0x40] sm:$0xf] %vm2329_vm5, %v2622_v47  ;;  %v2623_v60 = vpack.c.bf16 %v2142_v56, %v2142_v56 }
 0x5ca   : > { %2349 = vst.msk [vmem:[%s3748_s20 + $0x4c] sm:$0xf] %vm2329_vm5, %v2625_v13 }
 0x5cb   : > { %2347 = vst.msk [vmem:[%s3748_s20 + $0x44] sm:$0xf] %vm2329_vm5, %v2623_v60 }
 0x5df   : > { %v2950_v50 = vpop.f32.mrb[68].mxu0 }
 0x5e0   : > { %v2163_v2 = vadd.f32 %v2950_v50, %v3740_v15  ;;  %v2154_v3 = vpop.f32.mrb[69].mxu0 }
 0x5e1   : > { %v2155_v12 = vadd.f32 %v3740_v15, %v2154_v3  ;;  %v2951_v36 = vpop.f32.mrb[70].mxu0 }
 0x5e2   : > { %v2628_v63 = vpack.c.bf16 %v2163_v2, %v2163_v2  ;;  %v2166_v27 = vadd.f32 %v2951_v36, %v3740_v15  ;;  %v2157_v51 = vpop.f32.mrb[71].mxu0 }
 0x5e3   : > { %v2626_v10 = vpack.c.bf16 %v2155_v12, %v2155_v12  ;;  %v2158_v22 = vadd.f32 %v3740_v15, %v2157_v51 }
 0x5e4   : > { %2352 = vst.msk [vmem:[%s3748_s20 + $0x58] sm:$0xf] %vm2329_vm5, %v2628_v63  ;;  %v2629_v26 = vpack.c.bf16 %v2166_v27, %v2166_v27 }
 0x5e5   : > { %2350 = vst.msk [vmem:[%s3748_s20 + $0x50] sm:$0xf] %vm2329_vm5, %v2626_v10  ;;  %v2627_v62 = vpack.c.bf16 %v2158_v22, %v2158_v22 }
 0x5e6   : > { %2353 = vst.msk [vmem:[%s3748_s20 + $0x5c] sm:$0xf] %vm2329_vm5, %v2629_v26 }
 0x5e7   : > { %2351 = vst.msk [vmem:[%s3748_s20 + $0x54] sm:$0xf] %vm2329_vm5, %v2627_v62  ;;  %v2954_v25 = vpop.f32.mrb[72].mxu0 }
 0x5e8   : > { %v2179_v61 = vadd.f32 %v2954_v25, %v3740_v15  ;;  %v2170_v32 = vpop.f32.mrb[73].mxu0 }
 0x5e9   : > { %v2171_v59 = vadd.f32 %v3740_v15, %v2170_v32  ;;  %v2955_v39 = vpop.f32.mrb[74].mxu0 }
 0x5ea   : > { %v2632_v40 = vpack.c.bf16 %v2179_v61, %v2179_v61  ;;  %v2182_v5 = vadd.f32 %v2955_v39, %v3740_v15  ;;  %v2173_v11 = vpop.f32.mrb[75].mxu0 }
 0x5eb   : > { %v2630_v14 = vpack.c.bf16 %v2171_v59, %v2171_v59  ;;  %v2174_v35 = vadd.f32 %v3740_v15, %v2173_v11 }
 0x5ec   : > { %2356 = vst.msk [vmem:[%s3748_s20 + $0x68] sm:$0xf] %vm2329_vm5, %v2632_v40  ;;  %v2633_v18 = vpack.c.bf16 %v2182_v5, %v2182_v5 }
 0x5ed   : > { %2354 = vst.msk [vmem:[%s3748_s20 + $0x60] sm:$0xf] %vm2329_vm5, %v2630_v14  ;;  %v2631_v54 = vpack.c.bf16 %v2174_v35, %v2174_v35 }
 0x5ee   : > { %2357 = vst.msk [vmem:[%s3748_s20 + $0x6c] sm:$0xf] %vm2329_vm5, %v2633_v18 }
 0x5ef   : > { %2355 = vst.msk [vmem:[%s3748_s20 + $0x64] sm:$0xf] %vm2329_vm5, %v2631_v54  ;;  %v2958_v16 = vpop.f32.mrb[76].mxu0 }
 0x5f0   : > { %v2195_v4 = vadd.f32 %v2958_v16, %v3740_v15  ;;  %v2186_v0 = vpop.f32.mrb[77].mxu0 }
 0x5f1   : > { %v2187_v23 = vadd.f32 %v3740_v15, %v2186_v0  ;;  %v2959_v44 = vpop.f32.mrb[78].mxu0 }
 0x5f2   : > { %v2636_v21 = vpack.c.bf16 %v2195_v4, %v2195_v4  ;;  %v2198_v9 = vadd.f32 %v2959_v44, %v3740_v15  ;;  %v2189_v8 = vpop.f32.mrb[79].mxu0 }
 0x5f3   : > { %v2634_v29 = vpack.c.bf16 %v2187_v23, %v2187_v23  ;;  %v2190_v19 = vadd.f32 %v3740_v15, %v2189_v8 }
 0x5f4   : > { %2360 = vst.msk [vmem:[%s3748_s20 + $0x78] sm:$0xf] %vm2329_vm5, %v2636_v21  ;;  %v2637_v38 = vpack.c.bf16 %v2198_v9, %v2198_v9 }
 0x5f5   : > { %2358 = vst.msk [vmem:[%s3748_s20 + $0x70] sm:$0xf] %vm2329_vm5, %v2634_v29  ;;  %v2635_v55 = vpack.c.bf16 %v2190_v19, %v2190_v19 }
 0x5f6   : > { %2361 = vst.msk [vmem:[%s3748_s20 + $0x7c] sm:$0xf] %vm2329_vm5, %v2637_v38 }
 0x5f7   : > { %2359 = vst.msk [vmem:[%s3748_s20 + $0x74] sm:$0xf] %vm2329_vm5, %v2635_v55 }
 0x5f8 PF: > { %s17_s24 = sadd.s32 1, %s3174_s24  }
 0x5f9   : > { %p14_p4 = scmp.ge.s32.totalorder %s17_s24, 4  }
 0x5fb   :  { %16 = sbr.rel (!%p14_p4) target bundleno = 1 (0x1), region = 81 }

// kernel: dual_text_controlled_unet_forward.13
= control target key start
LH: loop header
LB: loop body
LE: loop exit
PB: predicated region body
PF: predicated region fallthrough
CT: control target
= control target key end

     0   :  { %s3004_s24 = smov 0   ;;  %s3599_s0 = inlined_call_operand.vmem [shape: bf16[2,256,64], index: 0, kind: input, shape index: {}]   ;;  %s3600_s1 = inlined_call_operand.vmem [shape: bf16[2,8,32], index: 1, kind: input, shape index: {}]   ;;  %s3601_s2 = inlined_call_operand.vmem [shape: bf16[64,32], index: 2, kind: input, shape index: {}]   ;;  %s3602_s3 = inlined_call_operand.vmem [shape: bf16[32,64], index: 3, kind: input, shape index: {}]   ;;  %s3603_s4 = inlined_call_operand.vmem [shape: bf16[32,64], index: 4, kind: input, shape index: {}]   ;;  %s3604_s5 = inlined_call_operand.vmem [shape: bf16[64,128], index: 5, kind: input, shape index: {}]   ;;  %s3605_s6 = inlined_call_operand.vmem [shape: f32[1,128], index: 6, kind: input, shape index: {}]   ;;  %s3606_s7 = inlined_call_operand.vmem [shape: f32[2,256,128], index: 7, kind: output, shape index: {}]  }
   0x1 LB: > { %s2290_s25 = sadd.s32 4294967295, %s2959_s24   ;;  %p2294_p0 = scmp.ge.s32.totalorder %s2959_s24, 1  ;;  %s2959_s24 = sphi %s3004_s24, %s17_s24  }
   0x2   : > { %p246_p1 = scmp.lt.s32.totalorder %s2959_s24, 3 }
   0x4   : > { %p247_p2 = pnand %p2294_p0, %p246_p1 }
   0x5   : > { %v2765_v0 = vld [vmem:[%s3601_s2] sm:$0xff] (!%p247_p2)   ;;  %v2766_v1 = vld [vmem:[%s3601_s2 + $0x8] sm:$0xff] (!%p247_p2)   ;;  %v2961_v2 = vmov (!%p247_p2), 0.0   ;;  %vm2962_vm0 = vmmov (!%p247_p2), 0   ;;  %p282_p3 = scmp.lt.s32.totalorder (!%p247_p2), %s2290_s25, 1  ;;  %v2768_v4 = vld [vmem:[%s3601_s2 + $0x10] sm:$0xff] (!%p247_p2)  }
   0x6   : > { %250 = sbr.rel (%p247_p2) target bundleno = 1522 (0x5f2), region = 48  ;;  %2582 = vmatprep.subr.bf16.mxu1 (!%p247_p2), %v2961_v2  ;;  %2542 = vmatprep.subr.bf16.mxu0 (!%p247_p2), %v2765_v0  ;;  %v2767_v3 = vld [vmem:[%s3602_s3] sm:$0xff] (!%p247_p2)   ;;  %v2769_v5 = vld [vmem:[%s3602_s3 + $0x8] sm:$0xff] (!%p247_p2)   ;;  %v2770_v6 = vld [vmem:[%s3601_s2 + $0x18] sm:$0xff] (!%p247_p2)   ;;  %vm668_vm1 = vcmask (!%p247_p2), 261120   ;;  %vm442_vm2 = vcmask (!%p247_p2), 523264  }
   0x7   : > { %2586 = vmatprep.mubr.msk.bf16.mxu1 (!%p247_p2), %vm2962_vm0, %v2961_v2  ;;  %2543 = vmatpush3.bf16.msra.mxu0 (!%p247_p2), %v2765_v0  ;;  %vm1036_vm3 = vcmask (!%p247_p2), 64512   ;;  %s2963_s23 = smov (!%p247_p2), 96   ;;  %vm1457_vm4 = vcmask (!%p247_p2), 1043456  }
   0x8   : > { %2544 = vmatprep.subr.bf16.mxu0 (!%p247_p2), %v2766_v1  ;;  %2583 = vmatpush3.bf16.msra.mxu1 (!%p247_p2), %v2767_v3 }
   0x9   : > { %2584 = vmatprep.subr.bf16.mxu1 (!%p247_p2), %v2961_v2 }
   0xb   : > { %2545 = vmatpush3.bf16.msra.mxu0 (!%p247_p2), %v2766_v1 }
   0xc   : > { %2546 = vmatprep.subr.bf16.mxu0 (!%p247_p2), %v2768_v4  ;;  %2585 = vmatpush3.bf16.msra.mxu1 (!%p247_p2), %v2769_v5 }
   0xd   : > { %s3608_s25 = smov (!%p282_p3, %s2290_s25), 1 }
   0xe   : > { %s2429_s13 = sshll.u32 %s3608_s25, 7  ;;  %s2297_s14 = sshll.u32 %s3608_s25, 2 }
   0xf   : > { %s3034_s17 = scalar_lea.vmem %s3599_s0, %s2429_s13  ;;  %s290_s20 = scalar_lea.vmem %s3600_s1, %s2297_s14  ;;  %2547 = vmatpush3.bf16.msra.mxu0 %v2768_v4 }
  0x10   : > { %v329_v7 = vld [vmem:[%s290_s20] sm:$0xf]  ;;  %v299_v9 = vld [vmem:[%s3034_s17 + $0x8] sm:$0xff]   ;;  %2548 = vmatprep.subr.bf16.mxu0 %v2770_v6  ;;  %v301_v10 = vld [vmem:[%s3034_s17 + $0x10] sm:$0xff]   ;;  %s2430_s15 = sshll.u32 %s3608_s25, 8 }
  0x11   : > { %v297_v8 = vld [vmem:[%s3034_s17] sm:$0xff]   ;;  %2587 = vmatmul.mubr.msk.bf16.vlgmr.msra.gmra.mrb[0].mxu1 %vm668_vm1, %v329_v7  ;;  %v303_v11 = vld [vmem:[%s3034_s17 + $0x18] sm:$0xff]   ;;  %v307_v13 = vld [vmem:[%s3034_s17 + $0x28] sm:$0xff]   ;;  %s3530_s20 = scalar_lea.vmem %s3606_s7, %s2430_s15 }
  0x12   : > { %2550 = vmatprep.mubr.msk.bf16.mxu0 %vm442_vm2, %v297_v8  ;;  %v305_v12 = vld [vmem:[%s3034_s17 + $0x20] sm:$0xff]   ;;  %v309_v14 = vld [vmem:[%s3034_s17 + $0x30] sm:$0xff]   ;;  %v311_v15 = vld [vmem:[%s3034_s17 + $0x38] sm:$0xff]  }
  0x13   : > { %2549 = vmatpush3.bf16.msra.mxu0 %v2770_v6  ;;  %v313_v16 = vld [vmem:[%s3034_s17 + $0x40] sm:$0xff]   ;;  %v315_v17 = vld [vmem:[%s3034_s17 + $0x48] sm:$0xff]   ;;  %v317_v18 = vld [vmem:[%s3034_s17 + $0x50] sm:$0xff]  }
  0x14   : > { %v319_v19 = vld [vmem:[%s3034_s17 + $0x58] sm:$0xff]   ;;  %v321_v20 = vld [vmem:[%s3034_s17 + $0x60] sm:$0xff]   ;;  %v323_v21 = vld [vmem:[%s3034_s17 + $0x68] sm:$0xff]  }
  0x15   : > { %v325_v22 = vld [vmem:[%s3034_s17 + $0x70] sm:$0xff]   ;;  %v327_v23 = vld [vmem:[%s3034_s17 + $0x78] sm:$0xff]  }
  0x16   : > { %2551 = vmatmul.mubr.msk.bf16.vlgmr.msra.gmra.mrb[0].mxu0 %vm442_vm2, %v299_v9 }
  0x17   : > { %2554 = vmatprep.mubr.msk.bf16.mxu0 %vm442_vm2, %v301_v10 }
  0x1e   : > { %2555 = vmatmul.mubr.msk.bf16.gmra.mrb[4].mxu0 %vm442_vm2, %v303_v11 }
  0x1f   : > { %2558 = vmatprep.mubr.msk.bf16.mxu0 %vm442_vm2, %v305_v12 }
  0x26   : > { %2559 = vmatmul.mubr.msk.bf16.gmra.mrb[8].mxu0 %vm442_vm2, %v307_v13 }
  0x27   : > { %2562 = vmatprep.mubr.msk.bf16.mxu0 %vm442_vm2, %v309_v14 }
  0x2e   : > { %2563 = vmatmul.mubr.msk.bf16.gmra.mrb[12].mxu0 %vm442_vm2, %v311_v15 }
  0x2f   : > { %2566 = vmatprep.mubr.msk.bf16.mxu0 %vm442_vm2, %v313_v16 }
  0x36   : > { %2567 = vmatmul.mubr.msk.bf16.gmra.mrb[16].mxu0 %vm442_vm2, %v315_v17 }
  0x37   : > { %2570 = vmatprep.mubr.msk.bf16.mxu0 %vm442_vm2, %v317_v18 }
  0x3e   : > { %2571 = vmatmul.mubr.msk.bf16.gmra.mrb[20].mxu0 %vm442_vm2, %v319_v19 }
  0x3f   : > { %2574 = vmatprep.mubr.msk.bf16.mxu0 %vm442_vm2, %v321_v20 }
  0x46   : > { %2575 = vmatmul.mubr.msk.bf16.gmra.mrb[24].mxu0 %vm442_vm2, %v323_v21 }
  0x47   : > { %2578 = vmatprep.mubr.msk.bf16.mxu0 %vm442_vm2, %v325_v22 }
  0x4e   : > { %2579 = vmatmul.mubr.msk.bf16.gmra.mrb[28].mxu0 %vm442_vm2, %v327_v23 }
  0xe4   : > { %v3075_v24 = vpop.f32.mrb[0].mxu1 }
  0xe5   : > { %v2588_v25 = vpop.f32.mrb[1].mxu1  ;;  %2590 = vmatprep.subr.msk.mxu1 %vm668_vm1, %v3075_v24 }
  0xe6   : > { %v709_v26 = vpop.f32.mrb[2].mxu1  ;;  %2591 = vmatpush3.xpose.msk.msra.mxu1 %vm668_vm1, %v3075_v24 }
  0xe7   : > { %v2589_v27 = vpop.f32.mrb[3].mxu1 }
  0xe9   : > { %v2552_v28 = vpop.f32.mrb[0].mxu0 }
  0xea   : > { %v525_v29 = vpop.f32.mrb[1].mxu0 }
  0xeb   : > { %v2553_v30 = vpop.f32.mrb[2].mxu0  ;;  %2592 = vmatprep.mubr.msk.f32.mxu1 %vm668_vm1, %v525_v29 }
  0xec   : > { %v528_v31 = vpop.f32.mrb[3].mxu0 }
  0xed   : > { %2593 = vmatmul.mubr.msk.f32.vlgmr.msra.gmra.mrb[4].mxu1 %vm668_vm1, %v528_v31 }
  0xee   : > { %2595 = vmatprep.mubr.msk.f32.mxu1 %vm668_vm1, %v2552_v28 }
  0xf1   : > { %v2556_v32 = vpop.f32.mrb[4].mxu0  ;;  %2596 = vmatmul.mubr.msk.f32.gmra.mrb[6].mxu1 %vm668_vm1, %v2553_v30 }
  0xf2   : > { %v541_v33 = vpop.f32.mrb[5].mxu0 }
  0xf3   : > { %v2557_v34 = vpop.f32.mrb[6].mxu0  ;;  %2598 = vmatprep.mubr.msk.f32.mxu1 %vm668_vm1, %v541_v33 }
  0xf4   : > { %v544_v35 = vpop.f32.mrb[7].mxu0 }
  0xf5   : > { %2599 = vmatmul.mubr.msk.f32.gmra.mrb[8].mxu1 %vm668_vm1, %v544_v35 }
  0xf6   : > { %2601 = vmatprep.mubr.msk.f32.mxu1 %vm668_vm1, %v2556_v32 }
  0xf9   : > { %v2560_v36 = vpop.f32.mrb[8].mxu0  ;;  %2602 = vmatmul.mubr.msk.f32.gmra.mrb[10].mxu1 %vm668_vm1, %v2557_v34 }
  0xfa   : > { %v557_v37 = vpop.f32.mrb[9].mxu0 }
  0xfb   : > { %v2561_v38 = vpop.f32.mrb[10].mxu0  ;;  %2604 = vmatprep.mubr.msk.f32.mxu1 %vm668_vm1, %v557_v37 }
  0xfc   : > { %v560_v39 = vpop.f32.mrb[11].mxu0 }
  0xfd   : > { %2605 = vmatmul.mubr.msk.f32.gmra.mrb[12].mxu1 %vm668_vm1, %v560_v39 }
  0xfe   : > { %2607 = vmatprep.mubr.msk.f32.mxu1 %vm668_vm1, %v2560_v36 }
 0x101   : > { %v2564_v40 = vpop.f32.mrb[12].mxu0  ;;  %2608 = vmatmul.mubr.msk.f32.gmra.mrb[14].mxu1 %vm668_vm1, %v2561_v38 }
 0x102   : > { %v573_v41 = vpop.f32.mrb[13].mxu0 }
 0x103   : > { %v2565_v42 = vpop.f32.mrb[14].mxu0  ;;  %2610 = vmatprep.mubr.msk.f32.mxu1 %vm668_vm1, %v573_v41 }
 0x104   : > { %v576_v43 = vpop.f32.mrb[15].mxu0 }
 0x105   : > { %2611 = vmatmul.mubr.msk.f32.gmra.mrb[16].mxu1 %vm668_vm1, %v576_v43 }
 0x106   : > { %2613 = vmatprep.mubr.msk.f32.mxu1 %vm668_vm1, %v2564_v40 }
 0x109   : > { %v2568_v44 = vpop.f32.mrb[16].mxu0  ;;  %2614 = vmatmul.mubr.msk.f32.gmra.mrb[18].mxu1 %vm668_vm1, %v2565_v42 }
 0x10a   : > { %v589_v45 = vpop.f32.mrb[17].mxu0 }
 0x10b   : > { %v2569_v46 = vpop.f32.mrb[18].mxu0  ;;  %2616 = vmatprep.mubr.msk.f32.mxu1 %vm668_vm1, %v589_v45 }
 0x10c   : > { %v592_v47 = vpop.f32.mrb[19].mxu0 }
 0x10d   : > { %2617 = vmatmul.mubr.msk.f32.gmra.mrb[20].mxu1 %vm668_vm1, %v592_v47 }
 0x10e   : > { %2619 = vmatprep.mubr.msk.f32.mxu1 %vm668_vm1, %v2568_v44 }
 0x111   : > { %v2572_v48 = vpop.f32.mrb[20].mxu0  ;;  %2620 = vmatmul.mubr.msk.f32.gmra.mrb[22].mxu1 %vm668_vm1, %v2569_v46 }
 0x112   : > { %v605_v49 = vpop.f32.mrb[21].mxu0 }
 0x113   : > { %v2573_v50 = vpop.f32.mrb[22].mxu0  ;;  %2622 = vmatprep.mubr.msk.f32.mxu1 %vm668_vm1, %v605_v49 }
 0x114   : > { %v608_v51 = vpop.f32.mrb[23].mxu0 }
 0x115   : > { %2623 = vmatmul.mubr.msk.f32.gmra.mrb[24].mxu1 %vm668_vm1, %v608_v51 }
 0x116   : > { %2625 = vmatprep.mubr.msk.f32.mxu1 %vm668_vm1, %v2572_v48 }
 0x119   : > { %v2576_v52 = vpop.f32.mrb[24].mxu0  ;;  %2626 = vmatmul.mubr.msk.f32.gmra.mrb[26].mxu1 %vm668_vm1, %v2573_v50 }
 0x11a   : > { %v621_v53 = vpop.f32.mrb[25].mxu0 }
 0x11b   : > { %v2577_v54 = vpop.f32.mrb[26].mxu0  ;;  %2628 = vmatprep.mubr.msk.f32.mxu1 %vm668_vm1, %v621_v53 }
 0x11c   : > { %v624_v55 = vpop.f32.mrb[27].mxu0 }
 0x11d   : > { %2629 = vmatmul.mubr.msk.f32.gmra.mrb[28].mxu1 %vm668_vm1, %v624_v55 }
 0x11e   : > { %2631 = vmatprep.mubr.msk.f32.mxu1 %vm668_vm1, %v2576_v52 }
 0x121   : > { %v2580_v56 = vpop.f32.mrb[28].mxu0  ;;  %2632 = vmatmul.mubr.msk.f32.gmra.mrb[30].mxu1 %vm668_vm1, %v2577_v54 }
 0x122   : > { %v637_v57 = vpop.f32.mrb[29].mxu0 }
 0x123   : > { %v2581_v58 = vpop.f32.mrb[30].mxu0  ;;  %2634 = vmatprep.mubr.msk.f32.mxu1 %vm668_vm1, %v637_v57 }
 0x124   : > { %v640_v59 = vpop.f32.mrb[31].mxu0 }
 0x125   : > { %2635 = vmatmul.mubr.msk.f32.gmra.mrb[32].mxu1 %vm668_vm1, %v640_v59 }
 0x126   : > { %2637 = vmatprep.mubr.msk.f32.mxu1 %vm668_vm1, %v2580_v56 }
 0x129   : > { %2638 = vmatmul.mubr.msk.f32.gmra.mrb[34].mxu1 %vm668_vm1, %v2581_v58 }
 0x1c0   : > { %v3113_v60 = vpop.f32.mrb[4].mxu1 }
 0x1c1   : > { %v3115_v61 = vpop.f32.mrb[5].mxu1  ;;  %v1040_v62 = vsel %vm1036_vm3, %v3113_v60, -inf }
 0x1c2   : > { %1041 = vmax.xlane.f32.xlu0 %v1040_v62  ;;  %v1037_v1 = vsel %vm1036_vm3, %v3115_v61, -inf }
 0x1c4   : > { %v3119_v63 = vpop.f32.mrb[6].mxu1 }
 0x1c5   : > { %v3121_v0 = vpop.f32.mrb[7].mxu1  ;;  %v1046_v2 = vsel %vm1036_vm3, %v3119_v63, -inf }
 0x1c6   : > { %1038 = vmax.xlane.f32.xlu0 %v1037_v1  ;;  %1047 = vmax.xlane.f32.xlu1 %v1046_v2  ;;  %v1043_v5 = vsel %vm1036_vm3, %v3121_v0, -inf }
 0x1c8   : > { %v3127_v3 = vpop.f32.mrb[8].mxu1 }
 0x1c9   : > { %v3129_v4 = vpop.f32.mrb[9].mxu1  ;;  %v1052_v9 = vsel %vm1036_vm3, %v3127_v3, -inf }
 0x1ca   : > { %1044 = vmax.xlane.f32.xlu1 %v1043_v5  ;;  %v1049_v6 = vsel %vm1036_vm3, %v3129_v4, -inf }
 0x1cb   : > { %1050 = vmax.xlane.f32.xlu0 %v1049_v6 }
 0x1cc   : > { %v3135_v7 = vpop.f32.mrb[10].mxu1 }
 0x1cd   : > { %v3137_v8 = vpop.f32.mrb[11].mxu1  ;;  %v1058_v13 = vsel %vm1036_vm3, %v3135_v7, -inf }
 0x1ce   : > { %1053 = vmax.xlane.f32.xlu1 %v1052_v9  ;;  %v1055_v10 = vsel %vm1036_vm3, %v3137_v8, -inf }
 0x1cf   : > { %1056 = vmax.xlane.f32.xlu0 %v1055_v10 }
 0x1d0   : > { %v3143_v11 = vpop.f32.mrb[12].mxu1 }
 0x1d1   : > { %v3145_v12 = vpop.f32.mrb[13].mxu1  ;;  %v1064_v17 = vsel %vm1036_vm3, %v3143_v11, -inf }
 0x1d2   : > { %1059 = vmax.xlane.f32.xlu1 %v1058_v13  ;;  %v1061_v14 = vsel %vm1036_vm3, %v3145_v12, -inf }
 0x1d3   : > { %1062 = vmax.xlane.f32.xlu0 %v1061_v14 }
 0x1d4   : > { %v3151_v15 = vpop.f32.mrb[14].mxu1 }
 0x1d5   : > { %v3153_v16 = vpop.f32.mrb[15].mxu1  ;;  %v1070_v21 = vsel %vm1036_vm3, %v3151_v15, -inf }
 0x1d6   : > { %1065 = vmax.xlane.f32.xlu1 %v1064_v17  ;;  %v1067_v18 = vsel %vm1036_vm3, %v3153_v16, -inf }
 0x1d7   : > { %1068 = vmax.xlane.f32.xlu0 %v1067_v18 }
 0x1d8   : > { %v3159_v19 = vpop.f32.mrb[16].mxu1 }
 0x1d9   : > { %v3161_v20 = vpop.f32.mrb[17].mxu1  ;;  %v1076_v26 = vsel %vm1036_vm3, %v3159_v19, -inf }
 0x1da   : > { %1071 = vmax.xlane.f32.xlu1 %v1070_v21  ;;  %v1073_v22 = vsel %vm1036_vm3, %v3161_v20, -inf }
 0x1db   : > { %1074 = vmax.xlane.f32.xlu0 %v1073_v22 }
 0x1dc   : > { %v3167_v23 = vpop.f32.mrb[18].mxu1 }
 0x1dd   : > { %v3169_v25 = vpop.f32.mrb[19].mxu1  ;;  %v1082_v30 = vsel %vm1036_vm3, %v3167_v23, -inf }
 0x1de   : > { %1077 = vmax.xlane.f32.xlu1 %v1076_v26  ;;  %v1079_v27 = vsel %vm1036_vm3, %v3169_v25, -inf }
 0x1df   : > { %1080 = vmax.xlane.f32.xlu0 %v1079_v27 }
 0x1e0   : > { %v3175_v28 = vpop.f32.mrb[20].mxu1 }
 0x1e1   : > { %v3177_v29 = vpop.f32.mrb[21].mxu1  ;;  %v1088_v32 = vsel %vm1036_vm3, %v3175_v28, -inf }
 0x1e2   : > { %1083 = vmax.xlane.f32.xlu1 %v1082_v30  ;;  %v1085_v31 = vsel %vm1036_vm3, %v3177_v29, -inf }
 0x1e3   : > { %1086 = vmax.xlane.f32.xlu0 %v1085_v31 }
 0x1e4   : > { %v3185_v33 = vpop.f32.mrb[22].mxu1 }
 0x1e5   : > { %v3187_v34 = vpop.f32.mrb[23].mxu1  ;;  %v1094_v36 = vsel %vm1036_vm3, %v3185_v33, -inf }
 0x1e6   : > { %1089 = vmax.xlane.f32.xlu1 %v1088_v32  ;;  %v1091_v35 = vsel %vm1036_vm3, %v3187_v34, -inf }
 0x1e7   : > { %1092 = vmax.xlane.f32.xlu0 %v1091_v35 }
 0x1e8   : > { %v3193_v37 = vpop.f32.mrb[24].mxu1 }
 0x1e9   : > { %v3195_v38 = vpop.f32.mrb[25].mxu1  ;;  %v1100_v40 = vsel %vm1036_vm3, %v3193_v37, -inf }
 0x1ea   : > { %1095 = vmax.xlane.f32.xlu1 %v1094_v36  ;;  %v1097_v39 = vsel %vm1036_vm3, %v3195_v38, -inf }
 0x1eb   : > { %1098 = vmax.xlane.f32.xlu0 %v1097_v39 }
 0x1ec   : > { %v3201_v41 = vpop.f32.mrb[26].mxu1 }
 0x1ed   : > { %v3203_v42 = vpop.f32.mrb[27].mxu1  ;;  %v1106_v44 = vsel %vm1036_vm3, %v3201_v41, -inf }
 0x1ee   : > { %1101 = vmax.xlane.f32.xlu1 %v1100_v40  ;;  %v1103_v43 = vsel %vm1036_vm3, %v3203_v42, -inf }
 0x1ef   : > { %1104 = vmax.xlane.f32.xlu0 %v1103_v43 }
 0x1f0   : > { %v3209_v45 = vpop.f32.mrb[28].mxu1 }
 0x1f1   : > { %v3211_v46 = vpop.f32.mrb[29].mxu1  ;;  %v1112_v48 = vsel %vm1036_vm3, %v3209_v45, -inf }
 0x1f2   : > { %1107 = vmax.xlane.f32.xlu1 %v1106_v44  ;;  %v1109_v47 = vsel %vm1036_vm3, %v3211_v46, -inf }
 0x1f3   : > { %1110 = vmax.xlane.f32.xlu0 %v1109_v47 }
 0x1f4   : > { %v3217_v49 = vpop.f32.mrb[30].mxu1 }
 0x1f5   : > { %v3219_v50 = vpop.f32.mrb[31].mxu1  ;;  %v1118_v52 = vsel %vm1036_vm3, %v3217_v49, -inf }
 0x1f6   : > { %1113 = vmax.xlane.f32.xlu1 %v1112_v48  ;;  %v1115_v51 = vsel %vm1036_vm3, %v3219_v50, -inf }
 0x1f7   : > { %1116 = vmax.xlane.f32.xlu0 %v1115_v51 }
 0x1f8   : > { %v3225_v53 = vpop.f32.mrb[32].mxu1 }
 0x1f9   : > { %v3227_v54 = vpop.f32.mrb[33].mxu1  ;;  %v1124_v56 = vsel %vm1036_vm3, %v3225_v53, -inf }
 0x1fa   : > { %1119 = vmax.xlane.f32.xlu1 %v1118_v52  ;;  %v1121_v55 = vsel %vm1036_vm3, %v3227_v54, -inf }
 0x1fb   : > { %1122 = vmax.xlane.f32.xlu0 %v1121_v55 }
 0x1fc   : > { %v3233_v57 = vpop.f32.mrb[34].mxu1 }
 0x1fd   : > { %v3235_v58 = vpop.f32.mrb[35].mxu1  ;;  %v1130_v62 = vsel %vm1036_vm3, %v3233_v57, -inf }
 0x1fe   : > { %1125 = vmax.xlane.f32.xlu1 %v1124_v56  ;;  %v1127_v59 = vsel %vm1036_vm3, %v3235_v58, -inf }
 0x1ff   : > { %1128 = vmax.xlane.f32.xlu0 %v1127_v59 }
 0x202   : > { %1131 = vmax.xlane.f32.xlu1 %v1130_v62 }
 0x24f   : > { %v1042_v1 = vpop.xlane.xlu0 %1041 }
 0x250   : > { %v1134_v2 = vsub.f32 %v3113_v60, %v1042_v1 }
 0x252   : > { %v1167_v5 = vmul.f32 1.442695, %v1134_v2 }
 0x253   : > { %v1039_v6 = vpop.xlane.xlu0 %1038  ;;  %v1048_v9 = vpop.xlane.xlu1 %1047 }
 0x254   : > { %2809 = vpow2.f32 %v1167_v5  ;;  %v1133_v10 = vsub.f32 %v3115_v61, %v1039_v6  ;;  %v1136_v13 = vsub.f32 %v3119_v63, %v1048_v9 }
 0x256   : > { %v1165_v14 = vmul.f32 1.442695, %v1133_v10  ;;  %v1171_v17 = vmul.f32 1.442695, %v1136_v13 }
 0x257   : > { %v1045_v18 = vpop.xlane.xlu1 %1044 }
 0x258   : > { %2811 = vpow2.f32 %v1165_v14  ;;  %v1135_v21 = vsub.f32 %v3121_v0, %v1045_v18  ;;  %v1051_v22 = vpop.xlane.xlu0 %1050 }
 0x259   : > { %2813 = vpow2.f32 %v1171_v17  ;;  %v1137_v26 = vsub.f32 %v3129_v4, %v1051_v22 }
 0x25a   : > { %v1169_v27 = vmul.f32 1.442695, %v1135_v21 }
 0x25b   : > { %v1173_v60 = vmul.f32 1.442695, %v1137_v26  ;;  %v1054_v30 = vpop.xlane.xlu1 %1053 }
 0x25c   : > { %2815 = vpow2.f32 %v1169_v27  ;;  %v1138_v31 = vsub.f32 %v3127_v3, %v1054_v30  ;;  %v1057_v32 = vpop.xlane.xlu0 %1056 }
 0x25d   : > { %v1139_v61 = vsub.f32 %v3137_v8, %v1057_v32  ;;  %2817 = vpow2.f32 %v1173_v60 }
 0x25e   : > { %v3248_v63 = vpop.eup %2809  ;;  %v1175_v35 = vmul.f32 1.442695, %v1138_v31 }
 0x25f   : > { %v1177_v36 = vmul.f32 1.442695, %v1139_v61  ;;  %v1060_v39 = vpop.xlane.xlu1 %1059  ;;  %v1232_v0 = vsel %vm1036_vm3, %v3248_v63, 0.0 }
 0x260   : > { %2819 = vpow2.f32 %v1175_v35  ;;  %v1140_v4 = vsub.f32 %v3135_v7, %v1060_v39  ;;  %v1063_v40 = vpop.xlane.xlu0 %1062  ;;  %1233 = vadd.xlane.f32.xlu1 %v1232_v0 }
 0x261   : > { %v1141_v43 = vsub.f32 %v3145_v12, %v1063_v40  ;;  %2821 = vpow2.f32 %v1177_v36 }
 0x262   : > { %v3254_v3 = vpop.eup %2811  ;;  %v1179_v8 = vmul.f32 1.442695, %v1140_v4 }
 0x263   : > { %v3256_v44 = vpop.eup %2813  ;;  %v1181_v47 = vmul.f32 1.442695, %v1141_v43  ;;  %v1066_v48 = vpop.xlane.xlu1 %1065  ;;  %v1229_v51 = vsel %vm1036_vm3, %v3254_v3, 0.0 }
 0x264   : > { %2823 = vpow2.f32 %v1179_v8  ;;  %v1142_v52 = vsub.f32 %v3143_v11, %v1066_v48  ;;  %v1069_v55 = vpop.xlane.xlu0 %1068  ;;  %v1238_v7 = vsel %vm1036_vm3, %v3256_v44, 0.0  ;;  %1230 = vadd.xlane.f32.xlu0 %v1229_v51 }
 0x265   : > { %v1143_v12 = vsub.f32 %v3153_v16, %v1069_v55  ;;  %1239 = vadd.xlane.f32.xlu1 %v1238_v7  ;;  %2825 = vpow2.f32 %v1181_v47 }
 0x266   : > { %v3264_v56 = vpop.eup %2815  ;;  %v1183_v59 = vmul.f32 1.442695, %v1142_v52 }
 0x267   : > { %v1185_v62 = vmul.f32 1.442695, %v1143_v12  ;;  %v1072_v1 = vpop.xlane.xlu1 %1071  ;;  %v1235_v2 = vsel %vm1036_vm3, %v3264_v56, 0.0  ;;  %v3268_v5 = vpop.eup %2817 }
 0x268   : > { %2827 = vpow2.f32 %v1183_v59  ;;  %v1144_v11 = vsub.f32 %v3151_v15, %v1072_v1  ;;  %v1075_v6 = vpop.xlane.xlu0 %1074  ;;  %1236 = vadd.xlane.f32.xlu0 %v1235_v2  ;;  %v1241_v18 = vsel %vm1036_vm3, %v3268_v5, 0.0 }
 0x269   : > { %v1145_v9 = vsub.f32 %v3161_v20, %v1075_v6  ;;  %2829 = vpow2.f32 %v1185_v62 }
 0x26a   : > { %v3272_v16 = vpop.eup %2819  ;;  %v1187_v10 = vmul.f32 1.442695, %v1144_v11 }
 0x26b   : > { %v1189_v13 = vmul.f32 1.442695, %v1145_v9  ;;  %v1078_v14 = vpop.xlane.xlu1 %1077  ;;  %v1244_v17 = vsel %vm1036_vm3, %v3272_v16, 0.0  ;;  %v3278_v21 = vpop.eup %2821 }
 0x26c   : > { %2831 = vpow2.f32 %v1187_v10  ;;  %v1146_v15 = vsub.f32 %v3159_v19, %v1078_v14  ;;  %v1081_v22 = vpop.xlane.xlu0 %1080  ;;  %1245 = vadd.xlane.f32.xlu1 %v1244_v17  ;;  %1242 = vadd.xlane.f32.xlu0 %v1241_v18  ;;  %v1247_v32 = vsel %vm1036_vm3, %v3278_v21, 0.0 }
 0x26d   : > { %v1147_v20 = vsub.f32 %v3169_v25, %v1081_v22  ;;  %2833 = vpow2.f32 %v1189_v13 }
 0x26e   : > { %v3282_v26 = vpop.eup %2823  ;;  %v1191_v27 = vmul.f32 1.442695, %v1146_v15 }
 0x26f   : > { %v1193_v60 = vmul.f32 1.442695, %v1147_v20  ;;  %v1084_v30 = vpop.xlane.xlu1 %1083  ;;  %v1250_v31 = vsel %vm1036_vm3, %v3282_v26, 0.0  ;;  %v3288_v61 = vpop.eup %2825 }
 0x270   : > { %2835 = vpow2.f32 %v1191_v27  ;;  %v1148_v19 = vsub.f32 %v3167_v23, %v1084_v30  ;;  %v1087_v35 = vpop.xlane.xlu0 %1086  ;;  %1251 = vadd.xlane.f32.xlu1 %v1250_v31  ;;  %1248 = vadd.xlane.f32.xlu0 %v1247_v32  ;;  %v1253_v40 = vsel %vm1036_vm3, %v3288_v61, 0.0 }
 0x271   : > { %2837 = vpow2.f32 %v1193_v60  ;;  %v1149_v39 = vsub.f32 %v3177_v29, %v1087_v35 }
 0x272   : > { %v3291_v25 = vpop.eup %2827  ;;  %v1195_v36 = vmul.f32 1.442695, %v1148_v19 }
 0x273   : > { %v1090_v0 = vpop.xlane.xlu1 %1089  ;;  %v1256_v4 = vsel %vm1036_vm3, %v3291_v25, 0.0  ;;  %v3298_v43 = vpop.eup %2829  ;;  %v1197_v47 = vmul.f32 1.442695, %v1149_v39 }
 0x274   : > { %2839 = vpow2.f32 %v1195_v36  ;;  %v1150_v23 = vsub.f32 %v3175_v28, %v1090_v0  ;;  %1257 = vadd.xlane.f32.xlu1 %v1256_v4  ;;  %1254 = vadd.xlane.f32.xlu0 %v1253_v40  ;;  %v1093_v51 = vpop.xlane.xlu0 %1092  ;;  %v1259_v55 = vsel %vm1036_vm3, %v3298_v43, 0.0 }
 0x275   : > { %v1151_v59 = vsub.f32 %v3187_v34, %v1093_v51 }
 0x276   : > { %v3301_v8 = vpop.eup %2831  ;;  %v1199_v48 = vmul.f32 1.442695, %v1150_v23 }
 0x277   : > { %v1096_v29 = vpop.xlane.xlu1 %1095  ;;  %v1262_v52 = vsel %vm1036_vm3, %v3301_v8, 0.0  ;;  %v3307_v7 = vpop.eup %2833  ;;  %v1201_v9 = vmul.f32 1.442695, %v1151_v59 }
 0x278   : > { %2841 = vpow2.f32 %v1199_v48  ;;  %v1152_v12 = vsub.f32 %v3185_v33, %v1096_v29  ;;  %1263 = vadd.xlane.f32.xlu1 %v1262_v52  ;;  %1260 = vadd.xlane.f32.xlu0 %v1259_v55  ;;  %v1265_v11 = vsel %vm1036_vm3, %v3307_v7, 0.0  ;;  %v1099_v13 = vpop.xlane.xlu0 %1098 }
 0x279   : > { %2843 = vpow2.f32 %v1197_v47  ;;  %v1153_v15 = vsub.f32 %v3195_v38, %v1099_v13 }
 0x27a   : > { %v3310_v28 = vpop.eup %2835  ;;  %v1203_v62 = vmul.f32 1.442695, %v1152_v12 }
 0x27b   : > { %v1102_v1 = vpop.xlane.xlu1 %1101  ;;  %v1268_v2 = vsel %vm1036_vm3, %v3310_v28, 0.0  ;;  %v3317_v6 = vpop.eup %2837  ;;  %v1205_v60 = vmul.f32 1.442695, %v1153_v15 }
 0x27c   : > { %1269 = vadd.xlane.f32.xlu1 %v1268_v2  ;;  %1266 = vadd.xlane.f32.xlu0 %v1265_v11  ;;  %2845 = vpow2.f32 %v1203_v62  ;;  %v1154_v10 = vsub.f32 %v3193_v37, %v1102_v1  ;;  %v1271_v14 = vsel %vm1036_vm3, %v3317_v6, 0.0  ;;  %v1105_v27 = vpop.xlane.xlu0 %1104 }
 0x27d   : > { %2847 = vpow2.f32 %v1201_v9  ;;  %v1155_v13 = vsub.f32 %v3203_v42, %v1105_v27 }
 0x27e   : > { %v3319_v33 = vpop.eup %2839  ;;  %v1207_v22 = vmul.f32 1.442695, %v1154_v10 }
 0x27f   : > { %v1274_v34 = vsel %vm1036_vm3, %v3319_v33, 0.0  ;;  %v1108_v17 = vpop.xlane.xlu1 %1107 }
 0x280   : > { %1275 = vadd.xlane.f32.xlu1 %v1274_v34  ;;  %1272 = vadd.xlane.f32.xlu0 %v1271_v14  ;;  %2849 = vpow2.f32 %v1207_v22  ;;  %v1156_v30 = vsub.f32 %v3201_v41, %v1108_v17  ;;  %v1111_v36 = vpop.xlane.xlu0 %1110 }
 0x281   : > { %2851 = vpow2.f32 %v1205_v60  ;;  %v1157_v41 = vsub.f32 %v3211_v46, %v1111_v36  ;;  %v1405_v46 = vpack.c.bf16 %v3075_v24, %v3075_v24 }
 0x282   : > { %v3326_v18 = vpop.eup %2841  ;;  %v1211_v38 = vmul.f32 1.442695, %v1156_v30 }
 0x283   : > { %v1280_v20 = vsel %vm1036_vm3, %v3326_v18, 0.0  ;;  %v3331_v37 = vpop.eup %2843  ;;  %v1114_v31 = vpop.xlane.xlu1 %1113  ;;  %v1213_v48 = vmul.f32 1.442695, %v1157_v41 }
 0x284   : > { %1281 = vadd.xlane.f32.xlu1 %v1280_v20  ;;  %v1277_v32 = vsel %vm1036_vm3, %v3331_v37, 0.0  ;;  %v1158_v35 = vsub.f32 %v3209_v45, %v1114_v31  ;;  %2853 = vpow2.f32 %v1211_v38  ;;  %v1117_v51 = vpop.xlane.xlu0 %1116  ;;  %v1209_v20 = vmul.f32 1.442695, %v1155_v13 }
 0x285   : > { %v1159_v55 = vsub.f32 %v3219_v50, %v1117_v51 }
 0x286   : > { %v3336_v19 = vpop.eup %2845  ;;  %v1215_v4 = vmul.f32 1.442695, %v1158_v35 }
 0x287   : > { %v1286_v39 = vsel %vm1036_vm3, %v3336_v19, 0.0  ;;  %v3341_v0 = vpop.eup %2847  ;;  %v1120_v40 = vpop.xlane.xlu1 %1119  ;;  %v1217_v2 = vmul.f32 1.442695, %v1159_v55 }
 0x288   : > { %1278 = vadd.xlane.f32.xlu1 %v1277_v32  ;;  %v1283_v23 = vsel %vm1036_vm3, %v3341_v0, 0.0  ;;  %2855 = vpow2.f32 %v1215_v4  ;;  %v1160_v45 = vsub.f32 %v3217_v49, %v1120_v40  ;;  %v1123_v1 = vpop.xlane.xlu0 %1122 }
 0x289   : > { %2857 = vpow2.f32 %v1213_v48  ;;  %v1161_v50 = vsub.f32 %v3227_v54, %v1123_v1 }
 0x28a   : > { %v3346_v47 = vpop.eup %2849  ;;  %v1219_v12 = vmul.f32 1.442695, %v1160_v45 }
 0x28b   : > { %v1292_v29 = vsel %vm1036_vm3, %v3346_v47, 0.0  ;;  %v3351_v52 = vpop.eup %2851  ;;  %v1126_v59 = vpop.xlane.xlu1 %1125 }
 0x28c   : > { %1287 = vadd.xlane.f32.xlu1 %v1286_v39  ;;  %v1289_v49 = vsel %vm1036_vm3, %v3351_v52, 0.0  ;;  %2859 = vpow2.f32 %v1219_v12  ;;  %v1162_v11 = vsub.f32 %v3225_v53, %v1126_v59  ;;  %v1129_v34 = vpop.xlane.xlu0 %1128  ;;  %v1221_v53 = vmul.f32 1.442695, %v1161_v50 }
 0x28d   : > { %2861 = vpow2.f32 %v1217_v2  ;;  %v1163_v22 = vsub.f32 %v3235_v58, %v1129_v34 }
 0x28e   : > { %v3358_v62 = vpop.eup %2853  ;;  %v1223_v10 = vmul.f32 1.442695, %v1162_v11 }
 0x28f   : > { %v1298_v24 = vsel %vm1036_vm3, %v3358_v62, 0.0  ;;  %v1132_v15 = vpop.xlane.xlu1 %1131  ;;  %v1225_v42 = vmul.f32 1.442695, %v1163_v22 }
 0x290   : > { %1284 = vadd.xlane.f32.xlu1 %v1283_v23  ;;  %2863 = vpow2.f32 %v1223_v10  ;;  %v1164_v60 = vsub.f32 %v3233_v57, %v1132_v15 }
 0x291   : > { %2865 = vpow2.f32 %v1221_v53 }
 0x292   : > { %v3363_v9 = vpop.eup %2855  ;;  %2867 = vpow2.f32 %v1209_v20  ;;  %v1227_v27 = vmul.f32 1.442695, %v1164_v60 }
 0x293   : > { %v1304_v14 = vsel %vm1036_vm3, %v3363_v9, 0.0  ;;  %v3369_v17 = vpop.eup %2857  ;;  %2869 = vpow2.f32 %v1225_v42 }
 0x294   : > { %1293 = vadd.xlane.f32.xlu1 %v1292_v29  ;;  %v1301_v54 = vsel %vm1036_vm3, %v3369_v17, 0.0  ;;  %2871 = vpow2.f32 %v1227_v27  ;;  %v3410_v27 = vld [vmem:[%s3603_s4] sm:$0xff]  }
 0x296   : > { %1407 = vrot.lane.b32.xlu0 %v1405_v46, %s2963_s23  ;;  %v3375_v30 = vpop.eup %2859 }
 0x297   : > { %v1310_v31 = vsel %vm1036_vm3, %v3375_v30, 0.0  ;;  %v3379_v32 = vpop.eup %2861 }
 0x298   : > { %1290 = vadd.xlane.f32.xlu1 %v1289_v49  ;;  %v1307_v57 = vsel %vm1036_vm3, %v3379_v32, 0.0 }
 0x29a   : > { %v3383_v58 = vpop.eup %2863 }
 0x29b   : > { %v1316_v38 = vsel %vm1036_vm3, %v3383_v58, 0.0  ;;  %v3387_v35 = vpop.eup %2865 }
 0x29c   : > { %1299 = vadd.xlane.f32.xlu1 %v1298_v24  ;;  %v3389_v36 = vpop.eup %2867  ;;  %v1313_v39 = vsel %vm1036_vm3, %v3387_v35, 0.0 }
 0x29d   : > { %v3393_v41 = vpop.eup %2869  ;;  %v1295_v4 = vsel %vm1036_vm3, %v3389_v36, 0.0 }
 0x29e   : > { %v3397_v40 = vpop.eup %2871  ;;  %v1319_v23 = vsel %vm1036_vm3, %v3393_v41, 0.0 }
 0x29f   : > { %v1322_v48 = vsel %vm1036_vm3, %v3397_v40, 0.0 }
 0x2a0   : > { %1305 = vadd.xlane.f32.xlu1 %v1304_v14 }
 0x2a4   : > { %1302 = vadd.xlane.f32.xlu1 %v1301_v54 }
 0x2a8   : > { %1311 = vadd.xlane.f32.xlu1 %v1310_v31 }
 0x2ac   : > { %1308 = vadd.xlane.f32.xlu1 %v1307_v57 }
 0x2b0   : > { %1317 = vadd.xlane.f32.xlu1 %v1316_v38 }
 0x2b4   : > { %1314 = vadd.xlane.f32.xlu1 %v1313_v39 }
 0x2b5   : > { %1296 = vadd.xlane.f32.xlu0 %v1295_v4 }
 0x2b8   : > { %1320 = vadd.xlane.f32.xlu1 %v1319_v23 }
 0x2b9   : > { %1323 = vadd.xlane.f32.xlu0 %v1322_v48 }
 0x2ed   : > { %v1234_v45 = vpop.xlane.xlu1 %1233 }
 0x2ee   : > { %2873 = vrcp.f32 %v1234_v45 }
 0x2f1   : > { %v1231_v51 = vpop.xlane.xlu0 %1230 }
 0x2f2   : > { %2875 = vrcp.f32 %v1231_v51  ;;  %v1240_v29 = vpop.xlane.xlu1 %1239 }
 0x2f5   : > { %v1237_v46 = vpop.xlane.xlu0 %1236 }
 0x2f6   : > { %2877 = vrcp.f32 %v1237_v46 }
 0x2f8   : > { %v2874_v59 = vpop.eup %2873 }
 0x2f9   : > { %v1246_v55 = vpop.xlane.xlu1 %1245  ;;  %v1243_v12 = vpop.xlane.xlu0 %1242  ;;  %v1358_v24 = vmul.f32 %v2874_v59, %v3248_v63 }
 0x2fa   : > { %2879 = vrcp.f32 %v1246_v55 }
 0x2fb   : > { %2881 = vrcp.f32 %v1243_v12 }
 0x2fc   : > { %v2876_v49 = vpop.eup %2875  ;;  %2883 = vrcp.f32 %v1240_v29 }
 0x2fd   : > { %v1252_v1 = vpop.xlane.xlu1 %1251  ;;  %v1249_v2 = vpop.xlane.xlu0 %1248  ;;  %v1357_v11 = vmul.f32 %v2876_v49, %v3254_v3 }
 0x2fe   : > { %2885 = vrcp.f32 %v1252_v1 }
 0x2ff   : > { %v1389_v50 = vpack.c.bf16 %v1358_v24, %v1357_v11  ;;  %2887 = vrcp.f32 %v1249_v2 }
 0x300   : > { %v2878_v22 = vpop.eup %2877 }
 0x301   : > { %v1258_v10 = vpop.xlane.xlu1 %1257  ;;  %2642 = vmatprep.mubr.msk.bf16.mxu0 %vm1036_vm3, %v1389_v50  ;;  %v1255_v13 = vpop.xlane.xlu0 %1254  ;;  %v1359_v42 = vmul.f32 %v2878_v22, %v3264_v56 }
 0x302   : > { %2889 = vrcp.f32 %v1258_v10 }
 0x303   : > { %2891 = vrcp.f32 %v1255_v13 }
 0x304   : > { %v2880_v3 = vpop.eup %2879 }
 0x305   : > { %v1264_v34 = vpop.xlane.xlu1 %1263  ;;  %v1261_v14 = vpop.xlane.xlu0 %1260  ;;  %v1362_v39 = vmul.f32 %v2880_v3, %v3272_v16 }
 0x306   : > { %v2882_v60 = vpop.eup %2881  ;;  %2893 = vrcp.f32 %v1264_v34 }
 0x307   : > { %v2884_v54 = vpop.eup %2883  ;;  %2895 = vrcp.f32 %v1261_v14  ;;  %v1361_v38 = vmul.f32 %v2882_v60, %v3268_v5 }
 0x308   : > { %v1360_v4 = vmul.f32 %v2884_v54, %v3256_v44  ;;  %v2886_v56 = vpop.eup %2885 }
 0x309   : > { %v1270_v15 = vpop.xlane.xlu1 %1269  ;;  %v1267_v53 = vpop.xlane.xlu0 %1266  ;;  %v1391_v5 = vpack.c.bf16 %v1362_v39, %v1361_v38  ;;  %v1364_v16 = vmul.f32 %v2886_v56, %v3282_v26 }
 0x30a   : > { %2897 = vrcp.f32 %v1270_v15  ;;  %v2888_v48 = vpop.eup %2887  ;;  %v1390_v45 = vpack.c.bf16 %v1360_v4, %v1359_v42 }
 0x30b   : > { %2899 = vrcp.f32 %v1267_v53  ;;  %v1363_v44 = vmul.f32 %v2888_v48, %v3278_v21 }
 0x30c   : > { %v2890_v51 = vpop.eup %2889 }
 0x30d   : > { %v1276_v63 = vpop.xlane.xlu1 %1275  ;;  %v1273_v20 = vpop.xlane.xlu0 %1272  ;;  %v1366_v59 = vmul.f32 %v2890_v51, %v3291_v25  ;;  %v1392_v11 = vpack.c.bf16 %v1364_v16, %v1363_v44 }
 0x30e   : > { %v2892_v46 = vpop.eup %2891 }
 0x30f   : > { %v1365_v12 = vmul.f32 %v2892_v46, %v3288_v61 }
 0x310   : > { %v2894_v49 = vpop.eup %2893 }
 0x311   : > { %v1282_v31 = vpop.xlane.xlu1 %1281  ;;  %v1408_v57 = vpop.permute.xlu0 %1407  ;;  %v1393_v10 = vpack.c.bf16 %v1366_v59, %v1365_v12  ;;  %v1368_v61 = vmul.f32 %v2894_v49, %v3301_v8 }
 0x312   : > { %2752 = vmatprep.subr.msk.bf16.mxu0 %vm1457_vm4, %v1408_v57  ;;  %2753 = vmatprep.subr.msk.bf16.mxu1 %vm1457_vm4, %v1408_v57  ;;  %v1459_v23 = vsel %vm1457_vm4, %v1408_v57, 0  ;;  %2901 = vrcp.f32 %v1282_v31  ;;  %v2896_v1 = vpop.eup %2895 }
 0x313   : > { %2641 = vmatpush3.bf16.msra.mxu0 %v1459_v23  ;;  %2751 = vmatpush3.bf16.msra.mxu1 %v1459_v23  ;;  %v1367_v26 = vmul.f32 %v2896_v1, %v3298_v43 }
 0x314   : > { %2674 = vmatprep.subr.bf16.mxu1 %v3410_v27  ;;  %v2898_v2 = vpop.eup %2897 }
 0x315   : > { %v1279_v29 = vpop.xlane.xlu1 %1278  ;;  %v2900_v24 = vpop.eup %2899  ;;  %v1370_v53 = vmul.f32 %v2898_v2, %v3310_v28 }
 0x316   : > { %2903 = vrcp.f32 %v1279_v29  ;;  %2643 = vmatmul.mubr.msk.bf16.vlgmr.msra.gmra.mrb[32].mxu0 %vm1036_vm3, %v1390_v45  ;;  %v1369_v15 = vmul.f32 %v2900_v24, %v3307_v7 }
 0x317   : > { %2646 = vmatprep.mubr.msk.bf16.mxu0 %vm1036_vm3, %v1391_v5  ;;  %2905 = vrcp.f32 %v1276_v63  ;;  %v1394_v63 = vpack.c.bf16 %v1368_v61, %v1367_v26 }
 0x318   : > { %2907 = vrcp.f32 %v1273_v20  ;;  %v1395_v43 = vpack.c.bf16 %v1370_v53, %v1369_v15 }
 0x319   : > { %v1288_v55 = vpop.xlane.xlu1 %1287 }
 0x31a   : > { %2909 = vrcp.f32 %v1288_v55 }
 0x31c   : > { %v2902_v13 = vpop.eup %2901 }
 0x31d   : > { %v1285_v50 = vpop.xlane.xlu1 %1284  ;;  %v1374_v14 = vmul.f32 %v2902_v13, %v3326_v18 }
 0x31e   : > { %2911 = vrcp.f32 %v1285_v50  ;;  %2647 = vmatmul.mubr.msk.bf16.gmra.mrb[36].mxu0 %vm1036_vm3, %v1392_v11 }
 0x31f   : > { %2650 = vmatprep.mubr.msk.bf16.mxu0 %vm1036_vm3, %v1393_v10 }
 0x320   : > { %v2904_v21 = vpop.eup %2903 }
 0x321   : > { %v1294_v25 = vpop.xlane.xlu1 %1293  ;;  %v1373_v34 = vmul.f32 %v2904_v21, %v3331_v37  ;;  %v2906_v3 = vpop.eup %2905 }
 0x322   : > { %2913 = vrcp.f32 %v1294_v25  ;;  %v2908_v20 = vpop.eup %2907  ;;  %v1372_v28 = vmul.f32 %v2906_v3, %v3319_v33 }
 0x323   : > { %v1397_v22 = vpack.c.bf16 %v1374_v14, %v1373_v34  ;;  %v1371_v7 = vmul.f32 %v2908_v20, %v3317_v6 }
 0x324   : > { %v2910_v54 = vpop.eup %2909 }
 0x325   : > { %2658 = vmatprep.mubr.msk.bf16.mxu1 %vm1036_vm3, %v1397_v22  ;;  %v1291_v60 = vpop.xlane.xlu1 %1290  ;;  %v1376_v18 = vmul.f32 %v2910_v54, %v3336_v19  ;;  %v1396_v57 = vpack.c.bf16 %v1372_v28, %v1371_v7 }
 0x326   : > { %2915 = vrcp.f32 %v1291_v60  ;;  %2651 = vmatmul.mubr.msk.bf16.gmra.mrb[40].mxu0 %vm1036_vm3, %v1394_v63 }
 0x327   : > { %2654 = vmatprep.mubr.msk.bf16.mxu0 %vm1036_vm3, %v1395_v43 }
 0x328   : > { %v2912_v8 = vpop.eup %2911 }
 0x329   : > { %v1375_v37 = vmul.f32 %v2912_v8, %v3341_v0  ;;  %v1300_v42 = vpop.xlane.xlu1 %1299 }
 0x32b   : > { %v1398_v31 = vpack.c.bf16 %v1376_v18, %v1375_v37 }
 0x32c   : > { %v2914_v39 = vpop.eup %2913 }
 0x32d   : > { %v1306_v38 = vpop.xlane.xlu1 %1305  ;;  %2659 = vmatmul.mubr.msk.bf16.vlgmr.msra.gmra.mrb[36].mxu1 %vm1036_vm3, %v1398_v31  ;;  %v1378_v33 = vmul.f32 %v2914_v39, %v3346_v47 }
 0x32e   : > { %2655 = vmatmul.mubr.msk.bf16.gmra.mrb[44].mxu0 %vm1036_vm3, %v1396_v57  ;;  %2675 = vmatpush3.bf16.msra.mxu1 %v3410_v27 }
 0x330   : > { %v2916_v4 = vpop.eup %2915 }
 0x331   : > { %v1303_v23 = vpop.xlane.xlu1 %1302  ;;  %v1377_v6 = vmul.f32 %v2916_v4, %v3351_v52 }
 0x332   : > { %2917 = vrcp.f32 %v1303_v23 }
 0x333   : > { %v1399_v19 = vpack.c.bf16 %v1378_v33, %v1377_v6  ;;  %2919 = vrcp.f32 %v1300_v42 }
 0x334   : > { %2921 = vrcp.f32 %v1306_v38 }
 0x335   : > { %v1312_v56 = vpop.xlane.xlu1 %1311  ;;  %2662 = vmatprep.mubr.msk.bf16.mxu1 %vm1036_vm3, %v1399_v19 }
 0x339   : > { %v1309_v0 = vpop.xlane.xlu1 %1308 }
 0x33c   : > { %v2918_v27 = vpop.eup %2917 }
 0x33d   : > { %v1318_v48 = vpop.xlane.xlu1 %1317  ;;  %v2920_v52 = vpop.eup %2919  ;;  %v1381_v44 = vmul.f32 %v2918_v27, %v3369_v17 }
 0x33e   : > { %v2922_v47 = vpop.eup %2921  ;;  %v1380_v55 = vmul.f32 %v2920_v52, %v3358_v62 }
 0x33f   : > { %v1382_v12 = vmul.f32 %v2922_v47, %v3363_v9 }
 0x341   : > { %v1315_v51 = vpop.xlane.xlu1 %1314  ;;  %v1401_v1 = vpack.c.bf16 %v1382_v12, %v1381_v44 }
 0x342   : > { %v1297_v45 = vpop.xlane.xlu0 %1296 }
 0x343   : > { %2923 = vrcp.f32 %v1297_v45 }
 0x344   : > { %2925 = vrcp.f32 %v1309_v0 }
 0x345   : > { %2927 = vrcp.f32 %v1315_v51  ;;  %v1321_v29 = vpop.xlane.xlu1 %1320 }
 0x346   : > { %2929 = vrcp.f32 %v1312_v56  ;;  %v1324_v5 = vpop.xlane.xlu0 %1323 }
 0x347   : > { %2931 = vrcp.f32 %v1318_v48 }
 0x348   : > { %2933 = vrcp.f32 %v1321_v29 }
 0x349   : > { %2935 = vrcp.f32 %v1324_v5 }
 0x34d   : > { %v2924_v46 = vpop.eup %2923 }
 0x34e   : > { %v1379_v16 = vmul.f32 %v2924_v46, %v3389_v36  ;;  %v2926_v49 = vpop.eup %2925 }
 0x34f   : > { %v2928_v2 = vpop.eup %2927  ;;  %v1383_v17 = vmul.f32 %v2926_v49, %v3379_v32  ;;  %v2789_v32 = vld [vmem:[%s3604_s5] sm:$0xff]  }
 0x350   : > { %v1400_v59 = vpack.c.bf16 %v1380_v55, %v1379_v16  ;;  %v2930_v11 = vpop.eup %2929  ;;  %v1385_v50 = vmul.f32 %v2928_v2, %v3387_v35  ;;  %2710 = vmatprep.subr.bf16.mxu0 %v2789_v32 }
 0x351   : > { %v2932_v24 = vpop.eup %2931  ;;  %v1384_v36 = vmul.f32 %v2930_v11, %v3375_v30  ;;  %v2788_v30 = vld [vmem:[%s3603_s4 + $0x8] sm:$0xff]   ;;  %2711 = vmatpush3.bf16.msra.mxu0 %v2789_v32  ;;  %v2791_v11 = vld [vmem:[%s3604_s5 + $0x10] sm:$0xff]  }
 0x352   : > { %2663 = vmatmul.mubr.msk.bf16.gmra.mrb[40].mxu1 %vm1036_vm3, %v1400_v59  ;;  %v1386_v62 = vmul.f32 %v2932_v24, %v3383_v58  ;;  %v2934_v10 = vpop.eup %2933  ;;  %2676 = vmatprep.subr.bf16.mxu1 %v2788_v30  ;;  %v2790_v58 = vld [vmem:[%s3604_s5 + $0x8] sm:$0xff]   ;;  %v2792_v24 = vld [vmem:[%s3604_s5 + $0x18] sm:$0xff]  }
 0x353   : > { %2666 = vmatprep.mubr.msk.bf16.mxu1 %vm1036_vm3, %v1401_v1  ;;  %v1402_v9 = vpack.c.bf16 %v1384_v36, %v1383_v17  ;;  %v2936_v13 = vpop.eup %2935  ;;  %v1387_v26 = vmul.f32 %v2934_v10, %v3393_v41  ;;  %2677 = vmatpush3.bf16.msra.mxu1 %v2788_v30  ;;  %v2937_v17 = vld [vmem:[%s3034_s17 + $0x8] sm:$0xff]   ;;  %v2938_v10 = vld [vmem:[%s3034_s17] sm:$0xff]  }
 0x354   : > { %v1403_v21 = vpack.c.bf16 %v1386_v62, %v1385_v50  ;;  %v1388_v61 = vmul.f32 %v2936_v13, %v3397_v40  ;;  %2712 = vmatprep.subr.bf16.mxu0 %v2790_v58  ;;  %v1865_v50 = vunpack.c.l.bf16 %v2937_v17  ;;  %v1866_v36 = vunpack.c.h.bf16 %v2937_v17  ;;  %v2945_v17 = vld [vmem:[%s3034_s17 + $0x48] sm:$0xff]  }
 0x355   : > { %2713 = vmatpush3.bf16.msra.mxu0 %v2790_v58  ;;  %v1864_v13 = vunpack.c.h.bf16 %v2938_v10 }
 0x356   : > { %v1404_v25 = vpack.c.bf16 %v1388_v61, %v1387_v26  ;;  %2714 = vmatprep.subr.bf16.mxu0 %v2791_v11 }
 0x359   : > { %2715 = vmatpush3.bf16.msra.mxu0 %v2791_v11 }
 0x35a   : > { %2667 = vmatmul.mubr.msk.bf16.gmra.mrb[44].mxu1 %vm1036_vm3, %v1402_v9  ;;  %2716 = vmatprep.subr.bf16.mxu0 %v2792_v24  ;;  %v1863_v9 = vunpack.c.l.bf16 %v2938_v10  ;;  %v2946_v10 = vld [vmem:[%s3034_s17 + $0x40] sm:$0xff]  }
 0x35b   : > { %2670 = vmatprep.mubr.msk.bf16.mxu1 %vm1036_vm3, %v1403_v21 }
 0x35d   : > { %2717 = vmatpush3.bf16.msra.mxu0 %v2792_v24 }
 0x362   : > { %2671 = vmatmul.mubr.msk.bf16.gmra.mrb[48].mxu1 %vm1036_vm3, %v1404_v25 }
 0x3e9   : > { %v2644_v35 = vpop.f32.mrb[32].mxu0 }
 0x3ea   : > { %v1495_v41 = vpop.f32.mrb[33].mxu0 }
 0x3eb   : > { %v2645_v40 = vpop.f32.mrb[34].mxu0 }
 0x3ec   : > { %v1623_v34 = vpack.c.bf16 %v2645_v40, %v2644_v35  ;;  %v1498_v14 = vpop.f32.mrb[35].mxu0  ;;  %v2939_v40 = vld [vmem:[%s3034_s17 + $0x18] sm:$0xff]  }
 0x3ed   : > { %v1622_v15 = vpack.c.bf16 %v1498_v14, %v1495_v41  ;;  %v1870_v14 = vunpack.c.h.bf16 %v2939_v40 }
 0x3ef   : > { %2678 = vmatprep.mubr.msk.bf16.mxu1 %vm668_vm1, %v1622_v15 }
 0x3f0   : > { %2679 = vmatmul.mubr.msk.bf16.vlgmr.msra.gmra.mrb[52].mxu1 %vm668_vm1, %v1623_v34  ;;  %v1869_v34 = vunpack.c.l.bf16 %v2939_v40  ;;  %v2947_v40 = vld [vmem:[%s3034_s17 + $0x58] sm:$0xff]  }
 0x3f1   : > { %v2648_v53 = vpop.f32.mrb[36].mxu0 }
 0x3f2   : > { %v1511_v22 = vpop.f32.mrb[37].mxu0 }
 0x3f3   : > { %v2649_v3 = vpop.f32.mrb[38].mxu0 }
 0x3f4   : > { %v1625_v63 = vpack.c.bf16 %v2649_v3, %v2648_v53  ;;  %v1514_v20 = vpop.f32.mrb[39].mxu0  ;;  %v2940_v53 = vld [vmem:[%s3034_s17 + $0x10] sm:$0xff]  }
 0x3f5   : > { %v1624_v60 = vpack.c.bf16 %v1514_v20, %v1511_v22  ;;  %v1867_v22 = vunpack.c.l.bf16 %v2940_v53  ;;  %v1868_v3 = vunpack.c.h.bf16 %v2940_v53  ;;  %v2948_v53 = vld [vmem:[%s3034_s17 + $0x50] sm:$0xff]  }
 0x3f7   : > { %2682 = vmatprep.mubr.msk.bf16.mxu1 %vm668_vm1, %v1624_v60 }
 0x3f8   : > { %2683 = vmatmul.mubr.msk.bf16.gmra.mrb[56].mxu1 %vm668_vm1, %v1625_v63 }
 0x3f9   : > { %v2652_v43 = vpop.f32.mrb[40].mxu0 }
 0x3fa   : > { %v1527_v54 = vpop.f32.mrb[41].mxu0 }
 0x3fb   : > { %v2653_v8 = vpop.f32.mrb[42].mxu0 }
 0x3fc   : > { %v1627_v7 = vpack.c.bf16 %v2653_v8, %v2652_v43  ;;  %v1530_v28 = vpop.f32.mrb[43].mxu0 }
 0x3fd   : > { %v1626_v18 = vpack.c.bf16 %v1530_v28, %v1527_v54 }
 0x3ff   : > { %2686 = vmatprep.mubr.msk.bf16.mxu1 %vm668_vm1, %v1626_v18 }
 0x400   : > { %v2660_v37 = vpop.f32.mrb[36].mxu1  ;;  %2687 = vmatmul.mubr.msk.bf16.gmra.mrb[60].mxu1 %vm668_vm1, %v1627_v7 }
 0x401   : > { %v2656_v42 = vpop.f32.mrb[44].mxu0  ;;  %v1559_v31 = vpop.f32.mrb[37].mxu1 }
 0x402   : > { %v1543_v57 = vpop.f32.mrb[45].mxu0  ;;  %v2661_v38 = vpop.f32.mrb[38].mxu1 }
 0x403   : > { %v1631_v39 = vpack.c.bf16 %v2661_v38, %v2660_v37  ;;  %v2657_v4 = vpop.f32.mrb[46].mxu0  ;;  %v1562_v23 = vpop.f32.mrb[39].mxu1  ;;  %v2941_v37 = vld [vmem:[%s3034_s17 + $0x28] sm:$0xff]   ;;  %v2942_v38 = vld [vmem:[%s3034_s17 + $0x20] sm:$0xff]  }
 0x404   : > { %v1629_v6 = vpack.c.bf16 %v2657_v4, %v2656_v42  ;;  %v1630_v33 = vpack.c.bf16 %v1562_v23, %v1559_v31  ;;  %v1546_v19 = vpop.f32.mrb[47].mxu0  ;;  %v1873_v42 = vunpack.c.l.bf16 %v2941_v37  ;;  %v1874_v31 = vunpack.c.h.bf16 %v2941_v37  ;;  %v2949_v37 = vld [vmem:[%s3034_s17 + $0x68] sm:$0xff]  }
 0x405   : > { %v1628_v56 = vpack.c.bf16 %v1546_v19, %v1543_v57  ;;  %v1872_v4 = vunpack.c.h.bf16 %v2942_v38 }
 0x407   : > { %2690 = vmatprep.mubr.msk.bf16.mxu1 %vm668_vm1, %v1628_v56 }
 0x408   : > { %2691 = vmatmul.mubr.msk.bf16.gmra.mrb[64].mxu1 %vm668_vm1, %v1629_v6 }
 0x409   : > { %2694 = vmatprep.mubr.msk.bf16.mxu1 %vm668_vm1, %v1630_v33 }
 0x410   : > { %2695 = vmatmul.mubr.msk.bf16.gmra.mrb[68].mxu1 %vm668_vm1, %v1631_v39  ;;  %v1871_v39 = vunpack.c.l.bf16 %v2942_v38  ;;  %v2950_v38 = vld [vmem:[%s3034_s17 + $0x60] sm:$0xff]  }
 0x425   : > { %v2664_v0 = vpop.f32.mrb[40].mxu1 }
 0x426   : > { %v1575_v48 = vpop.f32.mrb[41].mxu1 }
 0x427   : > { %v2665_v45 = vpop.f32.mrb[42].mxu1 }
 0x428   : > { %v1633_v51 = vpack.c.bf16 %v2665_v45, %v2664_v0  ;;  %v1578_v27 = vpop.f32.mrb[43].mxu1 }
 0x429   : > { %v1632_v52 = vpack.c.bf16 %v1578_v27, %v1575_v48  ;;  %v2943_v27 = vld [vmem:[%s3034_s17 + $0x38] sm:$0xff]  }
 0x42b   : > { %2698 = vmatprep.mubr.msk.bf16.mxu1 %vm668_vm1, %v1632_v52  ;;  %v1877_v52 = vunpack.c.l.bf16 %v2943_v27 }
 0x42c   : > { %2699 = vmatmul.mubr.msk.bf16.gmra.mrb[72].mxu1 %vm668_vm1, %v1633_v51 }
 0x42d   : > { %v2668_v29 = vpop.f32.mrb[44].mxu1 }
 0x42e   : > { %v1591_v47 = vpop.f32.mrb[45].mxu1 }
 0x42f   : > { %v2669_v5 = vpop.f32.mrb[46].mxu1 }
 0x430   : > { %v1635_v46 = vpack.c.bf16 %v2669_v5, %v2668_v29  ;;  %v1594_v44 = vpop.f32.mrb[47].mxu1  ;;  %v1878_v29 = vunpack.c.h.bf16 %v2943_v27  ;;  %v2944_v5 = vld [vmem:[%s3034_s17 + $0x30] sm:$0xff]   ;;  %v2951_v27 = vld [vmem:[%s3034_s17 + $0x78] sm:$0xff]  }
 0x431   : > { %v1634_v16 = vpack.c.bf16 %v1594_v44, %v1591_v47  ;;  %v1876_v44 = vunpack.c.h.bf16 %v2944_v5 }
 0x433   : > { %2702 = vmatprep.mubr.msk.bf16.mxu1 %vm668_vm1, %v1634_v16 }
 0x434   : > { %2703 = vmatmul.mubr.msk.bf16.gmra.mrb[76].mxu1 %vm668_vm1, %v1635_v46  ;;  %v1875_v46 = vunpack.c.l.bf16 %v2944_v5  ;;  %v2952_v5 = vld [vmem:[%s3034_s17 + $0x70] sm:$0xff]  }
 0x435   : > { %v2672_v55 = vpop.f32.mrb[48].mxu1 }
 0x436   : > { %v1607_v12 = vpop.f32.mrb[49].mxu1 }
 0x437   : > { %v2673_v59 = vpop.f32.mrb[50].mxu1 }
 0x438   : > { %v1637_v49 = vpack.c.bf16 %v2673_v59, %v2672_v55  ;;  %v1610_v1 = vpop.f32.mrb[51].mxu1 }
 0x439   : > { %v1636_v2 = vpack.c.bf16 %v1610_v1, %v1607_v12 }
 0x43b   : > { %2706 = vmatprep.mubr.msk.bf16.mxu1 %vm668_vm1, %v1636_v2 }
 0x43c   : > { %2707 = vmatmul.mubr.msk.bf16.gmra.mrb[80].mxu1 %vm668_vm1, %v1637_v49 }
 0x4c3   : > { %v2680_v62 = vpop.f32.mrb[52].mxu1 }
 0x4c4   : > { %v1736_v21 = vpop.f32.mrb[53].mxu1  ;;  %v1897_v61 = vadd.f32 %v2680_v62, %v1865_v50  ;;  %v1881_v50 = vunpack.c.l.bf16 %v2945_v17 }
 0x4c5   : > { %v2681_v26 = vpop.f32.mrb[54].mxu1  ;;  %v1895_v32 = vadd.f32 %v1863_v9, %v1736_v21  ;;  %v1879_v9 = vunpack.c.l.bf16 %v2946_v10 }
 0x4c6   : > { %v1898_v25 = vadd.f32 %v2681_v26, %v1866_v36  ;;  %v1739_v30 = vpop.f32.mrb[55].mxu1  ;;  %v1882_v36 = vunpack.c.h.bf16 %v2945_v17  ;;  %v3525_v17 = vld [vmem:[%s3605_s6] ss:$0 sm:$0xff] }
 0x4c7   : > { %v1896_v58 = vadd.f32 %v1864_v13, %v1739_v30  ;;  %v1880_v13 = vunpack.c.h.bf16 %v2946_v10 }
 0x4c8   : > { %v1928_v35 = vpack.c.bf16 %v1898_v25, %v1897_v61 }
 0x4c9   : > { %v1927_v41 = vpack.c.bf16 %v1896_v58, %v1895_v32 }
 0x4cb   : > { %v2684_v15 = vpop.f32.mrb[56].mxu1  ;;  %2718 = vmatprep.mubr.msk.bf16.mxu0 %vm442_vm2, %v1927_v41 }
 0x4cc   : > { %v1752_v63 = vpop.f32.mrb[57].mxu1  ;;  %2719 = vmatmul.mubr.msk.bf16.vlgmr.msra.gmra.mrb[48].mxu0 %vm442_vm2, %v1928_v35  ;;  %v1901_v60 = vadd.f32 %v2684_v15, %v1869_v34  ;;  %v1885_v34 = vunpack.c.l.bf16 %v2947_v40 }
 0x4cd   : > { %v2685_v20 = vpop.f32.mrb[58].mxu1  ;;  %v1899_v8 = vadd.f32 %v1867_v22, %v1752_v63  ;;  %v1883_v22 = vunpack.c.l.bf16 %v2948_v53 }
 0x4ce   : > { %v1902_v43 = vadd.f32 %v2685_v20, %v1870_v14  ;;  %v1755_v54 = vpop.f32.mrb[59].mxu1  ;;  %v1886_v14 = vunpack.c.h.bf16 %v2947_v40 }
 0x4cf   : > { %v1900_v7 = vadd.f32 %v1868_v3, %v1755_v54  ;;  %v1884_v3 = vunpack.c.h.bf16 %v2948_v53 }
 0x4d0   : > { %v1930_v28 = vpack.c.bf16 %v1902_v43, %v1901_v60 }
 0x4d1   : > { %v1929_v18 = vpack.c.bf16 %v1900_v7, %v1899_v8 }
 0x4d3   : > { %v2688_v57 = vpop.f32.mrb[60].mxu1  ;;  %2722 = vmatprep.mubr.msk.bf16.mxu0 %vm442_vm2, %v1929_v18 }
 0x4d4   : > { %v1768_v23 = vpop.f32.mrb[61].mxu1  ;;  %2723 = vmatmul.mubr.msk.bf16.gmra.mrb[52].mxu0 %vm442_vm2, %v1930_v28  ;;  %v1905_v33 = vadd.f32 %v2688_v57, %v1873_v42  ;;  %v1889_v42 = vunpack.c.l.bf16 %v2949_v37 }
 0x4d5   : > { %v2689_v6 = vpop.f32.mrb[62].mxu1  ;;  %v1903_v0 = vadd.f32 %v1871_v39, %v1768_v23  ;;  %v1887_v39 = vunpack.c.l.bf16 %v2950_v38 }
 0x4d6   : > { %v1906_v19 = vadd.f32 %v2689_v6, %v1874_v31  ;;  %v1771_v56 = vpop.f32.mrb[63].mxu1  ;;  %v1890_v31 = vunpack.c.h.bf16 %v2949_v37 }
 0x4d7   : > { %v1904_v48 = vadd.f32 %v1872_v4, %v1771_v56  ;;  %v1888_v4 = vunpack.c.h.bf16 %v2950_v38 }
 0x4d8   : > { %v1932_v45 = vpack.c.bf16 %v1906_v19, %v1905_v33 }
 0x4d9   : > { %v1931_v51 = vpack.c.bf16 %v1904_v48, %v1903_v0 }
 0x4db   : > { %v2692_v47 = vpop.f32.mrb[64].mxu1  ;;  %2726 = vmatprep.mubr.msk.bf16.mxu0 %vm442_vm2, %v1931_v51 }
 0x4dc   : > { %v1784_v16 = vpop.f32.mrb[65].mxu1  ;;  %2727 = vmatmul.mubr.msk.bf16.gmra.mrb[56].mxu0 %vm442_vm2, %v1932_v45  ;;  %v1909_v12 = vadd.f32 %v2692_v47, %v1877_v52  ;;  %v1893_v52 = vunpack.c.l.bf16 %v2951_v27 }
 0x4dd   : > { %v2693_v55 = vpop.f32.mrb[66].mxu1  ;;  %v1907_v1 = vadd.f32 %v1875_v46, %v1784_v16  ;;  %v1891_v46 = vunpack.c.l.bf16 %v2952_v5 }
 0x4de   : > { %v1910_v59 = vadd.f32 %v2693_v55, %v1878_v29  ;;  %v1787_v49 = vpop.f32.mrb[67].mxu1  ;;  %v1894_v29 = vunpack.c.h.bf16 %v2951_v27 }
 0x4df   : > { %v1908_v2 = vadd.f32 %v1876_v44, %v1787_v49  ;;  %v1892_v44 = vunpack.c.h.bf16 %v2952_v5 }
 0x4e0   : > { %v1934_v11 = vpack.c.bf16 %v1910_v59, %v1909_v12 }
 0x4e1   : > { %v1933_v24 = vpack.c.bf16 %v1908_v2, %v1907_v1 }
 0x4e3   : > { %v2696_v62 = vpop.f32.mrb[68].mxu1  ;;  %2730 = vmatprep.mubr.msk.bf16.mxu0 %vm442_vm2, %v1933_v24 }
 0x4e4   : > { %v1800_v21 = vpop.f32.mrb[69].mxu1  ;;  %2731 = vmatmul.mubr.msk.bf16.gmra.mrb[60].mxu0 %vm442_vm2, %v1934_v11  ;;  %v1913_v61 = vadd.f32 %v2696_v62, %v1881_v50 }
 0x4e5   : > { %v2697_v26 = vpop.f32.mrb[70].mxu1  ;;  %v1911_v32 = vadd.f32 %v1879_v9, %v1800_v21 }
 0x4e6   : > { %v1914_v25 = vadd.f32 %v2697_v26, %v1882_v36  ;;  %v1803_v30 = vpop.f32.mrb[71].mxu1 }
 0x4e7   : > { %v1912_v58 = vadd.f32 %v1880_v13, %v1803_v30 }
 0x4e8   : > { %v1936_v35 = vpack.c.bf16 %v1914_v25, %v1913_v61 }
 0x4e9   : > { %v1935_v41 = vpack.c.bf16 %v1912_v58, %v1911_v32 }
 0x4eb   : > { %2734 = vmatprep.mubr.msk.bf16.mxu0 %vm442_vm2, %v1935_v41 }
 0x4ec   : > { %2735 = vmatmul.mubr.msk.bf16.gmra.mrb[64].mxu0 %vm442_vm2, %v1936_v35 }
 0x4ff   : > { %v2700_v15 = vpop.f32.mrb[72].mxu1 }
 0x500   : > { %v1816_v63 = vpop.f32.mrb[73].mxu1  ;;  %v1917_v60 = vadd.f32 %v2700_v15, %v1885_v34 }
 0x501   : > { %v2701_v20 = vpop.f32.mrb[74].mxu1  ;;  %v1915_v8 = vadd.f32 %v1883_v22, %v1816_v63 }
 0x502   : > { %v1918_v43 = vadd.f32 %v2701_v20, %v1886_v14  ;;  %v1819_v54 = vpop.f32.mrb[75].mxu1 }
 0x503   : > { %v1916_v7 = vadd.f32 %v1884_v3, %v1819_v54 }
 0x504   : > { %v1938_v28 = vpack.c.bf16 %v1918_v43, %v1917_v60 }
 0x505   : > { %v1937_v18 = vpack.c.bf16 %v1916_v7, %v1915_v8 }
 0x507   : > { %v2704_v57 = vpop.f32.mrb[76].mxu1  ;;  %2738 = vmatprep.mubr.msk.bf16.mxu0 %vm442_vm2, %v1937_v18 }
 0x508   : > { %v1832_v23 = vpop.f32.mrb[77].mxu1  ;;  %2739 = vmatmul.mubr.msk.bf16.gmra.mrb[68].mxu0 %vm442_vm2, %v1938_v28  ;;  %v1921_v33 = vadd.f32 %v2704_v57, %v1889_v42 }
 0x509   : > { %v2705_v6 = vpop.f32.mrb[78].mxu1  ;;  %v1919_v0 = vadd.f32 %v1887_v39, %v1832_v23 }
 0x50a   : > { %v1922_v19 = vadd.f32 %v2705_v6, %v1890_v31  ;;  %v1835_v56 = vpop.f32.mrb[79].mxu1 }
 0x50b   : > { %v1920_v48 = vadd.f32 %v1888_v4, %v1835_v56 }
 0x50c   : > { %v1940_v45 = vpack.c.bf16 %v1922_v19, %v1921_v33 }
 0x50d   : > { %v1939_v51 = vpack.c.bf16 %v1920_v48, %v1919_v0 }
 0x50f   : > { %v2708_v47 = vpop.f32.mrb[80].mxu1  ;;  %2742 = vmatprep.mubr.msk.bf16.mxu0 %vm442_vm2, %v1939_v51 }
 0x510   : > { %v1848_v16 = vpop.f32.mrb[81].mxu1  ;;  %2743 = vmatmul.mubr.msk.bf16.gmra.mrb[72].mxu0 %vm442_vm2, %v1940_v45  ;;  %v1925_v12 = vadd.f32 %v2708_v47, %v1893_v52 }
 0x511   : > { %v2709_v55 = vpop.f32.mrb[82].mxu1  ;;  %v1923_v1 = vadd.f32 %v1891_v46, %v1848_v16 }
 0x512   : > { %v1926_v59 = vadd.f32 %v2709_v55, %v1894_v29  ;;  %v1851_v49 = vpop.f32.mrb[83].mxu1 }
 0x513   : > { %v1924_v2 = vadd.f32 %v1892_v44, %v1851_v49 }
 0x514   : > { %v1942_v11 = vpack.c.bf16 %v1926_v59, %v1925_v12 }
 0x515   : > { %v1941_v24 = vpack.c.bf16 %v1924_v2, %v1923_v1 }
 0x517   : > { %2746 = vmatprep.mubr.msk.bf16.mxu0 %vm442_vm2, %v1941_v24 }
 0x518   : > { %2747 = vmatmul.mubr.msk.bf16.gmra.mrb[76].mxu0 %vm442_vm2, %v1942_v11 }
 0x59f   : > { %v2720_v50 = vpop.f32.mrb[48].mxu0 }
 0x5a0   : > { %v2073_v36 = vadd.f32 %v2720_v50, %v3525_v17  ;;  %v2064_v62 = vpop.f32.mrb[49].mxu0 }
 0x5a1   : > { %v2065_v10 = vadd.f32 %v3525_v17, %v2064_v62  ;;  %v2721_v9 = vpop.f32.mrb[50].mxu0 }
 0x5a2   : > { %2193 = vst [vmem:[%s3530_s20 + $0x10] sm:$0xff] %v2073_v36  ;;  %v2076_v13 = vadd.f32 %v2721_v9, %v3525_v17  ;;  %v2067_v21 = vpop.f32.mrb[51].mxu0 }
 0x5a3   : > { %2191 = vst [vmem:[%s3530_s20] sm:$0xff] %v2065_v10  ;;  %v2068_v26 = vadd.f32 %v3525_v17, %v2067_v21 }
 0x5a4   : > { %2194 = vst [vmem:[%s3530_s20 + $0x18] sm:$0xff] %v2076_v13 }
 0x5a5   : > { %2192 = vst [vmem:[%s3530_s20 + $0x8] sm:$0xff] %v2068_v26 }
 0x5a7   : > { %v2724_v61 = vpop.f32.mrb[52].mxu0 }
 0x5a8   : > { %v2089_v25 = vadd.f32 %v2724_v61, %v3525_v17  ;;  %v2080_v30 = vpop.f32.mrb[53].mxu0 }
 0x5a9   : > { %v2081_v32 = vadd.f32 %v3525_v17, %v2080_v30  ;;  %v2725_v58 = vpop.f32.mrb[54].mxu0 }
 0x5aa   : > { %2197 = vst [vmem:[%s3530_s20 + $0x30] sm:$0xff] %v2089_v25  ;;  %v2092_v35 = vadd.f32 %v2725_v58, %v3525_v17  ;;  %v2083_v41 = vpop.f32.mrb[55].mxu0 }
 0x5ab   : > { %2195 = vst [vmem:[%s3530_s20 + $0x20] sm:$0xff] %v2081_v32  ;;  %v2084_v40 = vadd.f32 %v3525_v17, %v2083_v41 }
 0x5ac   : > { %2198 = vst [vmem:[%s3530_s20 + $0x38] sm:$0xff] %v2092_v35 }
 0x5ad   : > { %2196 = vst [vmem:[%s3530_s20 + $0x28] sm:$0xff] %v2084_v40 }
 0x5af   : > { %v2728_v34 = vpop.f32.mrb[56].mxu0 }
 0x5b0   : > { %v2105_v14 = vadd.f32 %v2728_v34, %v3525_v17  ;;  %v2096_v15 = vpop.f32.mrb[57].mxu0 }
 0x5b1   : > { %v2097_v53 = vadd.f32 %v3525_v17, %v2096_v15  ;;  %v2729_v22 = vpop.f32.mrb[58].mxu0 }
 0x5b2   : > { %2201 = vst [vmem:[%s3530_s20 + $0x50] sm:$0xff] %v2105_v14  ;;  %v2108_v3 = vadd.f32 %v2729_v22, %v3525_v17  ;;  %v2099_v63 = vpop.f32.mrb[59].mxu0 }
 0x5b3   : > { %2199 = vst [vmem:[%s3530_s20 + $0x40] sm:$0xff] %v2097_v53  ;;  %v2100_v20 = vadd.f32 %v3525_v17, %v2099_v63 }
 0x5b4   : > { %2202 = vst [vmem:[%s3530_s20 + $0x58] sm:$0xff] %v2108_v3 }
 0x5b5   : > { %2200 = vst [vmem:[%s3530_s20 + $0x48] sm:$0xff] %v2100_v20 }
 0x5b7   : > { %v2732_v60 = vpop.f32.mrb[60].mxu0 }
 0x5b8   : > { %v2121_v43 = vadd.f32 %v2732_v60, %v3525_v17  ;;  %v2112_v54 = vpop.f32.mrb[61].mxu0 }
 0x5b9   : > { %v2113_v8 = vadd.f32 %v3525_v17, %v2112_v54  ;;  %v2733_v7 = vpop.f32.mrb[62].mxu0 }
 0x5ba   : > { %2205 = vst [vmem:[%s3530_s20 + $0x70] sm:$0xff] %v2121_v43  ;;  %v2124_v28 = vadd.f32 %v2733_v7, %v3525_v17  ;;  %v2115_v18 = vpop.f32.mrb[63].mxu0 }
 0x5bb   : > { %2203 = vst [vmem:[%s3530_s20 + $0x60] sm:$0xff] %v2113_v8  ;;  %v2116_v37 = vadd.f32 %v3525_v17, %v2115_v18 }
 0x5bc   : > { %2206 = vst [vmem:[%s3530_s20 + $0x78] sm:$0xff] %v2124_v28 }
 0x5bd   : > { %2204 = vst [vmem:[%s3530_s20 + $0x68] sm:$0xff] %v2116_v37 }
 0x5bf   : > { %v2736_v42 = vpop.f32.mrb[64].mxu0 }
 0x5c0   : > { %v2137_v31 = vadd.f32 %v2736_v42, %v3525_v17  ;;  %v2128_v57 = vpop.f32.mrb[65].mxu0 }
 0x5c1   : > { %v2129_v38 = vadd.f32 %v3525_v17, %v2128_v57  ;;  %v2737_v39 = vpop.f32.mrb[66].mxu0 }
 0x5c2   : > { %2209 = vst [vmem:[%s3530_s20 + $0x90] sm:$0xff] %v2137_v31  ;;  %v2140_v4 = vadd.f32 %v2737_v39, %v3525_v17  ;;  %v2131_v23 = vpop.f32.mrb[67].mxu0 }
 0x5c3   : > { %2207 = vst [vmem:[%s3530_s20 + $0x80] sm:$0xff] %v2129_v38  ;;  %v2132_v6 = vadd.f32 %v3525_v17, %v2131_v23 }
 0x5c4   : > { %2210 = vst [vmem:[%s3530_s20 + $0x98] sm:$0xff] %v2140_v4 }
 0x5c5   : > { %2208 = vst [vmem:[%s3530_s20 + $0x88] sm:$0xff] %v2132_v6 }
 0x5db   : > { %v2740_v33 = vpop.f32.mrb[68].mxu0 }
 0x5dc   : > { %v2153_v19 = vadd.f32 %v2740_v33, %v3525_v17  ;;  %v2144_v56 = vpop.f32.mrb[69].mxu0 }
 0x5dd   : > { %v2145_v0 = vadd.f32 %v3525_v17, %v2144_v56  ;;  %v2741_v48 = vpop.f32.mrb[70].mxu0 }
 0x5de   : > { %2213 = vst [vmem:[%s3530_s20 + $0xb0] sm:$0xff] %v2153_v19  ;;  %v2156_v45 = vadd.f32 %v2741_v48, %v3525_v17  ;;  %v2147_v51 = vpop.f32.mrb[71].mxu0 }
 0x5df   : > { %2211 = vst [vmem:[%s3530_s20 + $0xa0] sm:$0xff] %v2145_v0  ;;  %v2148_v27 = vadd.f32 %v3525_v17, %v2147_v51 }
 0x5e0   : > { %2214 = vst [vmem:[%s3530_s20 + $0xb8] sm:$0xff] %v2156_v45 }
 0x5e1   : > { %2212 = vst [vmem:[%s3530_s20 + $0xa8] sm:$0xff] %v2148_v27 }
 0x5e3   : > { %v2744_v52 = vpop.f32.mrb[72].mxu0 }
 0x5e4   : > { %v2169_v29 = vadd.f32 %v2744_v52, %v3525_v17  ;;  %v2160_v47 = vpop.f32.mrb[73].mxu0 }
 0x5e5   : > { %v2161_v5 = vadd.f32 %v3525_v17, %v2160_v47  ;;  %v2745_v46 = vpop.f32.mrb[74].mxu0 }
 0x5e6   : > { %2217 = vst [vmem:[%s3530_s20 + $0xd0] sm:$0xff] %v2169_v29  ;;  %v2172_v44 = vadd.f32 %v2745_v46, %v3525_v17  ;;  %v2163_v16 = vpop.f32.mrb[75].mxu0 }
 0x5e7   : > { %2215 = vst [vmem:[%s3530_s20 + $0xc0] sm:$0xff] %v2161_v5  ;;  %v2164_v55 = vadd.f32 %v3525_v17, %v2163_v16 }
 0x5e8   : > { %2218 = vst [vmem:[%s3530_s20 + $0xd8] sm:$0xff] %v2172_v44 }
 0x5e9   : > { %2216 = vst [vmem:[%s3530_s20 + $0xc8] sm:$0xff] %v2164_v55 }
 0x5eb   : > { %v2748_v12 = vpop.f32.mrb[76].mxu0 }
 0x5ec   : > { %v2185_v59 = vadd.f32 %v2748_v12, %v3525_v17  ;;  %v2176_v49 = vpop.f32.mrb[77].mxu0 }
 0x5ed   : > { %v2177_v1 = vadd.f32 %v3525_v17, %v2176_v49  ;;  %v2749_v2 = vpop.f32.mrb[78].mxu0 }
 0x5ee   : > { %2221 = vst [vmem:[%s3530_s20 + $0xf0] sm:$0xff] %v2185_v59  ;;  %v2188_v11 = vadd.f32 %v2749_v2, %v3525_v17  ;;  %v2179_v24 = vpop.f32.mrb[79].mxu0 }
 0x5ef   : > { %2219 = vst [vmem:[%s3530_s20 + $0xe0] sm:$0xff] %v2177_v1  ;;  %v2180_v50 = vadd.f32 %v3525_v17, %v2179_v24 }
 0x5f0   : > { %2222 = vst [vmem:[%s3530_s20 + $0xf8] sm:$0xff] %v2188_v11 }
 0x5f1   : > { %2220 = vst [vmem:[%s3530_s20 + $0xe8] sm:$0xff] %v2180_v50 }
 0x5f2 PF: > { %s17_s24 = sadd.s32 1, %s2959_s24  }
 0x5f3   : > { %p14_p4 = scmp.ge.s32.totalorder %s17_s24, 4  }
 0x5f5   :  { %16 = sbr.rel (!%p14_p4) target bundleno = 1 (0x1), region = 81 }

</bundles_post_ra>
